<compile_context>
chip_gen: v6e
topology: v6e:2x2x1
jax: 0.10.0
libtpu: 0.0.40
codegen_flags: <defaults>
</compile_context>

<pallas_src>
import jax
import jax.numpy as jnp
from jax.experimental import pallas as pl
from jax.experimental.pallas import tpu as pltpu

IN_FEATURES = 784
K_PAD = 896            # 784 rounded up to 7*128 -> fully dense lane tiles for layer 1
H1, H2 = 512, 256


def _round_up(x, m):
    return ((x + m - 1) // m) * m


def _leaky_relu(x, slope=0.2):
    # single VPU max instead of compare + select
    return jnp.maximum(x, slope * x)


def discriminator_kernel(x_ref, w1_ref, b1_ref, w2_ref, b2_ref, w3_ref, b3_ref,
                         o_ref):
    # x_ref: (TILE_B, K_PAD) bf16/f32 batch tile; weights resident across the grid.
    x = x_ref[...]

    # Layer 1: Linear(784->512), contraction zero-padded to 896; f32 accumulation.
    h1 = jnp.dot(x, w1_ref[...], preferred_element_type=jnp.float32)
    h1 = _leaky_relu(h1 + b1_ref[...])                       # f32 elementwise

    # Layer 2: Linear(512->256).
    h2 = jnp.dot(h1.astype(w2_ref.dtype), w2_ref[...],
                 preferred_element_type=jnp.float32)
    h2 = _leaky_relu(h2 + b2_ref[...])                       # (TILE_B, 256) f32

    # Layer 3: Linear(256->1) on VPU/XLU (mul + lane reduce) instead of an N=1
    # MXU matmul; result stored lane-dense as one (1, TILE_B) row.
    logits = jnp.sum(h2 * w3_ref[...], axis=-1) + b3_ref[0, 0]   # (TILE_B,)
    o_ref[...] = jax.nn.sigmoid(logits).reshape(1, -1).astype(o_ref.dtype)


def discriminator_forward(img, params, *, use_bf16=True, tile_b_max=512):
    """img: (B, 1, 28, 28) float32 -> validity (B, 1) float32."""
    B = img.shape[0]
    w1, b1, w2, b2, w3, b3 = params

    tile_b = min(tile_b_max, _round_up(B, 128))   # 128-aligned batch tiles
    b_pad = _round_up(B, tile_b)
    grid = (b_pad // tile_b,)

    mm_dtype = jnp.bfloat16 if use_bf16 else jnp.float32

    # Layout plumbing done once in the wrapper: flatten NCHW, pad the batch to the
    # tile size and the contraction dim 784->896 with zeros (exact), pre-cast the
    # matmul operands. Biases / final-layer weights stay f32.
    x = img.reshape(B, IN_FEATURES).astype(jnp.float32)
    x = jnp.pad(x, ((0, b_pad - B), (0, K_PAD - IN_FEATURES))).astype(mm_dtype)
    w1p = jnp.pad(w1, ((0, K_PAD - IN_FEATURES), (0, 0))).astype(mm_dtype)
    w2p = w2.astype(mm_dtype)
    w3row = w3.reshape(1, H2).astype(jnp.float32)   # (1, 256) row for the VPU reduce
    b3s = b3.reshape(1, 1).astype(jnp.float32)

    resident = lambda a: pl.BlockSpec(a.shape, lambda i: (0,) * a.ndim)

    flops = 2 * b_pad * (K_PAD * H1 + H1 * H2 + H2)
    bytes_accessed = int(
        x.size * x.dtype.itemsize
        + w1p.size * w1p.dtype.itemsize + w2p.size * w2p.dtype.itemsize
        + (b1.size + b2.size + w3row.size + b3s.size + b_pad) * 4)

    out = pl.pallas_call(
        discriminator_kernel,
        out_shape=jax.ShapeDtypeStruct((grid[0], tile_b), jnp.float32),
        grid=grid,
        in_specs=[
            pl.BlockSpec((tile_b, K_PAD), lambda i: (i, 0)),  # x: tiled along batch
            resident(w1p), resident(b1),                      # weights/biases resident
            resident(w2p), resident(b2),
            resident(w3row), resident(b3s),
        ],
        out_specs=pl.BlockSpec((1, tile_b), lambda i: (i, 0)),  # lane-dense output slab
        compiler_params=pltpu.CompilerParams(
            dimension_semantics=("parallel",),    # megacore / 2-TC sharding on v7x
            vmem_limit_bytes=32 << 20,            # fits v7x 64 MiB VMEM comfortably
        ),
        cost_estimate=pl.CostEstimate(
            flops=flops, transcendentals=b_pad, bytes_accessed=bytes_accessed),
    )(x, w1p, b1, w2p, b2, w3row, b3s)

    return out.reshape(b_pad)[:B].reshape(B, 1)


def init_params(key):
    """nn.Linear-style init U(-1/sqrt(fan_in), +1/sqrt(fan_in)); weights stored (in, out)."""
    dims = [(IN_FEATURES, H1), (H1, H2), (H2, 1)]
    params = []
    for (din, dout) in dims:
        key, kw, kb = jax.random.split(key, 3)
        bound = 1.0 / jnp.sqrt(din)
        w = jax.random.uniform(kw, (din, dout), jnp.float32, -bound, bound)
        b = jax.random.uniform(kb, (1, dout), jnp.float32, -bound, bound)
        params += [w, b]
    return tuple(params)


def reference_forward(img, params, *, use_bf16=True):
    """Pure-JAX reference. use_bf16=True mirrors the kernel's MXU input dtype;
    use_bf16=False is the faithful f32 PyTorch semantics."""
    x = img.reshape(img.shape[0], -1).astype(jnp.float32)
    w1, b1, w2, b2, w3, b3 = params
    mm = jnp.bfloat16 if use_bf16 else jnp.float32
    h1 = jnp.dot(x.astype(mm), w1.astype(mm),
                 preferred_element_type=jnp.float32) + b1
    h1 = jnp.maximum(h1, 0.2 * h1)
    h2 = jnp.dot(h1.astype(mm), w2.astype(mm),
                 preferred_element_type=jnp.float32) + b2
    h2 = jnp.maximum(h2, 0.2 * h2)
    logits = jnp.sum(h2 * w3.reshape(1, -1), axis=-1, keepdims=True) + b3
    return jax.nn.sigmoid(logits)


if __name__ == "__main__":
    key = jax.random.PRNGKey(0)
    kp, kx = jax.random.split(key)

    params = init_params(kp)
    # MNIST-like input: batch=8, NCHW (8, 1, 28, 28) -> 784 features.
    img = jax.random.normal(kx, (8, 1, 28, 28), jnp.float32)

    validity = discriminator_forward(img, params, use_bf16=True)
    validity = jax.block_until_ready(validity)
    assert validity.shape == (8, 1)

    # Reference mirroring the kernel's math (bf16 MXU inputs, f32 accumulation).
    ref_bf16 = reference_forward(img, params, use_bf16=True)
    assert jnp.allclose(validity, ref_bf16, atol=1e-4, rtol=1e-4), \
        float(jnp.max(jnp.abs(validity - ref_bf16)))

    # Faithful f32 reference of the PyTorch module (loose tol for bf16 matmul inputs).
    ref_f32 = reference_forward(img, params, use_bf16=False)
    assert jnp.allclose(validity, ref_f32, atol=2e-2), \
        float(jnp.max(jnp.abs(validity - ref_f32)))

    print("KERNEL_OK")
</pallas_src>

<mosaic_0001>
module attributes {stable_mosaic.version = 11 : i64} {
  func.func @discriminator_kernel(%arg0: i32, %arg1: memref<128x896xbf16, #tpu.memory_space<vmem>>, %arg2: memref<896x512xbf16, #tpu.memory_space<vmem>>, %arg3: memref<1x512xf32, #tpu.memory_space<vmem>>, %arg4: memref<512x256xbf16, #tpu.memory_space<vmem>>, %arg5: memref<1x256xf32, #tpu.memory_space<vmem>>, %arg6: memref<1x256xf32, #tpu.memory_space<vmem>>, %arg7: memref<1x1xf32, #tpu.memory_space<vmem>>, %arg8: memref<1x128xf32, #tpu.memory_space<vmem>>) attributes {dimension_semantics = [#tpu.dimension_semantics<parallel>], iteration_bounds = array<i64: 1>, scalar_prefetch = 0 : i64, scratch_operands = 0 : i64, tpu.core_type = #tpu.core_type<tc>, window_params = [{transform_indices = @transform_0, window_bounds = array<i64: 128, 896>}, {pipeline_mode = #tpu.pipeline_mode<synchronous>, transform_indices = @transform_1, window_bounds = array<i64: 896, 512>}, {pipeline_mode = #tpu.pipeline_mode<synchronous>, transform_indices = @transform_2, window_bounds = array<i64: 1, 512>}, {pipeline_mode = #tpu.pipeline_mode<synchronous>, transform_indices = @transform_3, window_bounds = array<i64: 512, 256>}, {pipeline_mode = #tpu.pipeline_mode<synchronous>, transform_indices = @transform_4, window_bounds = array<i64: 1, 256>}, {pipeline_mode = #tpu.pipeline_mode<synchronous>, transform_indices = @transform_5, window_bounds = array<i64: 1, 256>}, {pipeline_mode = #tpu.pipeline_mode<synchronous>, transform_indices = @transform_6, window_bounds = array<i64: 1, 1>}, {transform_indices = @transform_7, window_bounds = array<i64: 1, 128>}]} {
    %c0 = arith.constant 0 : index
    %c0_0 = arith.constant 0 : index
    %0 = vector.load %arg1[%c0, %c0_0] : memref<128x896xbf16, #tpu.memory_space<vmem>>, vector<128x896xbf16>
    %c0_1 = arith.constant 0 : index
    %c0_2 = arith.constant 0 : index
    %1 = vector.load %arg2[%c0_1, %c0_2] : memref<896x512xbf16, #tpu.memory_space<vmem>>, vector<896x512xbf16>
    %cst = arith.constant dense<0.000000e+00> : vector<128x512xf32>
    %2 = tpu.matmul %0, %1, %cst {dimension_numbers = #tpu.dot_dimension_numbers<[1], [0], [0], [1], [0, 0, 1, 1], [], []>} : vector<128x896xbf16>, vector<896x512xbf16>, vector<128x512xf32> -> vector<128x512xf32>
    %c0_3 = arith.constant 0 : index
    %c0_4 = arith.constant 0 : index
    %3 = vector.load %arg3[%c0_3, %c0_4] : memref<1x512xf32, #tpu.memory_space<vmem>>, vector<1x512xf32>
    %4 = vector.broadcast %3 : vector<1x512xf32> to vector<128x512xf32>
    %5 = arith.addf %2, %4 : vector<128x512xf32>
    %cst_5 = arith.constant 2.000000e-01 : f32
    %6 = vector.broadcast %cst_5 : f32 to vector<128x512xf32>
    %7 = arith.mulf %6, %5 : vector<128x512xf32>
    %8 = arith.maximumf %5, %7 : vector<128x512xf32>
    %9 = arith.truncf %8 : vector<128x512xf32> to vector<128x512xbf16>
    %c0_6 = arith.constant 0 : index
    %c0_7 = arith.constant 0 : index
    %10 = vector.load %arg4[%c0_6, %c0_7] : memref<512x256xbf16, #tpu.memory_space<vmem>>, vector<512x256xbf16>
    %cst_8 = arith.constant dense<0.000000e+00> : vector<128x256xf32>
    %11 = tpu.matmul %9, %10, %cst_8 {dimension_numbers = #tpu.dot_dimension_numbers<[1], [0], [0], [1], [0, 0, 1, 1], [], []>} : vector<128x512xbf16>, vector<512x256xbf16>, vector<128x256xf32> -> vector<128x256xf32>
    %c0_9 = arith.constant 0 : index
    %c0_10 = arith.constant 0 : index
    %12 = vector.load %arg5[%c0_9, %c0_10] : memref<1x256xf32, #tpu.memory_space<vmem>>, vector<1x256xf32>
    %13 = vector.broadcast %12 : vector<1x256xf32> to vector<128x256xf32>
    %14 = arith.addf %11, %13 : vector<128x256xf32>
    %cst_11 = arith.constant 2.000000e-01 : f32
    %15 = vector.broadcast %cst_11 : f32 to vector<128x256xf32>
    %16 = arith.mulf %15, %14 : vector<128x256xf32>
    %17 = arith.maximumf %14, %16 : vector<128x256xf32>
    %c0_12 = arith.constant 0 : index
    %c0_13 = arith.constant 0 : index
    %18 = vector.load %arg6[%c0_12, %c0_13] : memref<1x256xf32, #tpu.memory_space<vmem>>, vector<1x256xf32>
    %19 = vector.broadcast %18 : vector<1x256xf32> to vector<128x256xf32>
    %20 = arith.mulf %17, %19 : vector<128x256xf32>
    %cst_14 = arith.constant dense<0.000000e+00> : vector<128xf32>
    %21 = vector.multi_reduction <add>, %20, %cst_14 [1] : vector<128x256xf32> to vector<128xf32>
    %c0_15 = arith.constant 0 : index
    %c0_16 = arith.constant 0 : index
    %22 = vector.load %arg7[%c0_15, %c0_16] : memref<1x1xf32, #tpu.memory_space<vmem>>, vector<1x1xf32>
    %23 = vector.extract %22[0, 0] : f32 from vector<1x1xf32>
    %24 = vector.broadcast %23 : f32 to vector<128xf32>
    %25 = arith.addf %21, %24 : vector<128xf32>
    %26 = arith.negf %25 : vector<128xf32>
    %27 = math.exp %26 : vector<128xf32>
    %cst_17 = arith.constant 1.000000e+00 : f32
    %28 = vector.broadcast %cst_17 : f32 to vector<128xf32>
    %29 = arith.addf %28, %27 : vector<128xf32>
    %30 = arith.divf %28, %29 : vector<128xf32>
    %31 = vector.shape_cast %30 : vector<128xf32> to vector<1x128xf32>
    %c0_18 = arith.constant 0 : index
    %c0_19 = arith.constant 0 : index
    %32 = vector.load %arg8[%c0_18, %c0_19] : memref<1x128xf32, #tpu.memory_space<vmem>>, vector<1x128xf32>
    tpu.vector_store %arg8[%c0_18, %c0_19], %31 {strides = array<i32>} : memref<1x128xf32, #tpu.memory_space<vmem>>, vector<1x128xf32>,
    return
  }
  func.func @transform_0(%arg0: i32) -> (i32, i32) {
    %c0_i32 = arith.constant 0 : i32
    %c0_i32_0 = arith.constant 0 : i32
    return %arg0, %c0_i32 : i32, i32
  }
  func.func @transform_1(%arg0: i32) -> (i32, i32) {
    %c0_i32 = arith.constant 0 : i32
    %c0_i32_0 = arith.constant 0 : i32
    %c0_i32_1 = arith.constant 0 : i32
    return %c0_i32, %c0_i32_0 : i32, i32
  }
  func.func @transform_2(%arg0: i32) -> (i32, i32) {
    %c0_i32 = arith.constant 0 : i32
    %c0_i32_0 = arith.constant 0 : i32
    %c0_i32_1 = arith.constant 0 : i32
    return %c0_i32, %c0_i32_0 : i32, i32
  }
  func.func @transform_3(%arg0: i32) -> (i32, i32) {
    %c0_i32 = arith.constant 0 : i32
    %c0_i32_0 = arith.constant 0 : i32
    %c0_i32_1 = arith.constant 0 : i32
    return %c0_i32, %c0_i32_0 : i32, i32
  }
  func.func @transform_4(%arg0: i32) -> (i32, i32) {
    %c0_i32 = arith.constant 0 : i32
    %c0_i32_0 = arith.constant 0 : i32
    %c0_i32_1 = arith.constant 0 : i32
    return %c0_i32, %c0_i32_0 : i32, i32
  }
  func.func @transform_5(%arg0: i32) -> (i32, i32) {
    %c0_i32 = arith.constant 0 : i32
    %c0_i32_0 = arith.constant 0 : i32
    %c0_i32_1 = arith.constant 0 : i32
    return %c0_i32, %c0_i32_0 : i32, i32
  }
  func.func @transform_6(%arg0: i32) -> (i32, i32) {
    %c0_i32 = arith.constant 0 : i32
    %c0_i32_0 = arith.constant 0 : i32
    %c0_i32_1 = arith.constant 0 : i32
    return %c0_i32, %c0_i32_0 : i32, i32
  }
  func.func @transform_7(%arg0: i32) -> (i32, i32) {
    %c0_i32 = arith.constant 0 : i32
    %c0_i32_0 = arith.constant 0 : i32
    return %arg0, %c0_i32 : i32, i32
  }
}

</mosaic_0001>

<bundles_post_ra>
// kernel: tpu_custom_call.1
= control target key start
LH: loop header
LB: loop body
LE: loop exit
PB: predicated region body
PF: predicated region fallthrough
CT: control target
= control target key end

     0   :  { %s5685_s0 = inlined_call_operand.hbm [shape: bf16[128,896], index: 0, kind: input, shape index: {}]   ;;  %s5686_s1 = inlined_call_operand.hbm [shape: bf16[896,512], index: 1, kind: input, shape index: {}]   ;;  %s5687_s2 = inlined_call_operand.vmem [shape: f32[1,512], index: 2, kind: input, shape index: {}]   ;;  %s5688_s3 = inlined_call_operand.hbm [shape: bf16[512,256], index: 3, kind: input, shape index: {}]   ;;  %s5689_s4 = inlined_call_operand.vmem [shape: f32[1,256], index: 4, kind: input, shape index: {}]   ;;  %s5690_s5 = inlined_call_operand.vmem [shape: f32[1,256], index: 5, kind: input, shape index: {}]   ;;  %s5691_s6 = inlined_call_operand.<no memory space> [shape: f32[1,1], index: 6, kind: input, shape index: {}]   ;;  %s5692_s7 = inlined_call_operand.hbm [shape: f32[1,128], index: 7, kind: output, shape index: {}]  }
   0x1   :  { %v12_v0 = vstv %s5691_s6 }
   0x2   :  { %13 = vst [vmem:[#allocation2] sm:$0x1] %v12_v0 }
   0x3   :  { %14 = vsyncpa [#allocation4], 0 }
   0x4   :  { %15 = vsyncpa [#allocation7], 0 }
   0x5   :  { %16 = vsyncpa [#allocation5], 0  ;;  %s4952_s26 = smov [#allocation6]  }
   0x6   :  { %s34_s27 = sshll.u32 %s4952_s26, 4  ;;  %s35_s27 = int_to_ptr.vmem [resolvable:$true] %s34_s27 }
   0x7   :  { %s4874_s28 = scalar_lea.vmem %s35_s27, 28672  ;;  %p4879_p1 = scmp.lt.s32.totalorder %s35_s27, %s35_s27 }
   0x8   :  { %p4875_p0 = scmp.ne.s32.totalorder %s35_s27, %s4874_s28  ;;  %p4880_p2 = scmp.lt.s32.totalorder %s4874_s28, %s4874_s28 }
   0xa   :  { %p4881_p3 = por %p4880_p2, %p4879_p1 }
   0xc   :  { %p4882_p4 = pnand %p4881_p3, %p4875_p0 }
   0xe   :  { %4885 = shalt.err (!%p4882_p4)
}
   0xf   :  { %s4953_s29 = smov 256   ;;  %s4954_s30 = smov 16  }
  0x10   :  { %40 = dma.hbm_to_vmem [thread:$0]  %s5686_s1, 28672, %s35_s27, [#allocation7], %s4953_s29, %s4953_s29, %s4954_s30  }
  0x11   :  { %s4955_s6 = smov [#allocation3]  }
  0x12   :  { %s22_s10 = sshll.u32 %s4955_s6, 4  ;;  %s23_s10 = int_to_ptr.vmem [resolvable:$true] %s22_s10 }
  0x13   :  { %s4894_s11 = scalar_lea.vmem %s23_s10, 7168  ;;  %p4899_p6 = scmp.lt.s32.totalorder %s23_s10, %s23_s10 }
  0x14   :  { %p4895_p5 = scmp.ne.s32.totalorder %s23_s10, %s4894_s11  ;;  %p4900_p7 = scmp.lt.s32.totalorder %s4894_s11, %s4894_s11 }
  0x16   :  { %p4901_p8 = por %p4900_p7, %p4899_p6 }
  0x18   :  { %p4902_p9 = pnand %p4901_p8, %p4895_p5 }
  0x1a   :  { %4905 = shalt.err (!%p4902_p9)
}
  0x1b   :  { %s4956_s12 = smov 448   ;;  %s4957_s13 = smov 28  }
  0x1c   :  { %28 = dma.hbm_to_vmem [thread:$0]  %s5685_s0, 7168, %s23_s10, [#allocation4], %s4956_s12, %s4956_s12, %s4957_s13  }
  0x1d   :  { %s4958_s16 = smov [#allocation8]  }
  0x1e   :  { %s48_s17 = sshll.u32 %s4958_s16, 4  ;;  %s49_s17 = int_to_ptr.vmem [resolvable:$true] %s48_s17 }
  0x1f   :  { %s4914_s1 = scalar_lea.vmem %s49_s17, 8192  ;;  %p4919_p11 = scmp.lt.s32.totalorder %s49_s17, %s49_s17 }
  0x20   :  { %p4915_p10 = scmp.ne.s32.totalorder %s49_s17, %s4914_s1  ;;  %p4920_p12 = scmp.lt.s32.totalorder %s4914_s1, %s4914_s1 }
  0x22   :  { %p4921_p13 = por %p4920_p12, %p4919_p11 }
  0x24   :  { %p4922_p0 = pnand %p4921_p13, %p4915_p10 }
  0x26   :  { %4925 = shalt.err (!%p4922_p0)
}
  0x27   :  { %s4959_s18 = smov 128   ;;  %s4960_s19 = smov 8  }
  0x28   :  { %54 = dma.hbm_to_vmem [thread:$0]  %s5688_s3, 8192, %s49_s17, [#allocation7], %s4959_s18, %s4959_s18, %s4960_s19  }
  0x29   :  { %4946 = dma.done.wait [#allocation4], 7168  }
  0x2a   :  { %4947 = vsyncadd [#allocation4], 4294960128 }
  0x2b   :  { %4948 = dma.done.wait [#allocation7], 36864  }
  0x2c   :  { %4949 = vsyncadd [#allocation7], 4294930432  ;;  %v4264_v1 = vld [vmem:[#allocation6 + $0xe4] ss:$16 sps:$4 sm:$0xff]   ;;  %v4268_v3 = vld [vmem:[#allocation6 + $0xe0] ss:$16 sps:$4 sm:$0xff]  }
  0x2d   :  { %v4266_v2 = vld [vmem:[#allocation6 + $0x2e4] ss:$16 sps:$4 sm:$0xff]   ;;  %1789 = vmatprep.subr.bf16.mxu0 %v4264_v1  ;;  %v4269_v4 = vld [vmem:[#allocation6 + $0x2e0] ss:$16 sps:$4 sm:$0xff]   ;;  %v4365_v52 = vld [vmem:[#allocation3 + $0xc] ss:$28 sps:$4 sm:$0xff]  }
  0x2e   :  { %1902 = vmatprep.subr.bf16.mxu1 %v4266_v2  ;;  %v4270_v5 = vld [vmem:[#allocation6 + $0xc4] ss:$16 sps:$4 sm:$0xff]   ;;  %1790 = vmatpush1.bf16.msra.mxu0 %v4268_v3  ;;  %v4274_v7 = vld [vmem:[#allocation6 + $0xc0] ss:$16 sps:$4 sm:$0xff]   ;;  %vm3773_vm0 = vcmask 130112   ;;  %vm3780_vm1 = vcmask 195712  }
  0x2f   :  { %1903 = vmatpush1.bf16.msra.mxu1 %v4269_v4  ;;  %v4272_v6 = vld [vmem:[#allocation6 + $0x2c4] ss:$16 sps:$4 sm:$0xff]   ;;  %1791 = vmatprep.subr.bf16.mxu0 %v4270_v5  ;;  %v4275_v8 = vld [vmem:[#allocation6 + $0x2c0] ss:$16 sps:$4 sm:$0xff]   ;;  %vm3787_vm2 = vcmask 261312   ;;  %vm3794_vm3 = vcmask 326912  }
  0x30   :  { %1904 = vmatprep.subr.bf16.mxu1 %v4272_v6  ;;  %v4276_v9 = vld [vmem:[#allocation6 + $0xa4] ss:$16 sps:$4 sm:$0xff]   ;;  %v4280_v11 = vld [vmem:[#allocation6 + $0xa0] ss:$16 sps:$4 sm:$0xff]   ;;  %1934 = vmatprep.mubr.bf16.mxu1 %v4365_v52  ;;  %vm3801_vm4 = vcmask 392512   ;;  %vm3808_vm5 = vcmask 458112  }
  0x31   :  { %v4278_v10 = vld [vmem:[#allocation6 + $0x2a4] ss:$16 sps:$4 sm:$0xff]   ;;  %v4281_v12 = vld [vmem:[#allocation6 + $0x2a0] ss:$16 sps:$4 sm:$0xff]   ;;  %vm3815_vm6 = vcmask 523712   ;;  %vm3822_vm7 = vcmask 589312  }
  0x32   :  { %1792 = vmatpush1.bf16.msra.mxu0 %v4274_v7  ;;  %v4282_v13 = vld [vmem:[#allocation6 + $0x84] ss:$16 sps:$4 sm:$0xff]   ;;  %v4286_v15 = vld [vmem:[#allocation6 + $0x80] ss:$16 sps:$4 sm:$0xff]   ;;  %vm3829_vm8 = vcmask 654912   ;;  %vm3836_vm9 = vcmask 720512  }
  0x33   :  { %1905 = vmatpush1.bf16.msra.mxu1 %v4275_v8  ;;  %1793 = vmatprep.subr.bf16.mxu0 %v4276_v9  ;;  %v4284_v14 = vld [vmem:[#allocation6 + $0x284] ss:$16 sps:$4 sm:$0xff]   ;;  %v4287_v16 = vld [vmem:[#allocation6 + $0x280] ss:$16 sps:$4 sm:$0xff]   ;;  %vm3843_vm10 = vcmask 786112   ;;  %vm3850_vm11 = vcmask 851712  }
  0x34   :  { %1906 = vmatprep.subr.bf16.mxu1 %v4278_v10  ;;  %v4288_v17 = vld [vmem:[#allocation6 + $0x64] ss:$16 sps:$4 sm:$0xff]   ;;  %v4292_v19 = vld [vmem:[#allocation6 + $0x60] ss:$16 sps:$4 sm:$0xff]   ;;  %v4375_v10 = vld [vmem:[#allocation3 + $0x3c] ss:$28 sps:$4 sm:$0xff]  }
  0x35   :  { %v4290_v18 = vld [vmem:[#allocation6 + $0x264] ss:$16 sps:$4 sm:$0xff]   ;;  %v4293_v20 = vld [vmem:[#allocation6 + $0x260] ss:$16 sps:$4 sm:$0xff]   ;;  %vm3857_vm12 = vcmask 917312   ;;  %vm3864_vm13 = vcmask 982912  }
  0x36   :  { %1794 = vmatpush1.bf16.msra.mxu0 %v4280_v11  ;;  %v4294_v21 = vld [vmem:[#allocation6 + $0x44] ss:$16 sps:$4 sm:$0xff]   ;;  %v4298_v23 = vld [vmem:[#allocation6 + $0x40] ss:$16 sps:$4 sm:$0xff]   ;;  %vm3871_vm14 = vcmask 1048512  }
  0x37   :  { %1907 = vmatpush1.bf16.msra.mxu1 %v4281_v12  ;;  %1795 = vmatprep.subr.bf16.mxu0 %v4282_v13  ;;  %v4296_v22 = vld [vmem:[#allocation6 + $0x244] ss:$16 sps:$4 sm:$0xff]   ;;  %v4299_v24 = vld [vmem:[#allocation6 + $0x240] ss:$16 sps:$4 sm:$0xff]  }
  0x38   :  { %1908 = vmatprep.subr.bf16.mxu1 %v4284_v14  ;;  %v4300_v25 = vld [vmem:[#allocation6 + $0x24] ss:$16 sps:$4 sm:$0xff]   ;;  %v4304_v27 = vld [vmem:[#allocation6 + $0x20] ss:$16 sps:$4 sm:$0xff]  }
  0x39   :  { %v4302_v26 = vld [vmem:[#allocation6 + $0x224] ss:$16 sps:$4 sm:$0xff]   ;;  %v4305_v28 = vld [vmem:[#allocation6 + $0x220] ss:$16 sps:$4 sm:$0xff]  }
  0x3a   :  { %1796 = vmatpush1.bf16.msra.mxu0 %v4286_v15  ;;  %v4306_v29 = vld [vmem:[#allocation6 + $0x4] ss:$16 sps:$4 sm:$0xff]   ;;  %v4310_v31 = vld [vmem:[#allocation6] ss:$16 sps:$4 sm:$0xff]  }
  0x3b   :  { %1909 = vmatpush1.bf16.msra.mxu1 %v4287_v16  ;;  %1797 = vmatprep.subr.bf16.mxu0 %v4288_v17  ;;  %v4308_v30 = vld [vmem:[#allocation6 + $0x204] ss:$16 sps:$4 sm:$0xff]   ;;  %v4311_v32 = vld [vmem:[#allocation6 + $0x200] ss:$16 sps:$4 sm:$0xff]  }
  0x3c   :  { %1910 = vmatprep.subr.bf16.mxu1 %v4290_v18  ;;  %v4312_v33 = vld [vmem:[#allocation6 + $0x1e4] ss:$16 sps:$4 sm:$0xff]   ;;  %v4316_v35 = vld [vmem:[#allocation6 + $0x1e0] ss:$16 sps:$4 sm:$0xff]  }
  0x3d   :  { %v4314_v34 = vld [vmem:[#allocation6 + $0x3e4] ss:$16 sps:$4 sm:$0xff]   ;;  %v4317_v36 = vld [vmem:[#allocation6 + $0x3e0] ss:$16 sps:$4 sm:$0xff]  }
  0x3e   :  { %1798 = vmatpush1.bf16.msra.mxu0 %v4292_v19  ;;  %v4318_v37 = vld [vmem:[#allocation6 + $0x1c4] ss:$16 sps:$4 sm:$0xff]   ;;  %v4322_v39 = vld [vmem:[#allocation6 + $0x1c0] ss:$16 sps:$4 sm:$0xff]  }
  0x3f   :  { %1911 = vmatpush1.bf16.msra.mxu1 %v4293_v20  ;;  %1799 = vmatprep.subr.bf16.mxu0 %v4294_v21  ;;  %v4320_v38 = vld [vmem:[#allocation6 + $0x3c4] ss:$16 sps:$4 sm:$0xff]   ;;  %v4323_v40 = vld [vmem:[#allocation6 + $0x3c0] ss:$16 sps:$4 sm:$0xff]  }
  0x40   :  { %1912 = vmatprep.subr.bf16.mxu1 %v4296_v22  ;;  %v4324_v41 = vld [vmem:[#allocation6 + $0x1a4] ss:$16 sps:$4 sm:$0xff]   ;;  %v4328_v43 = vld [vmem:[#allocation6 + $0x1a0] ss:$16 sps:$4 sm:$0xff]   ;;  %v4392_v22 = vld [vmem:[#allocation3 + $0x7c] ss:$28 sps:$4 sm:$0xff]  }
  0x41   :  { %v4326_v42 = vld [vmem:[#allocation6 + $0x3a4] ss:$16 sps:$4 sm:$0xff]   ;;  %v4329_v44 = vld [vmem:[#allocation6 + $0x3a0] ss:$16 sps:$4 sm:$0xff]  }
  0x42   :  { %1800 = vmatpush1.bf16.msra.mxu0 %v4298_v23  ;;  %v4330_v45 = vld [vmem:[#allocation6 + $0x184] ss:$16 sps:$4 sm:$0xff]   ;;  %v4334_v47 = vld [vmem:[#allocation6 + $0x180] ss:$16 sps:$4 sm:$0xff]  }
  0x43   :  { %1913 = vmatpush1.bf16.msra.mxu1 %v4299_v24  ;;  %1801 = vmatprep.subr.bf16.mxu0 %v4300_v25  ;;  %v4332_v46 = vld [vmem:[#allocation6 + $0x384] ss:$16 sps:$4 sm:$0xff]   ;;  %v4335_v48 = vld [vmem:[#allocation6 + $0x380] ss:$16 sps:$4 sm:$0xff]  }
  0x44   :  { %1914 = vmatprep.subr.bf16.mxu1 %v4302_v26  ;;  %v4336_v49 = vld [vmem:[#allocation6 + $0x164] ss:$16 sps:$4 sm:$0xff]   ;;  %v4340_v53 = vld [vmem:[#allocation6 + $0x160] ss:$16 sps:$4 sm:$0xff]  }
  0x45   :  { %v4362_v50 = vld [vmem:[#allocation3 + $0x4] ss:$28 sps:$4 sm:$0xff]   ;;  %v4379_v17 = vld [vmem:[#allocation3 + $0x38] ss:$28 sps:$4 sm:$0xff]   ;;  %v4394_v26 = vld [vmem:[#allocation3 + $0x70] ss:$28 sps:$4 sm:$0xff]  }
  0x46   :  { %1802 = vmatpush1.bf16.msra.mxu0 %v4304_v27  ;;  %v4338_v51 = vld [vmem:[#allocation6 + $0x364] ss:$16 sps:$4 sm:$0xff]   ;;  %1821 = vmatprep.mubr.bf16.mxu0 %v4362_v50  ;;  %v4341_v54 = vld [vmem:[#allocation6 + $0x360] ss:$16 sps:$4 sm:$0xff]  }
  0x47   :  { %1915 = vmatpush1.bf16.msra.mxu1 %v4305_v28  ;;  %1803 = vmatprep.subr.bf16.mxu0 %v4306_v29  ;;  %v4342_v55 = vld [vmem:[#allocation6 + $0x144] ss:$16 sps:$4 sm:$0xff]   ;;  %v4346_v57 = vld [vmem:[#allocation6 + $0x140] ss:$16 sps:$4 sm:$0xff]  }
  0x48   :  { %1916 = vmatprep.subr.bf16.mxu1 %v4308_v30  ;;  %v4344_v56 = vld [vmem:[#allocation6 + $0x344] ss:$16 sps:$4 sm:$0xff]   ;;  %v4347_v58 = vld [vmem:[#allocation6 + $0x340] ss:$16 sps:$4 sm:$0xff]  }
  0x49   :  { %v4348_v59 = vld [vmem:[#allocation6 + $0x124] ss:$16 sps:$4 sm:$0xff]   ;;  %v4352_v61 = vld [vmem:[#allocation6 + $0x120] ss:$16 sps:$4 sm:$0xff]  }
  0x4a   :  { %1804 = vmatpush1.bf16.msra.mxu0 %v4310_v31  ;;  %v4350_v60 = vld [vmem:[#allocation6 + $0x324] ss:$16 sps:$4 sm:$0xff]   ;;  %v4353_v62 = vld [vmem:[#allocation6 + $0x320] ss:$16 sps:$4 sm:$0xff]  }
  0x4b   :  { %1917 = vmatpush1.bf16.msra.mxu1 %v4311_v32  ;;  %1805 = vmatprep.subr.bf16.mxu0 %v4312_v33  ;;  %v4354_v63 = vld [vmem:[#allocation6 + $0x104] ss:$16 sps:$4 sm:$0xff]   ;;  %v4358_v1 = vld [vmem:[#allocation6 + $0x100] ss:$16 sps:$4 sm:$0xff]   ;;  %v4405_v32 = vld [vmem:[#allocation3 + $0xac] ss:$28 sps:$4 sm:$0xff]  }
  0x4c   :  { %1918 = vmatprep.subr.bf16.mxu1 %v4314_v34  ;;  %v4356_v0 = vld [vmem:[#allocation6 + $0x304] ss:$16 sps:$4 sm:$0xff]   ;;  %v4359_v2 = vld [vmem:[#allocation6 + $0x300] ss:$16 sps:$4 sm:$0xff]  }
  0x4d   :  { %v4368_v3 = vld [vmem:[#allocation6 + $0x4e4] ss:$16 sps:$4 sm:$0xff]   ;;  %v4360_v5 = vld [vmem:[#allocation3] ss:$28 sps:$4 sm:$0xff]  }
  0x4e   :  { %1806 = vmatpush2.bf16.msra.mxu0 %v4316_v35  ;;  %v4371_v4 = vld [vmem:[#allocation6 + $0x6e4] ss:$16 sps:$4 sm:$0xff]   ;;  %v4366_v7 = vld [vmem:[#allocation6 + $0x4e0] ss:$16 sps:$4 sm:$0xff]  }
  0x4f   :  { %1919 = vmatpush2.bf16.msra.mxu1 %v4317_v36  ;;  %1807 = vmatprep.subr.bf16.mxu0 %v4318_v37  ;;  %v4363_v6 = vld [vmem:[#allocation3 + $0x8] ss:$28 sps:$4 sm:$0xff]   ;;  %v4369_v8 = vld [vmem:[#allocation6 + $0x6e0] ss:$16 sps:$4 sm:$0xff]   ;;  %v4395_v28 = vld [vmem:[#allocation3 + $0x78] ss:$28 sps:$4 sm:$0xff]  }
  0x50   :  { %1920 = vmatprep.subr.bf16.mxu1 %v4320_v38  ;;  %v4374_v9 = vld [vmem:[#allocation6 + $0x4c4] ss:$16 sps:$4 sm:$0xff]   ;;  %v4372_v13 = vld [vmem:[#allocation6 + $0x4c0] ss:$16 sps:$4 sm:$0xff]  }
  0x51   :  { %v4377_v11 = vld [vmem:[#allocation3 + $0x44] ss:$28 sps:$4 sm:$0xff]   ;;  %v4390_v21 = vld [vmem:[#allocation3 + $0x74] ss:$28 sps:$4 sm:$0xff]  }
  0x52   :  { %1808 = vmatpush2.bf16.msra.mxu0 %v4322_v39  ;;  %v4386_v12 = vld [vmem:[#allocation6 + $0x6c4] ss:$16 sps:$4 sm:$0xff]   ;;  %v4384_v15 = vld [vmem:[#allocation6 + $0x6c0] ss:$16 sps:$4 sm:$0xff]  }
  0x53   :  { %1921 = vmatpush2.bf16.msra.mxu1 %v4323_v40  ;;  %1809 = vmatprep.subr.bf16.mxu0 %v4324_v41  ;;  %v4383_v14 = vld [vmem:[#allocation6 + $0x4a4] ss:$16 sps:$4 sm:$0xff]   ;;  %v4380_v18 = vld [vmem:[#allocation3 + $0x40] ss:$28 sps:$4 sm:$0xff]   ;;  %v4410_v40 = vld [vmem:[#allocation3 + $0xb0] ss:$28 sps:$4 sm:$0xff]  }
  0x54   :  { %1922 = vmatprep.subr.bf16.mxu1 %v4326_v42  ;;  %v4401_v16 = vld [vmem:[#allocation6 + $0x6a4] ss:$16 sps:$4 sm:$0xff]   ;;  %v4381_v19 = vld [vmem:[#allocation6 + $0x4a0] ss:$16 sps:$4 sm:$0xff]  }
  0x55   :  { %v4389_v20 = vld [vmem:[#allocation6 + $0x484] ss:$16 sps:$4 sm:$0xff]   ;;  %v4399_v23 = vld [vmem:[#allocation6 + $0x6a0] ss:$16 sps:$4 sm:$0xff]  }
  0x56   :  { %1810 = vmatpush2.bf16.msra.mxu0 %v4328_v43  ;;  %v4416_v24 = vld [vmem:[#allocation6 + $0x684] ss:$16 sps:$4 sm:$0xff]   ;;  %v4387_v25 = vld [vmem:[#allocation6 + $0x480] ss:$16 sps:$4 sm:$0xff]  }
  0x57   :  { %1923 = vmatpush2.bf16.msra.mxu1 %v4329_v44  ;;  %1811 = vmatprep.subr.bf16.mxu0 %v4330_v45  ;;  %v4398_v27 = vld [vmem:[#allocation6 + $0x464] ss:$16 sps:$4 sm:$0xff]   ;;  %v4414_v29 = vld [vmem:[#allocation6 + $0x680] ss:$16 sps:$4 sm:$0xff]   ;;  %v4422_v44 = vld [vmem:[#allocation3 + $0xec] ss:$28 sps:$4 sm:$0xff]  }
  0x58   :  { %1924 = vmatprep.subr.bf16.mxu1 %v4332_v46  ;;  %v4396_v30 = vld [vmem:[#allocation6 + $0x460] ss:$16 sps:$4 sm:$0xff]   ;;  %v4404_v31 = vld [vmem:[#allocation6 + $0x444] ss:$16 sps:$4 sm:$0xff]  }
  0x59   :  { %v4407_v33 = vld [vmem:[#allocation3 + $0xb4] ss:$28 sps:$4 sm:$0xff]   ;;  %v4409_v39 = vld [vmem:[#allocation3 + $0xa8] ss:$28 sps:$4 sm:$0xff]  }
  0x5a   :  { %1812 = vmatpush2.bf16.msra.mxu0 %v4334_v47  ;;  %v4431_v34 = vld [vmem:[#allocation6 + $0x664] ss:$16 sps:$4 sm:$0xff]   ;;  %v4429_v35 = vld [vmem:[#allocation6 + $0x660] ss:$16 sps:$4 sm:$0xff]  }
  0x5b   :  { %1925 = vmatpush2.bf16.msra.mxu1 %v4335_v48  ;;  %1813 = vmatprep.subr.bf16.mxu0 %v4336_v49  ;;  %v4402_v36 = vld [vmem:[#allocation6 + $0x440] ss:$16 sps:$4 sm:$0xff]   ;;  %v4446_v37 = vld [vmem:[#allocation6 + $0x644] ss:$16 sps:$4 sm:$0xff]  }
  0x5c   :  { %1926 = vmatprep.subr.bf16.mxu1 %v4338_v51  ;;  %v4413_v38 = vld [vmem:[#allocation6 + $0x424] ss:$16 sps:$4 sm:$0xff]   ;;  %v4411_v41 = vld [vmem:[#allocation6 + $0x420] ss:$16 sps:$4 sm:$0xff]  }
  0x5d   :  { %v4419_v42 = vld [vmem:[#allocation6 + $0x404] ss:$16 sps:$4 sm:$0xff]   ;;  %v4444_v45 = vld [vmem:[#allocation6 + $0x640] ss:$16 sps:$4 sm:$0xff]  }
  0x5e   :  { %1814 = vmatpush2.bf16.msra.mxu0 %v4340_v53  ;;  %v4420_v43 = vld [vmem:[#allocation3 + $0xe4] ss:$28 sps:$4 sm:$0xff]  }
  0x5f   :  { %1927 = vmatpush2.bf16.msra.mxu1 %v4341_v54  ;;  %1815 = vmatprep.subr.bf16.mxu0 %v4342_v55  ;;  %v4461_v46 = vld [vmem:[#allocation6 + $0x624] ss:$16 sps:$4 sm:$0xff]   ;;  %v4417_v47 = vld [vmem:[#allocation6 + $0x400] ss:$16 sps:$4 sm:$0xff]   ;;  %v4435_v54 = vld [vmem:[#allocation3 + $0x11c] ss:$28 sps:$4 sm:$0xff]  }
  0x60   :  { %1928 = vmatprep.subr.bf16.mxu1 %v4344_v56  ;;  %v4424_v48 = vld [vmem:[#allocation3 + $0xe0] ss:$28 sps:$4 sm:$0xff]   ;;  %v4428_v49 = vld [vmem:[#allocation6 + $0x5e4] ss:$16 sps:$4 sm:$0xff]  }
  0x61   :  { %v4425_v50 = vld [vmem:[#allocation3 + $0xe8] ss:$28 sps:$4 sm:$0xff]   ;;  %v4459_v51 = vld [vmem:[#allocation6 + $0x620] ss:$16 sps:$4 sm:$0xff]  }
  0x62   :  { %1816 = vmatpush2.bf16.msra.mxu0 %v4346_v57  ;;  %v4426_v52 = vld [vmem:[#allocation6 + $0x5e0] ss:$16 sps:$4 sm:$0xff]   ;;  %v4434_v53 = vld [vmem:[#allocation6 + $0x5c4] ss:$16 sps:$4 sm:$0xff]  }
  0x63   :  { %1929 = vmatpush2.bf16.msra.mxu1 %v4347_v58  ;;  %1817 = vmatprep.subr.bf16.mxu0 %v4348_v59  ;;  %v4437_v55 = vld [vmem:[#allocation3 + $0x124] ss:$28 sps:$4 sm:$0xff]   ;;  %v4489_v59 = vld [vmem:[#allocation6 + $0x2ec] ss:$16 sps:$4 sm:$0xff]  }
  0x64   :  { %1930 = vmatprep.subr.bf16.mxu1 %v4350_v60  ;;  %v4476_v56 = vld [vmem:[#allocation6 + $0x604] ss:$16 sps:$4 sm:$0xff]   ;;  %v4474_v57 = vld [vmem:[#allocation6 + $0x600] ss:$16 sps:$4 sm:$0xff]  }
  0x65   :  { %v4432_v58 = vld [vmem:[#allocation6 + $0x5c0] ss:$16 sps:$4 sm:$0xff]   ;;  %v4443_v60 = vld [vmem:[#allocation6 + $0x5a4] ss:$16 sps:$4 sm:$0xff]  }
  0x66   :  { %1818 = vmatpush2.bf16.msra.mxu0 %v4352_v61  ;;  %v4439_v61 = vld [vmem:[#allocation3 + $0x118] ss:$28 sps:$4 sm:$0xff]  }
  0x67   :  { %1931 = vmatpush2.bf16.msra.mxu1 %v4353_v62  ;;  %1819 = vmatprep.subr.bf16.mxu0 %v4354_v63  ;;  %v4440_v62 = vld [vmem:[#allocation3 + $0x120] ss:$28 sps:$4 sm:$0xff]  }
  0x68   :  { %1932 = vmatprep.subr.bf16.mxu1 %v4356_v0  ;;  %v4441_v63 = vld [vmem:[#allocation6 + $0x5a0] ss:$16 sps:$4 sm:$0xff]   ;;  %v4449_v0 = vld [vmem:[#allocation6 + $0x584] ss:$16 sps:$4 sm:$0xff]  }
  0x6a   :  { %1820 = vmatpush2.bf16.msra.mxu0 %v4358_v1  ;;  %v4450_v1 = vld [vmem:[#allocation3 + $0x154] ss:$28 sps:$4 sm:$0xff]  }
  0x6b   :  { %1933 = vmatpush2.bf16.msra.mxu1 %v4359_v2  ;;  %2015 = vmatprep.subr.bf16.mxu0 %v4368_v3  ;;  %v4452_v2 = vld [vmem:[#allocation3 + $0x15c] ss:$28 sps:$4 sm:$0xff]   ;;  %v4447_v3 = vld [vmem:[#allocation6 + $0x580] ss:$16 sps:$4 sm:$0xff]  }
  0x6c   :  { %2128 = vmatprep.subr.bf16.mxu1 %v4371_v4  ;;  %v5015_v4 = vld [vmem:[#allocation3 + $0x150] ss:$28 sps:$4 sm:$0xff]  }
  0x6d   :  { %1822 = vmatmul.mubr.bf16.vlgmr.msra.gmra.mxu0 %v4360_v5  ;;  %v4458_v5 = vld [vmem:[#allocation6 + $0x564] ss:$16 sps:$4 sm:$0xff]  }
  0x6e   :  { %1935 = vmatmul.mubr.bf16.vlgmr.msra.gmra.mxu1 %v4363_v6  ;;  %2016 = vmatpush1.bf16.msra.mxu0 %v4366_v7  ;;  %v5017_v6 = vld [vmem:[#allocation3 + $0x158] ss:$28 sps:$4 sm:$0xff]   ;;  %v4456_v7 = vld [vmem:[#allocation6 + $0x560] ss:$16 sps:$4 sm:$0xff]  }
  0x6f   :  { %2129 = vmatpush1.bf16.msra.mxu1 %v4369_v8  ;;  %2017 = vmatprep.subr.bf16.mxu0 %v4374_v9  ;;  %v4464_v8 = vld [vmem:[#allocation6 + $0x544] ss:$16 sps:$4 sm:$0xff]   ;;  %v5019_v9 = vld [vmem:[#allocation3 + $0x18c] ss:$28 sps:$4 sm:$0xff]  }
  0x70   :  { %1831 = vmatprep.mubr.bf16.mxu0 %v4375_v10  ;;  %1944 = vmatprep.mubr.bf16.mxu1 %v4377_v11  ;;  %v5021_v10 = vld [vmem:[#allocation3 + $0x194] ss:$28 sps:$4 sm:$0xff]  }
  0x71   :  { %2130 = vmatprep.subr.bf16.mxu1 %v4386_v12  ;;  %v4462_v11 = vld [vmem:[#allocation6 + $0x540] ss:$16 sps:$4 sm:$0xff]   ;;  %v4473_v12 = vld [vmem:[#allocation6 + $0x524] ss:$16 sps:$4 sm:$0xff]  }
  0x72   :  { %2018 = vmatpush1.bf16.msra.mxu0 %v4372_v13  ;;  %v5027_v13 = vld [vmem:[#allocation3 + $0x188] ss:$28 sps:$4 sm:$0xff]  }
  0x73   :  { %2131 = vmatpush1.bf16.msra.mxu1 %v4384_v15  ;;  %2019 = vmatprep.subr.bf16.mxu0 %v4383_v14  ;;  %v5029_v14 = vld [vmem:[#allocation3 + $0x190] ss:$28 sps:$4 sm:$0xff]  }
  0x74   :  { %2132 = vmatprep.subr.bf16.mxu1 %v4401_v16  ;;  %v4471_v15 = vld [vmem:[#allocation6 + $0x520] ss:$16 sps:$4 sm:$0xff]  }
  0x75   :  { %1832 = vmatmul.mubr.bf16.gmra.mxu0 %v4379_v17  ;;  %v5031_v16 = vld [vmem:[#allocation3 + $0x14] ss:$28 sps:$4 sm:$0xff]  }
  0x76   :  { %1945 = vmatmul.mubr.bf16.gmra.mxu1 %v4380_v18  ;;  %2020 = vmatpush1.bf16.msra.mxu0 %v4381_v19  ;;  %v4479_v17 = vld [vmem:[#allocation6 + $0x504] ss:$16 sps:$4 sm:$0xff]   ;;  %v4477_v18 = vld [vmem:[#allocation6 + $0x500] ss:$16 sps:$4 sm:$0xff]   ;;  %v4961_v19 = vmov 0  }
  0x77   :  { %1841 = vmatprep.mubr.bf16.mxu0 %v4390_v21  ;;  %2021 = vmatprep.subr.bf16.mxu0 %v4389_v20  ;;  %v4486_v20 = vld [vmem:[#allocation6 + $0xec] ss:$16 sps:$4 sm:$0xff]  }
  0x78   :  { %1954 = vmatprep.mubr.bf16.mxu1 %v4392_v22  ;;  %2133 = vmatpush1.bf16.msra.mxu1 %v4399_v23  ;;  %v5037_v21 = vld [vmem:[#allocation3 + $0x10] ss:$28 sps:$4 sm:$0xff]   ;;  %v5039_v22 = vld [vmem:[#allocation3 + $0x18] ss:$28 sps:$4 sm:$0xff]  }
  0x79   :  { %2134 = vmatprep.subr.bf16.mxu1 %v4416_v24  ;;  %v4484_v23 = vld [vmem:[#allocation6 + $0xe8] ss:$16 sps:$4 sm:$0xff]  }
  0x7a   :  { %2022 = vmatpush1.bf16.msra.mxu0 %v4387_v25  ;;  %v4487_v24 = vld [vmem:[#allocation6 + $0x2e8] ss:$16 sps:$4 sm:$0xff]   ;;  %v4492_v25 = vld [vmem:[#allocation6 + $0xcc] ss:$16 sps:$4 sm:$0xff]  }
  0x7b   :  { %2023 = vmatprep.subr.bf16.mxu0 %v4398_v27  ;;  %v5041_v27 = vld [vmem:[#allocation3 + $0x4c] ss:$28 sps:$4 sm:$0xff]  }
  0x7c   :  { %2135 = vmatpush1.bf16.msra.mxu1 %v4414_v29  ;;  %v4493_v29 = vld [vmem:[#allocation6 + $0x2c8] ss:$16 sps:$4 sm:$0xff]  }
  0x7d   :  { %1842 = vmatmul.mubr.bf16.gmra.mxu0 %v4394_v26  ;;  %2136 = vmatprep.subr.bf16.mxu1 %v4431_v34  ;;  %v4495_v26 = vld [vmem:[#allocation6 + $0x2cc] ss:$16 sps:$4 sm:$0xff]   ;;  %v4500_v34 = vld [vmem:[#allocation6 + $0xa8] ss:$16 sps:$4 sm:$0xff]  }
  0x7e   :  { %1955 = vmatmul.mubr.bf16.gmra.mxu1 %v4395_v28  ;;  %2024 = vmatpush1.bf16.msra.mxu0 %v4396_v30  ;;  %v4490_v28 = vld [vmem:[#allocation6 + $0xc8] ss:$16 sps:$4 sm:$0xff]   ;;  %v4502_v30 = vld [vmem:[#allocation6 + $0xac] ss:$16 sps:$4 sm:$0xff]  }
  0x7f   :  { %1851 = vmatprep.mubr.bf16.mxu0 %v4405_v32  ;;  %2025 = vmatprep.subr.bf16.mxu0 %v4404_v31  ;;  %v4505_v31 = vld [vmem:[#allocation6 + $0x2ac] ss:$16 sps:$4 sm:$0xff]   ;;  %v5047_v32 = vld [vmem:[#allocation3 + $0x48] ss:$28 sps:$4 sm:$0xff]  }
  0x80   :  { %1964 = vmatprep.mubr.bf16.mxu1 %v4407_v33  ;;  %2137 = vmatpush1.bf16.msra.mxu1 %v4429_v35  ;;  %v5049_v33 = vld [vmem:[#allocation3 + $0x50] ss:$28 sps:$4 sm:$0xff]   ;;  %v4503_v35 = vld [vmem:[#allocation6 + $0x2a8] ss:$16 sps:$4 sm:$0xff]  }
  0x81   :  { %2138 = vmatprep.subr.bf16.mxu1 %v4446_v37  ;;  %v4511_v37 = vld [vmem:[#allocation6 + $0x28c] ss:$16 sps:$4 sm:$0xff]  }
  0x82   :  { %2026 = vmatpush1.bf16.msra.mxu0 %v4402_v36  ;;  %v4508_v36 = vld [vmem:[#allocation6 + $0x8c] ss:$16 sps:$4 sm:$0xff]  }
  0x83   :  { %2027 = vmatprep.subr.bf16.mxu0 %v4413_v38  ;;  %v5051_v38 = vld [vmem:[#allocation3 + $0x84] ss:$28 sps:$4 sm:$0xff]  }
  0x84   :  { %2139 = vmatpush1.bf16.msra.mxu1 %v4444_v45  ;;  %v4516_v45 = vld [vmem:[#allocation6 + $0x68] ss:$16 sps:$4 sm:$0xff]  }
  0x85   :  { %1852 = vmatmul.mubr.bf16.gmra.mxu0 %v4409_v39  ;;  %2140 = vmatprep.subr.bf16.mxu1 %v4461_v46  ;;  %v4506_v39 = vld [vmem:[#allocation6 + $0x88] ss:$16 sps:$4 sm:$0xff]  }
  0x86   :  { %1965 = vmatmul.mubr.bf16.gmra.mxu1 %v4410_v40  ;;  %2028 = vmatpush1.bf16.msra.mxu0 %v4411_v41  ;;  %v4509_v40 = vld [vmem:[#allocation6 + $0x288] ss:$16 sps:$4 sm:$0xff]   ;;  %v5055_v41 = vld [vmem:[#allocation3 + $0x80] ss:$28 sps:$4 sm:$0xff]  }
  0x87   :  { %1861 = vmatprep.mubr.bf16.mxu0 %v4420_v43  ;;  %2029 = vmatprep.subr.bf16.mxu0 %v4419_v42  ;;  %v4518_v42 = vld [vmem:[#allocation6 + $0x6c] ss:$16 sps:$4 sm:$0xff]   ;;  %v4519_v46 = vld [vmem:[#allocation6 + $0x268] ss:$16 sps:$4 sm:$0xff]  }
  0x88   :  { %1974 = vmatprep.mubr.bf16.mxu1 %v4422_v44  ;;  %2141 = vmatpush1.bf16.msra.mxu1 %v4459_v51  ;;  %v4521_v43 = vld [vmem:[#allocation6 + $0x26c] ss:$16 sps:$4 sm:$0xff]   ;;  %v5059_v44 = vld [vmem:[#allocation3 + $0x88] ss:$28 sps:$4 sm:$0xff]  }
  0x89   :  { %2142 = vmatprep.subr.bf16.mxu1 %v4476_v56  ;;  %v4525_v51 = vld [vmem:[#allocation6 + $0x248] ss:$16 sps:$4 sm:$0xff]  }
  0x8a   :  { %2030 = vmatpush1.bf16.msra.mxu0 %v4417_v47  ;;  %v4524_v47 = vld [vmem:[#allocation6 + $0x4c] ss:$16 sps:$4 sm:$0xff]   ;;  %v4532_v56 = vld [vmem:[#allocation6 + $0x28] ss:$16 sps:$4 sm:$0xff]  }
  0x8b   :  { %2031 = vmatprep.subr.bf16.mxu0 %v4428_v49  ;;  %v5061_v49 = vld [vmem:[#allocation3 + $0xbc] ss:$28 sps:$4 sm:$0xff]  }
  0x8c   :  { %2143 = vmatpush1.bf16.msra.mxu1 %v4474_v57  ;;  %v4535_v57 = vld [vmem:[#allocation6 + $0x228] ss:$16 sps:$4 sm:$0xff]  }
  0x8d   :  { %1862 = vmatmul.mubr.bf16.gmra.mxu0 %v4424_v48  ;;  %2354 = vmatprep.subr.bf16.mxu1 %v4489_v59  ;;  %v4527_v48 = vld [vmem:[#allocation6 + $0x24c] ss:$16 sps:$4 sm:$0xff]  }
  0x8e   :  { %1975 = vmatmul.mubr.bf16.gmra.mxu1 %v4425_v50  ;;  %2032 = vmatpush2.bf16.msra.mxu0 %v4426_v52  ;;  %v4522_v50 = vld [vmem:[#allocation6 + $0x48] ss:$16 sps:$4 sm:$0xff]   ;;  %v4543_v59 = vld [vmem:[#allocation6 + $0x20c] ss:$16 sps:$4 sm:$0xff]  }
  0x8f   :  { %1871 = vmatprep.mubr.bf16.mxu0 %v4435_v54  ;;  %2033 = vmatprep.subr.bf16.mxu0 %v4434_v53  ;;  %v5065_v52 = vld [vmem:[#allocation3 + $0xb8] ss:$28 sps:$4 sm:$0xff]   ;;  %v4534_v53 = vld [vmem:[#allocation6 + $0x2c] ss:$16 sps:$4 sm:$0xff]  }
  0x90   :  { %1984 = vmatprep.mubr.bf16.mxu1 %v4437_v55  ;;  %v4537_v54 = vld [vmem:[#allocation6 + $0x22c] ss:$16 sps:$4 sm:$0xff]  }
  0x91   :  { %v5069_v55 = vld [vmem:[#allocation3 + $0xc0] ss:$28 sps:$4 sm:$0xff]  }
  0x92   :  { %2034 = vmatpush2.bf16.msra.mxu0 %v4432_v58  ;;  %v4540_v58 = vld [vmem:[#allocation6 + $0xc] ss:$16 sps:$4 sm:$0xff]  }
  0x93   :  { %2035 = vmatprep.subr.bf16.mxu0 %v4443_v60  ;;  %v5071_v60 = vld [vmem:[#allocation3 + $0xf4] ss:$28 sps:$4 sm:$0xff]  }
  0x95   :  { %1872 = vmatmul.mubr.bf16.gmra.mxu0 %v4439_v61  ;;  %v4538_v61 = vld [vmem:[#allocation6 + $0x8] ss:$16 sps:$4 sm:$0xff]  }
  0x96   :  { %1985 = vmatmul.mubr.bf16.gmra.mxu1 %v4440_v62  ;;  %2036 = vmatpush2.bf16.msra.mxu0 %v4441_v63  ;;  %v4541_v62 = vld [vmem:[#allocation6 + $0x208] ss:$16 sps:$4 sm:$0xff]   ;;  %v4550_v63 = vld [vmem:[#allocation6 + $0x1ec] ss:$16 sps:$4 sm:$0xff]  }
  0x97   :  { %1881 = vmatprep.mubr.bf16.mxu0 %v4450_v1  ;;  %2037 = vmatprep.subr.bf16.mxu0 %v4449_v0  ;;  %v4553_v0 = vld [vmem:[#allocation6 + $0x3ec] ss:$16 sps:$4 sm:$0xff]  }
  0x98   :  { %1994 = vmatprep.mubr.bf16.mxu1 %v4452_v2  ;;  %v5077_v1 = vld [vmem:[#allocation3 + $0xf0] ss:$28 sps:$4 sm:$0xff]   ;;  %v5079_v2 = vld [vmem:[#allocation3 + $0xf8] ss:$28 sps:$4 sm:$0xff]  }
  0x9a   :  { %2038 = vmatpush2.bf16.msra.mxu0 %v4447_v3  ;;  %v4548_v3 = vld [vmem:[#allocation6 + $0x1e8] ss:$16 sps:$4 sm:$0xff]  }
  0x9b   :  { %2039 = vmatprep.subr.bf16.mxu0 %v4458_v5  ;;  %v4551_v5 = vld [vmem:[#allocation6 + $0x3e8] ss:$16 sps:$4 sm:$0xff]  }
  0x9d   :  { %1882 = vmatmul.mubr.bf16.gmra.mxu0 %v5015_v4 }
  0x9e   :  { %1995 = vmatmul.mubr.bf16.gmra.mxu1 %v5017_v6  ;;  %2040 = vmatpush2.bf16.msra.mxu0 %v4456_v7  ;;  %v4556_v7 = vld [vmem:[#allocation6 + $0x1cc] ss:$16 sps:$4 sm:$0xff]  }
  0x9f   :  { %1891 = vmatprep.mubr.bf16.mxu0 %v5019_v9  ;;  %2041 = vmatprep.subr.bf16.mxu0 %v4464_v8  ;;  %v4559_v8 = vld [vmem:[#allocation6 + $0x3cc] ss:$16 sps:$4 sm:$0xff]  }
  0xa0   :  { %2004 = vmatprep.mubr.bf16.mxu1 %v5021_v10 }
  0xa2   :  { %2042 = vmatpush2.bf16.msra.mxu0 %v4462_v11  ;;  %v5081_v11 = vld [vmem:[#allocation3 + $0x12c] ss:$28 sps:$4 sm:$0xff]  }
  0xa3   :  { %2043 = vmatprep.subr.bf16.mxu0 %v4473_v12  ;;  %v4554_v12 = vld [vmem:[#allocation6 + $0x1c8] ss:$16 sps:$4 sm:$0xff]  }
  0xa5   :  { %1892 = vmatmul.mubr.bf16.gmra.mxu0 %v5027_v13 }
  0xa6   :  { %2005 = vmatmul.mubr.bf16.gmra.mxu1 %v5029_v14  ;;  %2044 = vmatpush2.bf16.msra.mxu0 %v4471_v15  ;;  %v4557_v15 = vld [vmem:[#allocation6 + $0x3c8] ss:$16 sps:$4 sm:$0xff]  }
  0xa7   :  { %2047 = vmatprep.mubr.bf16.mxu0 %v5031_v16  ;;  %2045 = vmatprep.subr.bf16.mxu0 %v4479_v17  ;;  %v4566_v17 = vld [vmem:[#allocation6 + $0x1ac] ss:$16 sps:$4 sm:$0xff]  }
  0xa8   :  { %2160 = vmatprep.mubr.bf16.mxu1 %v4961_v19 }
  0xaa   :  { %2046 = vmatpush2.bf16.msra.mxu0 %v4477_v18  ;;  %v4569_v18 = vld [vmem:[#allocation6 + $0x3ac] ss:$16 sps:$4 sm:$0xff]  }
  0xab   :  { %2241 = vmatprep.subr.bf16.mxu0 %v4486_v20  ;;  %v5087_v20 = vld [vmem:[#allocation3 + $0x128] ss:$28 sps:$4 sm:$0xff]  }
  0xad   :  { %2048 = vmatmul.mubr.bf16.vlgmr.msra.gmra.mxu0 %v5037_v21 }
  0xae   :  { %2161 = vmatmul.mubr.bf16.vlgmr.msra.gmra.mxu1 %v5039_v22  ;;  %2242 = vmatpush1.bf16.msra.mxu0 %v4484_v23  ;;  %v5089_v23 = vld [vmem:[#allocation3 + $0x130] ss:$28 sps:$4 sm:$0xff]  }
  0xaf   :  { %2355 = vmatpush1.bf16.msra.mxu1 %v4487_v24  ;;  %2243 = vmatprep.subr.bf16.mxu0 %v4492_v25  ;;  %v4564_v24 = vld [vmem:[#allocation6 + $0x1a8] ss:$16 sps:$4 sm:$0xff]  }
  0xb0   :  { %2356 = vmatprep.subr.bf16.mxu1 %v4495_v26  ;;  %2057 = vmatprep.mubr.bf16.mxu0 %v5041_v27  ;;  %v4567_v25 = vld [vmem:[#allocation6 + $0x3a8] ss:$16 sps:$4 sm:$0xff]   ;;  %v4572_v26 = vld [vmem:[#allocation6 + $0x18c] ss:$16 sps:$4 sm:$0xff]  }
  0xb1   :  { %2170 = vmatprep.mubr.bf16.mxu1 %v4961_v19 }
  0xb2   :  { %2244 = vmatpush1.bf16.msra.mxu0 %v4490_v28  ;;  %v4575_v28 = vld [vmem:[#allocation6 + $0x38c] ss:$16 sps:$4 sm:$0xff]  }
  0xb3   :  { %2357 = vmatpush1.bf16.msra.mxu1 %v4493_v29  ;;  %2245 = vmatprep.subr.bf16.mxu0 %v4502_v30  ;;  %v5091_v29 = vld [vmem:[#allocation3 + $0x164] ss:$28 sps:$4 sm:$0xff]   ;;  %v4570_v30 = vld [vmem:[#allocation6 + $0x188] ss:$16 sps:$4 sm:$0xff]  }
  0xb4   :  { %2358 = vmatprep.subr.bf16.mxu1 %v4505_v31  ;;  %v4573_v31 = vld [vmem:[#allocation6 + $0x388] ss:$16 sps:$4 sm:$0xff]  }
  0xb5   :  { %2058 = vmatmul.mubr.bf16.gmra.mxu0 %v5047_v32 }
  0xb6   :  { %2171 = vmatmul.mubr.bf16.gmra.mxu1 %v5049_v33  ;;  %2246 = vmatpush1.bf16.msra.mxu0 %v4500_v34  ;;  %v4582_v34 = vld [vmem:[#allocation6 + $0x16c] ss:$16 sps:$4 sm:$0xff]  }
  0xb7   :  { %2359 = vmatpush1.bf16.msra.mxu1 %v4503_v35  ;;  %2247 = vmatprep.subr.bf16.mxu0 %v4508_v36  ;;  %v4585_v35 = vld [vmem:[#allocation6 + $0x36c] ss:$16 sps:$4 sm:$0xff]  }
  0xb8   :  { %2360 = vmatprep.subr.bf16.mxu1 %v4511_v37  ;;  %2067 = vmatprep.mubr.bf16.mxu0 %v5051_v38  ;;  %v5097_v36 = vld [vmem:[#allocation3 + $0x160] ss:$28 sps:$4 sm:$0xff]   ;;  %v5099_v37 = vld [vmem:[#allocation3 + $0x168] ss:$28 sps:$4 sm:$0xff]  }
  0xb9   :  { %2180 = vmatprep.mubr.bf16.mxu1 %v4961_v19 }
  0xba   :  { %2248 = vmatpush1.bf16.msra.mxu0 %v4506_v39  ;;  %v4580_v39 = vld [vmem:[#allocation6 + $0x168] ss:$16 sps:$4 sm:$0xff]  }
  0xbb   :  { %2361 = vmatpush1.bf16.msra.mxu1 %v4509_v40  ;;  %2249 = vmatprep.subr.bf16.mxu0 %v4518_v42  ;;  %v4583_v40 = vld [vmem:[#allocation6 + $0x368] ss:$16 sps:$4 sm:$0xff]   ;;  %v4588_v42 = vld [vmem:[#allocation6 + $0x14c] ss:$16 sps:$4 sm:$0xff]  }
  0xbc   :  { %2362 = vmatprep.subr.bf16.mxu1 %v4521_v43  ;;  %v4591_v43 = vld [vmem:[#allocation6 + $0x34c] ss:$16 sps:$4 sm:$0xff]  }
  0xbd   :  { %2068 = vmatmul.mubr.bf16.gmra.mxu0 %v5055_v41 }
  0xbe   :  { %2181 = vmatmul.mubr.bf16.gmra.mxu1 %v5059_v44  ;;  %2250 = vmatpush1.bf16.msra.mxu0 %v4516_v45  ;;  %v5101_v45 = vld [vmem:[#allocation3 + $0x19c] ss:$28 sps:$4 sm:$0xff]  }
  0xbf   :  { %2363 = vmatpush1.bf16.msra.mxu1 %v4519_v46  ;;  %2251 = vmatprep.subr.bf16.mxu0 %v4524_v47  ;;  %v4586_v46 = vld [vmem:[#allocation6 + $0x148] ss:$16 sps:$4 sm:$0xff]  }
  0xc0   :  { %2364 = vmatprep.subr.bf16.mxu1 %v4527_v48  ;;  %2077 = vmatprep.mubr.bf16.mxu0 %v5061_v49  ;;  %v4589_v47 = vld [vmem:[#allocation6 + $0x348] ss:$16 sps:$4 sm:$0xff]   ;;  %v4598_v48 = vld [vmem:[#allocation6 + $0x12c] ss:$16 sps:$4 sm:$0xff]  }
  0xc1   :  { %2190 = vmatprep.mubr.bf16.mxu1 %v4961_v19 }
  0xc2   :  { %2252 = vmatpush1.bf16.msra.mxu0 %v4522_v50  ;;  %v4601_v50 = vld [vmem:[#allocation6 + $0x32c] ss:$16 sps:$4 sm:$0xff]  }
  0xc3   :  { %2365 = vmatpush1.bf16.msra.mxu1 %v4525_v51  ;;  %2253 = vmatprep.subr.bf16.mxu0 %v4534_v53  ;;  %v5107_v51 = vld [vmem:[#allocation3 + $0x198] ss:$28 sps:$4 sm:$0xff]   ;;  %v5109_v53 = vld [vmem:[#allocation3 + $0x1a0] ss:$28 sps:$4 sm:$0xff]  }
  0xc4   :  { %2366 = vmatprep.subr.bf16.mxu1 %v4537_v54  ;;  %v4596_v54 = vld [vmem:[#allocation6 + $0x128] ss:$16 sps:$4 sm:$0xff]  }
  0xc5   :  { %2078 = vmatmul.mubr.bf16.gmra.mxu0 %v5065_v52 }
  0xc6   :  { %2191 = vmatmul.mubr.bf16.gmra.mxu1 %v5069_v55  ;;  %2254 = vmatpush1.bf16.msra.mxu0 %v4532_v56  ;;  %v4599_v56 = vld [vmem:[#allocation6 + $0x328] ss:$16 sps:$4 sm:$0xff]  }
  0xc7   :  { %2367 = vmatpush1.bf16.msra.mxu1 %v4535_v57  ;;  %2255 = vmatprep.subr.bf16.mxu0 %v4540_v58  ;;  %v4604_v57 = vld [vmem:[#allocation6 + $0x10c] ss:$16 sps:$4 sm:$0xff]  }
  0xc8   :  { %2368 = vmatprep.subr.bf16.mxu1 %v4543_v59  ;;  %2087 = vmatprep.mubr.bf16.mxu0 %v5071_v60  ;;  %v4607_v58 = vld [vmem:[#allocation6 + $0x30c] ss:$16 sps:$4 sm:$0xff]   ;;  %v4602_v59 = vld [vmem:[#allocation6 + $0x108] ss:$16 sps:$4 sm:$0xff]  }
  0xc9   :  { %2200 = vmatprep.mubr.bf16.mxu1 %v4961_v19 }
  0xca   :  { %2256 = vmatpush1.bf16.msra.mxu0 %v4538_v61  ;;  %v4605_v61 = vld [vmem:[#allocation6 + $0x308] ss:$16 sps:$4 sm:$0xff]  }
  0xcb   :  { %2369 = vmatpush1.bf16.msra.mxu1 %v4541_v62  ;;  %2257 = vmatprep.subr.bf16.mxu0 %v4550_v63  ;;  %v4610_v62 = vld [vmem:[#allocation6 + $0x4ec] ss:$16 sps:$4 sm:$0xff]  }
  0xcc   :  { %2370 = vmatprep.subr.bf16.mxu1 %v4553_v0  ;;  %v4613_v63 = vld [vmem:[#allocation6 + $0x6ec] ss:$16 sps:$4 sm:$0xff]   ;;  %v4840_v0 = vld [vmem:[#allocation3 + $0x4] ss:$28 sps:$4 sm:$0xff]  }
  0xcd   :  { %2088 = vmatmul.mubr.bf16.gmra.mxu0 %v5077_v1 }
  0xce   :  { %2201 = vmatmul.mubr.bf16.gmra.mxu1 %v5079_v2  ;;  %2258 = vmatpush2.bf16.msra.mxu0 %v4548_v3  ;;  %v4841_v3 = vld [vmem:[#allocation3 + $0xc] ss:$28 sps:$4 sm:$0xff]  }
  0xcf   :  { %2371 = vmatpush2.bf16.msra.mxu1 %v4551_v5  ;;  %2259 = vmatprep.subr.bf16.mxu0 %v4556_v7  ;;  %v4608_v5 = vld [vmem:[#allocation6 + $0x4e8] ss:$16 sps:$4 sm:$0xff]  }
  0xd0   :  { %2372 = vmatprep.subr.bf16.mxu1 %v4559_v8  ;;  %2097 = vmatprep.mubr.bf16.mxu0 %v5081_v11  ;;  %v4611_v7 = vld [vmem:[#allocation6 + $0x6e8] ss:$16 sps:$4 sm:$0xff]   ;;  %v4616_v8 = vld [vmem:[#allocation6 + $0x4cc] ss:$16 sps:$4 sm:$0xff]  }
  0xd1   :  { %2210 = vmatprep.mubr.bf16.mxu1 %v4961_v19 }
  0xd2   :  { %2260 = vmatpush2.bf16.msra.mxu0 %v4554_v12  ;;  %v4622_v12 = vld [vmem:[#allocation6 + $0x6cc] ss:$16 sps:$4 sm:$0xff]  }
  0xd3   :  { %2373 = vmatpush2.bf16.msra.mxu1 %v4557_v15  ;;  %2261 = vmatprep.subr.bf16.mxu0 %v4566_v17  ;;  %v4842_v15 = vld [vmem:[#allocation3] ss:$28 sps:$4 sm:$0xff]   ;;  %v4843_v17 = vld [vmem:[#allocation3 + $0x8] ss:$28 sps:$4 sm:$0xff]  }
  0xd4   :  { %2374 = vmatprep.subr.bf16.mxu1 %v4569_v18  ;;  %v4614_v18 = vld [vmem:[#allocation6 + $0x4c8] ss:$16 sps:$4 sm:$0xff]  }
  0xd5   :  { %2098 = vmatmul.mubr.bf16.gmra.mxu0 %v5087_v20 }
  0xd6   :  { %2211 = vmatmul.mubr.bf16.gmra.mxu1 %v5089_v23  ;;  %2262 = vmatpush2.bf16.msra.mxu0 %v4564_v24  ;;  %v4620_v24 = vld [vmem:[#allocation6 + $0x6c8] ss:$16 sps:$4 sm:$0xff]  }
  0xd7   :  { %2375 = vmatpush2.bf16.msra.mxu1 %v4567_v25  ;;  %2263 = vmatprep.subr.bf16.mxu0 %v4572_v26  ;;  %v4844_v25 = vld [vmem:[#allocation3 + $0x3c] ss:$28 sps:$4 sm:$0xff]  }
  0xd8   :  { %2376 = vmatprep.subr.bf16.mxu1 %v4575_v28  ;;  %2107 = vmatprep.mubr.bf16.mxu0 %v5091_v29  ;;  %v4619_v26 = vld [vmem:[#allocation6 + $0x4ac] ss:$16 sps:$4 sm:$0xff]  }
  0xd9   :  { %2220 = vmatprep.mubr.bf16.mxu1 %v4961_v19  ;;  %v4631_v28 = vld [vmem:[#allocation6 + $0x6ac] ss:$16 sps:$4 sm:$0xff]  }
  0xda   :  { %2264 = vmatpush2.bf16.msra.mxu0 %v4570_v30  ;;  %v4845_v30 = vld [vmem:[#allocation3 + $0x44] ss:$28 sps:$4 sm:$0xff]  }
  0xdb   :  { %2377 = vmatpush2.bf16.msra.mxu1 %v4573_v31  ;;  %2265 = vmatprep.subr.bf16.mxu0 %v4582_v34  ;;  %v4617_v31 = vld [vmem:[#allocation6 + $0x4a8] ss:$16 sps:$4 sm:$0xff]   ;;  %v4625_v34 = vld [vmem:[#allocation6 + $0x48c] ss:$16 sps:$4 sm:$0xff]  }
  0xdc   :  { %2378 = vmatprep.subr.bf16.mxu1 %v4585_v35  ;;  %v4629_v35 = vld [vmem:[#allocation6 + $0x6a8] ss:$16 sps:$4 sm:$0xff]  }
  0xdd   :  { %2108 = vmatmul.mubr.bf16.gmra.mxu0 %v5097_v36 }
  0xde   :  { %2221 = vmatmul.mubr.bf16.gmra.mxu1 %v5099_v37  ;;  %2266 = vmatpush2.bf16.msra.mxu0 %v4580_v39  ;;  %v4846_v39 = vld [vmem:[#allocation3 + $0x38] ss:$28 sps:$4 sm:$0xff]  }
  0xdf   :  { %2379 = vmatpush2.bf16.msra.mxu1 %v4583_v40  ;;  %2267 = vmatprep.subr.bf16.mxu0 %v4588_v42  ;;  %v4847_v40 = vld [vmem:[#allocation3 + $0x40] ss:$28 sps:$4 sm:$0xff]  }
  0xe0   :  { %2380 = vmatprep.subr.bf16.mxu1 %v4591_v43  ;;  %2117 = vmatprep.mubr.bf16.mxu0 %v5101_v45  ;;  %v4640_v42 = vld [vmem:[#allocation6 + $0x68c] ss:$16 sps:$4 sm:$0xff]   ;;  %v4623_v43 = vld [vmem:[#allocation6 + $0x488] ss:$16 sps:$4 sm:$0xff]  }
  0xe1   :  { %2230 = vmatprep.mubr.bf16.mxu1 %v4961_v19 }
  0xe2   :  { %2268 = vmatpush2.bf16.msra.mxu0 %v4586_v46  ;;  %v4848_v46 = vld [vmem:[#allocation3 + $0x74] ss:$28 sps:$4 sm:$0xff]  }
  0xe3   :  { %2381 = vmatpush2.bf16.msra.mxu1 %v4589_v47  ;;  %2269 = vmatprep.subr.bf16.mxu0 %v4598_v48  ;;  %v4849_v47 = vld [vmem:[#allocation3 + $0x7c] ss:$28 sps:$4 sm:$0xff]  }
  0xe4   :  { %2382 = vmatprep.subr.bf16.mxu1 %v4601_v50  ;;  %v4628_v48 = vld [vmem:[#allocation6 + $0x46c] ss:$16 sps:$4 sm:$0xff]   ;;  %v4638_v50 = vld [vmem:[#allocation6 + $0x688] ss:$16 sps:$4 sm:$0xff]  }
  0xe5   :  { %2118 = vmatmul.mubr.bf16.gmra.mxu0 %v5107_v51 }
  0xe6   :  { %2231 = vmatmul.mubr.bf16.gmra.mxu1 %v5109_v53  ;;  %2270 = vmatpush2.bf16.msra.mxu0 %v4596_v54  ;;  %v4626_v54 = vld [vmem:[#allocation6 + $0x468] ss:$16 sps:$4 sm:$0xff]  }
  0xe7   :  { %2383 = vmatpush2.bf16.msra.mxu1 %v4599_v56  ;;  %2271 = vmatprep.subr.bf16.mxu0 %v4604_v57  ;;  %v4634_v56 = vld [vmem:[#allocation6 + $0x44c] ss:$16 sps:$4 sm:$0xff]   ;;  %v4647_v57 = vld [vmem:[#allocation6 + $0x668] ss:$16 sps:$4 sm:$0xff]  }
  0xe8   :  { %2384 = vmatprep.subr.bf16.mxu1 %v4607_v58  ;;  %2273 = vmatprep.mubr.bf16.mxu0 %v4840_v0  ;;  %v4632_v58 = vld [vmem:[#allocation6 + $0x448] ss:$16 sps:$4 sm:$0xff]   ;;  %v4637_v0 = vld [vmem:[#allocation6 + $0x42c] ss:$16 sps:$4 sm:$0xff]  }
  0xe9   :  { %2386 = vmatprep.mubr.bf16.mxu1 %v4841_v3  ;;  %v4852_v3 = vld [vmem:[#allocation3 + $0xac] ss:$28 sps:$4 sm:$0xff]  }
  0xea   :  { %2272 = vmatpush2.bf16.msra.mxu0 %v4602_v59  ;;  %v4649_v59 = vld [vmem:[#allocation6 + $0x66c] ss:$16 sps:$4 sm:$0xff]  }
  0xeb   :  { %2385 = vmatpush2.bf16.msra.mxu1 %v4605_v61  ;;  %2467 = vmatprep.subr.bf16.mxu0 %v4610_v62  ;;  %v4658_v61 = vld [vmem:[#allocation6 + $0x64c] ss:$16 sps:$4 sm:$0xff]  }
  0xec   :  { %2580 = vmatprep.subr.bf16.mxu1 %v4613_v63  ;;  %v4850_v62 = vld [vmem:[#allocation3 + $0x70] ss:$28 sps:$4 sm:$0xff]   ;;  %v4851_v63 = vld [vmem:[#allocation3 + $0x78] ss:$28 sps:$4 sm:$0xff]  }
  0xed   :  { %2274 = vmatmul.mubr.bf16.vlgmr.msra.gmra.mxu0 %v4842_v15  ;;  %v4667_v15 = vld [vmem:[#allocation6 + $0x62c] ss:$16 sps:$4 sm:$0xff]  }
  0xee   :  { %2387 = vmatmul.mubr.bf16.vlgmr.msra.gmra.mxu1 %v4843_v17  ;;  %2468 = vmatpush1.bf16.msra.mxu0 %v4608_v5  ;;  %v4853_v5 = vld [vmem:[#allocation3 + $0xb4] ss:$28 sps:$4 sm:$0xff]   ;;  %v4641_v17 = vld [vmem:[#allocation6 + $0x408] ss:$16 sps:$4 sm:$0xff]  }
  0xef   :  { %2581 = vmatpush1.bf16.msra.mxu1 %v4611_v7  ;;  %2469 = vmatprep.subr.bf16.mxu0 %v4616_v8  ;;  %v4635_v7 = vld [vmem:[#allocation6 + $0x428] ss:$16 sps:$4 sm:$0xff]   ;;  %v4643_v8 = vld [vmem:[#allocation6 + $0x40c] ss:$16 sps:$4 sm:$0xff]  }
  0xf0   :  { %2283 = vmatprep.mubr.bf16.mxu0 %v4844_v25  ;;  %2396 = vmatprep.mubr.bf16.mxu1 %v4845_v30  ;;  %v4856_v25 = vld [vmem:[#allocation3 + $0xe4] ss:$28 sps:$4 sm:$0xff]   ;;  %v4665_v30 = vld [vmem:[#allocation6 + $0x628] ss:$16 sps:$4 sm:$0xff]  }
  0xf1   :  { %2582 = vmatprep.subr.bf16.mxu1 %v4622_v12  ;;  %v4656_v12 = vld [vmem:[#allocation6 + $0x648] ss:$16 sps:$4 sm:$0xff]  }
  0xf2   :  { %2470 = vmatpush1.bf16.msra.mxu0 %v4614_v18  ;;  %v4854_v18 = vld [vmem:[#allocation3 + $0xa8] ss:$28 sps:$4 sm:$0xff]  }
  0xf3   :  { %2583 = vmatpush1.bf16.msra.mxu1 %v4620_v24  ;;  %2471 = vmatprep.subr.bf16.mxu0 %v4619_v26  ;;  %v4855_v24 = vld [vmem:[#allocation3 + $0xb0] ss:$28 sps:$4 sm:$0xff]  }
  0xf4   :  { %2584 = vmatprep.subr.bf16.mxu1 %v4631_v28  ;;  %v4857_v26 = vld [vmem:[#allocation3 + $0xec] ss:$28 sps:$4 sm:$0xff]  }
  0xf5   :  { %2284 = vmatmul.mubr.bf16.gmra.mxu0 %v4846_v39  ;;  %v4646_v28 = vld [vmem:[#allocation6 + $0x5ec] ss:$16 sps:$4 sm:$0xff]  }
  0xf6   :  { %2397 = vmatmul.mubr.bf16.gmra.mxu1 %v4847_v40  ;;  %2472 = vmatpush1.bf16.msra.mxu0 %v4617_v31  ;;  %v4644_v31 = vld [vmem:[#allocation6 + $0x5e8] ss:$16 sps:$4 sm:$0xff]   ;;  %v4858_v39 = vld [vmem:[#allocation3 + $0xe0] ss:$28 sps:$4 sm:$0xff]  }
  0xf7   :  { %2293 = vmatprep.mubr.bf16.mxu0 %v4848_v46  ;;  %2473 = vmatprep.subr.bf16.mxu0 %v4625_v34  ;;  %v4652_v34 = vld [vmem:[#allocation6 + $0x5cc] ss:$16 sps:$4 sm:$0xff]   ;;  %v4859_v40 = vld [vmem:[#allocation3 + $0xe8] ss:$28 sps:$4 sm:$0xff]  }
  0xf8   :  { %2406 = vmatprep.mubr.bf16.mxu1 %v4849_v47  ;;  %2585 = vmatpush1.bf16.msra.mxu1 %v4629_v35  ;;  %v4676_v35 = vld [vmem:[#allocation6 + $0x60c] ss:$16 sps:$4 sm:$0xff]   ;;  %v4861_v47 = vld [vmem:[#allocation3 + $0x124] ss:$28 sps:$4 sm:$0xff]  }
  0xf9   :  { %2586 = vmatprep.subr.bf16.mxu1 %v4640_v42  ;;  %v4674_v42 = vld [vmem:[#allocation6 + $0x608] ss:$16 sps:$4 sm:$0xff]  }
  0xfa   :  { %2474 = vmatpush1.bf16.msra.mxu0 %v4623_v43  ;;  %v4650_v43 = vld [vmem:[#allocation6 + $0x5c8] ss:$16 sps:$4 sm:$0xff]  }
  0xfb   :  { %2475 = vmatprep.subr.bf16.mxu0 %v4628_v48  ;;  %v4860_v46 = vld [vmem:[#allocation3 + $0x11c] ss:$28 sps:$4 sm:$0xff]  }
  0xfc   :  { %2587 = vmatpush1.bf16.msra.mxu1 %v4638_v50  ;;  %v4655_v48 = vld [vmem:[#allocation6 + $0x5ac] ss:$16 sps:$4 sm:$0xff]   ;;  %v4653_v50 = vld [vmem:[#allocation6 + $0x5a8] ss:$16 sps:$4 sm:$0xff]  }
  0xfd   :  { %2294 = vmatmul.mubr.bf16.gmra.mxu0 %v4850_v62  ;;  %2588 = vmatprep.subr.bf16.mxu1 %v4649_v59  ;;  %v4864_v59 = vld [vmem:[#allocation3 + $0x154] ss:$28 sps:$4 sm:$0xff]   ;;  %v4664_v62 = vld [vmem:[#allocation6 + $0x56c] ss:$16 sps:$4 sm:$0xff]  }
  0xfe   :  { %2407 = vmatmul.mubr.bf16.gmra.mxu1 %v4851_v63  ;;  %2476 = vmatpush1.bf16.msra.mxu0 %v4626_v54  ;;  %v4661_v54 = vld [vmem:[#allocation6 + $0x58c] ss:$16 sps:$4 sm:$0xff]   ;;  %v4662_v63 = vld [vmem:[#allocation6 + $0x568] ss:$16 sps:$4 sm:$0xff]  }
  0xff   :  { %2303 = vmatprep.mubr.bf16.mxu0 %v4852_v3  ;;  %2477 = vmatprep.subr.bf16.mxu0 %v4634_v56  ;;  %v4862_v56 = vld [vmem:[#allocation3 + $0x118] ss:$28 sps:$4 sm:$0xff]  }
 0x100   :  { %2416 = vmatprep.mubr.bf16.mxu1 %v4853_v5  ;;  %2589 = vmatpush1.bf16.msra.mxu1 %v4647_v57  ;;  %v4863_v57 = vld [vmem:[#allocation3 + $0x120] ss:$28 sps:$4 sm:$0xff]   ;;  %v4668_v3 = vld [vmem:[#allocation6 + $0x548] ss:$16 sps:$4 sm:$0xff]   ;;  %v5693_v5 = vlaneseq }
 0x101   :  { %2590 = vmatprep.subr.bf16.mxu1 %v4658_v61  ;;  %v4865_v61 = vld [vmem:[#allocation3 + $0x15c] ss:$28 sps:$4 sm:$0xff]  }
 0x102   :  { %2478 = vmatpush1.bf16.msra.mxu0 %v4632_v58  ;;  %v4659_v58 = vld [vmem:[#allocation6 + $0x588] ss:$16 sps:$4 sm:$0xff]  }
 0x103   :  { %2479 = vmatprep.subr.bf16.mxu0 %v4637_v0  ;;  %v4670_v0 = vld [vmem:[#allocation6 + $0x54c] ss:$16 sps:$4 sm:$0xff]  }
 0x104   :  { %2591 = vmatpush1.bf16.msra.mxu1 %v4656_v12  ;;  %v5118_v12 = vshrl.u32 %v5693_v5, 7 }
 0x105   :  { %2304 = vmatmul.mubr.bf16.gmra.mxu0 %v4854_v18  ;;  %2592 = vmatprep.subr.bf16.mxu1 %v4667_v15  ;;  %v4679_v15 = vld [vmem:[#allocation6 + $0x50c] ss:$16 sps:$4 sm:$0xff]  }
 0x106   :  { %2417 = vmatmul.mubr.bf16.gmra.mxu1 %v4855_v24  ;;  %2480 = vmatpush1.bf16.msra.mxu0 %v4635_v7  ;;  %v4673_v7 = vld [vmem:[#allocation6 + $0x52c] ss:$16 sps:$4 sm:$0xff]   ;;  %5702 = vst [vmem:[#allocation13_spill] sm:$0xff] %v5118_v12 }
 0x107   :  { %2313 = vmatprep.mubr.bf16.mxu0 %v4856_v25  ;;  %2481 = vmatprep.subr.bf16.mxu0 %v4643_v8  ;;  %v4671_v8 = vld [vmem:[#allocation6 + $0x528] ss:$16 sps:$4 sm:$0xff]   ;;  %v4685_v18 = vld [vmem:[#allocation8 + $0x64] ss:$8 sps:$4 sm:$0xff]  }
 0x108   :  { %2426 = vmatprep.mubr.bf16.mxu1 %v4857_v26  ;;  %2593 = vmatpush1.bf16.msra.mxu1 %v4665_v30 }
 0x109   :  { %2594 = vmatprep.subr.bf16.mxu1 %v4676_v35 }
 0x10a   :  { %2482 = vmatpush1.bf16.msra.mxu0 %v4641_v17 }
 0x10b   :  { %2483 = vmatprep.subr.bf16.mxu0 %v4646_v28 }
 0x10c   :  { %2595 = vmatpush1.bf16.msra.mxu1 %v4674_v42 }
 0x10d   :  { %2314 = vmatmul.mubr.bf16.gmra.mxu0 %v4858_v39  ;;  %v4688_v39 = vld [vmem:[#allocation8 + $0x54] ss:$8 sps:$4 sm:$0xff]  }
 0x10e   :  { %2427 = vmatmul.mubr.bf16.gmra.mxu1 %v4859_v40  ;;  %2484 = vmatpush2.bf16.msra.mxu0 %v4644_v31  ;;  %v4683_v31 = vld [vmem:[#allocation8 + $0x60] ss:$8 sps:$4 sm:$0xff]  }
 0x10f   :  { %2323 = vmatprep.mubr.bf16.mxu0 %v4860_v46  ;;  %2485 = vmatprep.subr.bf16.mxu0 %v4652_v34  ;;  %v4691_v46 = vld [vmem:[#allocation8 + $0x44] ss:$8 sps:$4 sm:$0xff]  }
 0x110   :  { %2436 = vmatprep.mubr.bf16.mxu1 %v4861_v47 }
 0x112   :  { %2486 = vmatpush2.bf16.msra.mxu0 %v4650_v43  ;;  %v4686_v43 = vld [vmem:[#allocation8 + $0x50] ss:$8 sps:$4 sm:$0xff]  }
 0x113   :  { %2487 = vmatprep.subr.bf16.mxu0 %v4655_v48 }
 0x115   :  { %2324 = vmatmul.mubr.bf16.gmra.mxu0 %v4862_v56 }
 0x116   :  { %2437 = vmatmul.mubr.bf16.gmra.mxu1 %v4863_v57  ;;  %2488 = vmatpush2.bf16.msra.mxu0 %v4653_v50  ;;  %v4689_v57 = vld [vmem:[#allocation8 + $0x40] ss:$8 sps:$4 sm:$0xff]  }
 0x117   :  { %2333 = vmatprep.mubr.bf16.mxu0 %v4864_v59  ;;  %2489 = vmatprep.subr.bf16.mxu0 %v4661_v54 }
 0x118   :  { %2446 = vmatprep.mubr.bf16.mxu1 %v4865_v61  ;;  %v4694_v61 = vld [vmem:[#allocation8 + $0x34] ss:$8 sps:$4 sm:$0xff]  }
 0x11a   :  { %2490 = vmatpush2.bf16.msra.mxu0 %v4659_v58 }
 0x11b   :  { %2491 = vmatprep.subr.bf16.mxu0 %v4664_v62 }
 0x11d   :  { %2334 = vmatmul.mubr.bf16.gmra.mxu0 %v5015_v4  ;;  %v4677_v4 = vld [vmem:[#allocation6 + $0x508] ss:$16 sps:$4 sm:$0xff]  }
 0x11e   :  { %2447 = vmatmul.mubr.bf16.gmra.mxu1 %v5017_v6  ;;  %2492 = vmatpush2.bf16.msra.mxu0 %v4662_v63  ;;  %v5124_v6 = vsub.s32 0, %v5118_v12 }
 0x11f   :  { %2343 = vmatprep.mubr.bf16.mxu0 %v5019_v9  ;;  %2493 = vmatprep.subr.bf16.mxu0 %v4670_v0  ;;  %v5130_v9 = vld [vmem:[%s5687_s2] sm:$0xf] }
 0x120   :  { %2456 = vmatprep.mubr.bf16.mxu1 %v5021_v10  ;;  %5703 = vst [vmem:[#allocation14_spill] sm:$0xff] %v5124_v6  ;;  %5704 = vst [vmem:[#allocation15_spill] sm:$0xff] %v5130_v9  ;;  %v4682_v10 = vld [vmem:[#allocation8 + $0x74] ss:$8 sps:$4 sm:$0xff]  }
 0x122   :  { %2494 = vmatpush2.bf16.msra.mxu0 %v4668_v3  ;;  %v4692_v3 = vld [vmem:[#allocation8 + $0x30] ss:$8 sps:$4 sm:$0xff]  }
 0x123   :  { %2495 = vmatprep.subr.bf16.mxu0 %v4673_v7 }
 0x125   :  { %2344 = vmatmul.mubr.bf16.gmra.mxu0 %v5027_v13  ;;  %v5133_v13 = vsub.s32 1, %v5118_v12 }
 0x126   :  { %2457 = vmatmul.mubr.bf16.gmra.mxu1 %v5029_v14  ;;  %2496 = vmatpush2.bf16.msra.mxu0 %v4671_v8  ;;  %v5137_v14 = vrot.slane %v5130_v9, %v5124_v6  ;;  %v4697_v8 = vld [vmem:[#allocation8 + $0x24] ss:$8 sps:$4 sm:$0xff]  }
 0x127   :  { %2499 = vmatprep.mubr.bf16.mxu0 %v5031_v16  ;;  %2497 = vmatprep.subr.bf16.mxu0 %v4679_v15  ;;  %5705 = vst [vmem:[#allocation16_spill] sm:$0xff] %v5133_v13  ;;  %v4680_v16 = vld [vmem:[#allocation8 + $0x70] ss:$8 sps:$4 sm:$0xff]   ;;  %v5141_v17 = vrot.slane %v5130_v9, %v5133_v13  ;;  %v4773_v9 = vld [vmem:[#allocation8 + $0x180] ss:$8 sps:$4 sm:$0xff]  }
 0x128   :  { %2612 = vmatprep.mubr.bf16.mxu1 %v4961_v19 }
 0x12a   :  { %2498 = vmatpush2.bf16.msra.mxu0 %v4677_v4 }
 0x12b   :  { %3249 = vmatprep.subr.bf16.mxu0 %v4682_v10 }
 0x12d   :  { %v1823_v24 = vpop.f32.mrf.mxu0  ;;  %2500 = vmatmul.mubr.bf16.vlgmr.msra.gmra.mxu0 %v5037_v21 }
 0x12e   :  { %v1936_v25 = vpop.f32.mrf.mxu1  ;;  %2613 = vmatmul.mubr.bf16.vlgmr.msra.gmra.mxu1 %v5039_v22  ;;  %v1824_v26 = vadd.f32 %v1823_v24, %v5137_v14  ;;  %2509 = vmatprep.mubr.bf16.mxu0 %v5041_v27 }
 0x12f   :  { %2622 = vmatprep.mubr.bf16.mxu1 %v4961_v19  ;;  %v1825_v28 = vpop.f32.mrf.mxu0  ;;  %3250 = vmatpush1.bf16.msra.mxu0 %v4680_v16  ;;  %v4730_v16 = vld [vmem:[#allocation8 + $0x174] ss:$8 sps:$4 sm:$0xff]  }
 0x130   :  { %v1938_v30 = vpop.f32.mrf.mxu1  ;;  %v5148_v34 = vadd.f32 %v1936_v25, %v1824_v26  ;;  %v1826_v35 = vadd.f32 %v1825_v28, %v5141_v17  ;;  %3251 = vmatprep.subr.bf16.mxu0 %v4685_v18  ;;  %v4695_v25 = vld [vmem:[#allocation8 + $0x20] ss:$8 sps:$4 sm:$0xff]   ;;  %v4728_v26 = vld [vmem:[#allocation8 + $0x170] ss:$8 sps:$4 sm:$0xff]   ;;  %3362 = vmatprep.subr.bf16.mxu1 %v4730_v16  ;;  %v4739_v16 = vld [vmem:[#allocation8 + $0x144] ss:$8 sps:$4 sm:$0xff]  }
 0x131   :  { %v5151_v40 = vpop.f32.mrf.mxu0  ;;  %3363 = vmatpush1.bf16.msra.mxu1 %v4728_v26  ;;  %v4737_v26 = vld [vmem:[#allocation8 + $0x140] ss:$8 sps:$4 sm:$0xff]  }
 0x132   :  { %v5153_v21 = vpop.f32.mrf.mxu1  ;;  %v5155_v22 = vadd.f32 %v1938_v30, %v1826_v35 }
 0x133   :  { %v5157_v42 = vpop.f32.mrf.mxu0  ;;  %3252 = vmatpush1.bf16.msra.mxu0 %v4683_v31 }
 0x134   :  { %v5159_v27 = vpop.f32.mrf.mxu1  ;;  %3253 = vmatprep.subr.bf16.mxu0 %v4688_v39  ;;  %v4733_v39 = vld [vmem:[#allocation8 + $0x164] ss:$8 sps:$4 sm:$0xff]  }
 0x135   :  { %v1833_v47 = vpop.f32.mrf.mxu0  ;;  %2510 = vmatmul.mubr.bf16.gmra.mxu0 %v5047_v32  ;;  %3364 = vmatprep.subr.bf16.mxu1 %v4733_v39  ;;  %v4742_v39 = vld [vmem:[#allocation8 + $0x134] ss:$8 sps:$4 sm:$0xff]  }
 0x136   :  { %v1946_v48 = vpop.f32.mrf.mxu1  ;;  %2623 = vmatmul.mubr.bf16.gmra.mxu1 %v5049_v33  ;;  %v1834_v50 = vadd.f32 %v1833_v47, %v5137_v14  ;;  %2519 = vmatprep.mubr.bf16.mxu0 %v5051_v38  ;;  %v4698_v47 = vld [vmem:[#allocation8 + $0x10] ss:$8 sps:$4 sm:$0xff]  }
 0x137   :  { %2632 = vmatprep.mubr.bf16.mxu1 %v4961_v19  ;;  %v1835_v54 = vpop.f32.mrf.mxu0  ;;  %3254 = vmatpush1.bf16.msra.mxu0 %v4686_v43 }
 0x138   :  { %v1948_v56 = vpop.f32.mrf.mxu1  ;;  %v5166_v58 = vadd.f32 %v1946_v48, %v1834_v50  ;;  %v1836_v59 = vadd.f32 %v1835_v54, %v5141_v17  ;;  %3255 = vmatprep.subr.bf16.mxu0 %v4691_v46  ;;  %v4731_v48 = vld [vmem:[#allocation8 + $0x160] ss:$8 sps:$4 sm:$0xff]   ;;  %v4703_v54 = vld [vmem:[#allocation8 + $0x4] ss:$8 sps:$4 sm:$0xff]  }
 0x139   :  { %v1837_v62 = vpop.f32.mrf.mxu0  ;;  %3365 = vmatpush1.bf16.msra.mxu1 %v4731_v48 }
 0x13a   :  { %v1950_v32 = vpop.f32.mrf.mxu1  ;;  %v5169_v63 = vadd.f32 %v1948_v56, %v1836_v59  ;;  %v1838_v33 = vadd.f32 %v1837_v62, %v5137_v14 }
 0x13b   :  { %v5172_v0 = vpop.f32.mrf.mxu0  ;;  %3256 = vmatpush1.bf16.msra.mxu0 %v4689_v57 }
 0x13c   :  { %v5174_v38 = vpop.f32.mrf.mxu1  ;;  %v5176_v7 = vadd.f32 %v1950_v32, %v1838_v33  ;;  %3257 = vmatprep.subr.bf16.mxu0 %v4694_v61  ;;  %v4736_v61 = vld [vmem:[#allocation8 + $0x154] ss:$8 sps:$4 sm:$0xff]   ;;  %v4701_v33 = vld [vmem:[#allocation8] ss:$8 sps:$4 sm:$0xff]  }
 0x13d   :  { %v1843_v15 = vpop.f32.mrf.mxu0  ;;  %2520 = vmatmul.mubr.bf16.gmra.mxu0 %v5055_v41  ;;  %v4700_v41 = vld [vmem:[#allocation8 + $0x14] ss:$8 sps:$4 sm:$0xff]   ;;  %3366 = vmatprep.subr.bf16.mxu1 %v4736_v61 }
 0x13e   :  { %v1956_v4 = vpop.f32.mrf.mxu1  ;;  %2633 = vmatmul.mubr.bf16.gmra.mxu1 %v5059_v44  ;;  %v1844_v10 = vadd.f32 %v1843_v15, %v5137_v14  ;;  %2529 = vmatprep.mubr.bf16.mxu0 %v5061_v49 }
 0x13f   :  { %2642 = vmatprep.mubr.bf16.mxu1 %v4961_v19  ;;  %v1845_v18 = vpop.f32.mrf.mxu0  ;;  %3258 = vmatpush1.bf16.msra.mxu0 %v4692_v3  ;;  %v4734_v3 = vld [vmem:[#allocation8 + $0x150] ss:$8 sps:$4 sm:$0xff]  }
 0x140   :  { %v1958_v24 = vpop.f32.mrf.mxu1  ;;  %v5183_v28 = vadd.f32 %v1956_v4, %v1844_v10  ;;  %v1846_v30 = vadd.f32 %v1845_v18, %v5141_v17  ;;  %3259 = vmatprep.subr.bf16.mxu0 %v4697_v8  ;;  %3367 = vmatpush1.bf16.msra.mxu1 %v4734_v3 }
 0x141   :  { %v1847_v44 = vpop.f32.mrf.mxu0  ;;  %3368 = vmatprep.subr.bf16.mxu1 %v4739_v16 }
 0x142   :  { %v1960_v31 = vpop.f32.mrf.mxu1  ;;  %v5186_v35 = vadd.f32 %v1958_v24, %v1846_v30  ;;  %v1848_v49 = vadd.f32 %v1847_v44, %v5137_v14 }
 0x143   :  { %v5189_v43 = vpop.f32.mrf.mxu0  ;;  %3260 = vmatpush1.bf16.msra.mxu0 %v4695_v25  ;;  %v4704_v25 = vld [vmem:[#allocation8 + $0xf0] ss:$8 sps:$4 sm:$0xff]  }
 0x144   :  { %v5191_v46 = vpop.f32.mrf.mxu1  ;;  %v5193_v50 = vadd.f32 %v1960_v31, %v1848_v49  ;;  %3261 = vmatprep.subr.bf16.mxu0 %v4700_v41  ;;  %v4709_v41 = vld [vmem:[#allocation8 + $0xe4] ss:$8 sps:$4 sm:$0xff]   ;;  %3369 = vmatpush1.bf16.msra.mxu1 %v4737_v26  ;;  %v4748_v26 = vld [vmem:[#allocation8 + $0x114] ss:$8 sps:$4 sm:$0xff]  }
 0x145   :  { %v1853_v56 = vpop.f32.mrf.mxu0  ;;  %2530 = vmatmul.mubr.bf16.gmra.mxu0 %v5065_v52  ;;  %v4706_v52 = vld [vmem:[#allocation8 + $0xf4] ss:$8 sps:$4 sm:$0xff]   ;;  %3370 = vmatprep.subr.bf16.mxu1 %v4742_v39 }
 0x146   :  { %v1966_v57 = vpop.f32.mrf.mxu1  ;;  %2643 = vmatmul.mubr.bf16.gmra.mxu1 %v5069_v55  ;;  %v1854_v59 = vadd.f32 %v1853_v56, %v5137_v14  ;;  %2539 = vmatprep.mubr.bf16.mxu0 %v5071_v60  ;;  %v4740_v56 = vld [vmem:[#allocation8 + $0x130] ss:$8 sps:$4 sm:$0xff]  }
 0x147   :  { %2652 = vmatprep.mubr.bf16.mxu1 %v4961_v19  ;;  %v1855_v62 = vpop.f32.mrf.mxu0  ;;  %3262 = vmatpush1.bf16.msra.mxu0 %v4698_v47 }
 0x148   :  { %v1968_v32 = vpop.f32.mrf.mxu1  ;;  %v5200_v8 = vadd.f32 %v1966_v57, %v1854_v59  ;;  %v1856_v15 = vadd.f32 %v1855_v62, %v5141_v17  ;;  %3263 = vmatprep.subr.bf16.mxu0 %v4703_v54  ;;  %v4707_v54 = vld [vmem:[#allocation8 + $0xe0] ss:$8 sps:$4 sm:$0xff]   ;;  %3371 = vmatpush1.bf16.msra.mxu1 %v4740_v56  ;;  %v4751_v56 = vld [vmem:[#allocation8 + $0x104] ss:$8 sps:$4 sm:$0xff]  }
 0x149   :  { %v1857_v55 = vpop.f32.mrf.mxu0 }
 0x14a   :  { %v1970_v4 = vpop.f32.mrf.mxu1  ;;  %v5203_v10 = vadd.f32 %v1968_v32, %v1856_v15  ;;  %v1858_v60 = vadd.f32 %v1857_v55, %v5137_v14  ;;  %v4745_v32 = vld [vmem:[#allocation8 + $0x124] ss:$8 sps:$4 sm:$0xff]   ;;  %v4710_v15 = vld [vmem:[#allocation8 + $0xd0] ss:$8 sps:$4 sm:$0xff]  }
 0x14b   :  { %v5206_v18 = vpop.f32.mrf.mxu0  ;;  %3264 = vmatpush1.bf16.msra.mxu0 %v4701_v33  ;;  %3372 = vmatprep.subr.bf16.mxu1 %v4745_v32  ;;  %v4721_v32 = vld [vmem:[#allocation8 + $0xa4] ss:$8 sps:$4 sm:$0xff]  }
 0x14c   :  { %v5208_v24 = vpop.f32.mrf.mxu1  ;;  %v5210_v30 = vadd.f32 %v1970_v4, %v1858_v60  ;;  %3265 = vmatprep.subr.bf16.mxu0 %v4706_v52  ;;  %v4743_v52 = vld [vmem:[#allocation8 + $0x120] ss:$8 sps:$4 sm:$0xff]   ;;  %v4715_v4 = vld [vmem:[#allocation8 + $0xc4] ss:$8 sps:$4 sm:$0xff]  }
 0x14d   :  { %v1863_v44 = vpop.f32.mrf.mxu0  ;;  %2540 = vmatmul.mubr.bf16.gmra.mxu0 %v5077_v1  ;;  %v4712_v1 = vld [vmem:[#allocation8 + $0xd4] ss:$8 sps:$4 sm:$0xff]   ;;  %3373 = vmatpush1.bf16.msra.mxu1 %v4743_v52 }
 0x14e   :  { %v1976_v31 = vpop.f32.mrf.mxu1  ;;  %2653 = vmatmul.mubr.bf16.gmra.mxu1 %v5079_v2  ;;  %v1864_v49 = vadd.f32 %v1863_v44, %v5137_v14  ;;  %2549 = vmatprep.mubr.bf16.mxu0 %v5081_v11 }
 0x14f   :  { %2662 = vmatprep.mubr.bf16.mxu1 %v4961_v19  ;;  %v1865_v47 = vpop.f32.mrf.mxu0  ;;  %3266 = vmatpush2.bf16.msra.mxu0 %v4704_v25 }
 0x150   :  { %v1978_v48 = vpop.f32.mrf.mxu1  ;;  %v5217_v57 = vadd.f32 %v1976_v31, %v1864_v49  ;;  %v1866_v59 = vadd.f32 %v1865_v47, %v5141_v17  ;;  %3267 = vmatprep.subr.bf16.mxu0 %v4709_v41  ;;  %v4713_v31 = vld [vmem:[#allocation8 + $0xc0] ss:$8 sps:$4 sm:$0xff]   ;;  %v4746_v49 = vld [vmem:[#allocation8 + $0x110] ss:$8 sps:$4 sm:$0xff]   ;;  %3374 = vmatprep.subr.bf16.mxu1 %v4748_v26 }
 0x151   :  { %v1867_v2 = vpop.f32.mrf.mxu0  ;;  %3375 = vmatpush1.bf16.msra.mxu1 %v4746_v49  ;;  %v4719_v26 = vld [vmem:[#allocation8 + $0xa0] ss:$8 sps:$4 sm:$0xff]  }
 0x152   :  { %v1980_v61 = vpop.f32.mrf.mxu1  ;;  %v5220_v62 = vadd.f32 %v1978_v48, %v1866_v59  ;;  %v1868_v11 = vadd.f32 %v1867_v2, %v5137_v14  ;;  %v4716_v2 = vld [vmem:[#allocation8 + $0xb0] ss:$8 sps:$4 sm:$0xff]   ;;  %3376 = vmatprep.subr.bf16.mxu1 %v4751_v56 }
 0x153   :  { %v5223_v33 = vpop.f32.mrf.mxu0  ;;  %3268 = vmatpush2.bf16.msra.mxu0 %v4707_v54 }
 0x154   :  { %v5225_v3 = vpop.f32.mrf.mxu1  ;;  %v5227_v55 = vadd.f32 %v1980_v61, %v1868_v11  ;;  %3269 = vmatprep.subr.bf16.mxu0 %v4712_v1  ;;  %v4749_v61 = vld [vmem:[#allocation8 + $0x100] ss:$8 sps:$4 sm:$0xff]  }
 0x155   :  { %v1873_v60 = vpop.f32.mrf.mxu0  ;;  %2550 = vmatmul.mubr.bf16.gmra.mxu0 %v5087_v20  ;;  %v4718_v20 = vld [vmem:[#allocation8 + $0xb4] ss:$8 sps:$4 sm:$0xff]   ;;  %3377 = vmatpush1.bf16.msra.mxu1 %v4749_v61 }
 0x156   :  { %v1986_v16 = vpop.f32.mrf.mxu1  ;;  %2663 = vmatmul.mubr.bf16.gmra.mxu1 %v5089_v23  ;;  %v1874_v25 = vadd.f32 %v1873_v60, %v5137_v14  ;;  %2559 = vmatprep.mubr.bf16.mxu0 %v5091_v29  ;;  %v4754_v60 = vld [vmem:[#allocation8 + $0x1f4] ss:$8 sps:$4 sm:$0xff]  }
 0x157   :  { %2672 = vmatprep.mubr.bf16.mxu1 %v4961_v19  ;;  %v1875_v41 = vpop.f32.mrf.mxu0  ;;  %3270 = vmatpush2.bf16.msra.mxu0 %v4710_v15 }
 0x158   :  { %v1988_v44 = vpop.f32.mrf.mxu1  ;;  %v5234_v39 = vadd.f32 %v1986_v16, %v1874_v25  ;;  %v1876_v47 = vadd.f32 %v1875_v41, %v5141_v17  ;;  %3271 = vmatprep.subr.bf16.mxu0 %v4715_v4  ;;  %v4752_v41 = vld [vmem:[#allocation8 + $0x1f0] ss:$8 sps:$4 sm:$0xff]   ;;  %3378 = vmatprep.subr.bf16.mxu1 %v4754_v60 }
 0x159   :  { %v1877_v23 = vpop.f32.mrf.mxu0  ;;  %3379 = vmatpush2.bf16.msra.mxu1 %v4752_v41 }
 0x15a   :  { %v1990_v48 = vpop.f32.mrf.mxu1  ;;  %v5237_v54 = vadd.f32 %v1988_v44, %v1876_v47  ;;  %v1878_v29 = vadd.f32 %v1877_v23, %v5137_v14 }
 0x15b   :  { %v5240_v59 = vpop.f32.mrf.mxu0  ;;  %3272 = vmatpush2.bf16.msra.mxu0 %v4713_v31 }
 0x15c   :  { %v5242_v1 = vpop.f32.mrf.mxu1  ;;  %v5244_v11 = vadd.f32 %v1990_v48, %v1878_v29  ;;  %3273 = vmatprep.subr.bf16.mxu0 %v4718_v20  ;;  %v4722_v48 = vld [vmem:[#allocation8 + $0x90] ss:$8 sps:$4 sm:$0xff]   ;;  %v4755_v29 = vld [vmem:[#allocation8 + $0x1e0] ss:$8 sps:$4 sm:$0xff]  }
 0x15d   :  { %v1883_v15 = vpop.f32.mrf.mxu0  ;;  %2560 = vmatmul.mubr.bf16.gmra.mxu0 %v5097_v36  ;;  %v4724_v36 = vld [vmem:[#allocation8 + $0x94] ss:$8 sps:$4 sm:$0xff]  }
 0x15e   :  { %v1996_v52 = vpop.f32.mrf.mxu1  ;;  %2673 = vmatmul.mubr.bf16.gmra.mxu1 %v5099_v37  ;;  %v1884_v4 = vadd.f32 %v1883_v15, %v5137_v14  ;;  %2569 = vmatprep.mubr.bf16.mxu0 %v5101_v45  ;;  %v4757_v45 = vld [vmem:[#allocation8 + $0x1e4] ss:$8 sps:$4 sm:$0xff]  }
 0x15f   :  { %2682 = vmatprep.mubr.bf16.mxu1 %v4961_v19  ;;  %v1885_v16 = vpop.f32.mrf.mxu0  ;;  %3274 = vmatpush2.bf16.msra.mxu0 %v4716_v2  ;;  %v4727_v2 = vld [vmem:[#allocation8 + $0x84] ss:$8 sps:$4 sm:$0xff]  }
 0x160   :  { %v1998_v25 = vpop.f32.mrf.mxu1  ;;  %v5251_v44 = vadd.f32 %v1996_v52, %v1884_v4  ;;  %v1886_v31 = vadd.f32 %v1885_v16, %v5141_v17  ;;  %3275 = vmatprep.subr.bf16.mxu0 %v4721_v32  ;;  %3380 = vmatprep.subr.bf16.mxu1 %v4757_v45  ;;  %v4760_v52 = vld [vmem:[#allocation8 + $0x1d4] ss:$8 sps:$4 sm:$0xff]   ;;  %v4725_v16 = vld [vmem:[#allocation8 + $0x80] ss:$8 sps:$4 sm:$0xff]  }
 0x161   :  { %v1887_v37 = vpop.f32.mrf.mxu0  ;;  %3381 = vmatpush2.bf16.msra.mxu1 %v4755_v29  ;;  %v4761_v45 = vld [vmem:[#allocation8 + $0x1c0] ss:$8 sps:$4 sm:$0xff]  }
 0x162   :  { %v2000_v49 = vpop.f32.mrf.mxu1  ;;  %v5254_v47 = vadd.f32 %v1998_v25, %v1886_v31  ;;  %v1888_v19 = vadd.f32 %v1887_v37, %v5137_v14  ;;  %v4758_v25 = vld [vmem:[#allocation8 + $0x1d0] ss:$8 sps:$4 sm:$0xff]   ;;  %3382 = vmatprep.subr.bf16.mxu1 %v4760_v52  ;;  %v4763_v37 = vld [vmem:[#allocation8 + $0x1c4] ss:$8 sps:$4 sm:$0xff]  }
 0x163   :  { %v5257_v20 = vpop.f32.mrf.mxu0  ;;  %3276 = vmatpush2.bf16.msra.mxu0 %v4719_v26 }
 0x164   :  { %v5259_v23 = vpop.f32.mrf.mxu1  ;;  %v5261_v56 = vadd.f32 %v2000_v49, %v1888_v19  ;;  %3277 = vmatprep.subr.bf16.mxu0 %v4724_v36 }
 0x165   :  { %v1893_v61 = vpop.f32.mrf.mxu0  ;;  %2570 = vmatmul.mubr.bf16.gmra.mxu0 %v5107_v51  ;;  %3383 = vmatpush2.bf16.msra.mxu1 %v4758_v25 }
 0x166   :  { %v2006_v32 = vpop.f32.mrf.mxu1  ;;  %2683 = vmatmul.mubr.bf16.gmra.mxu1 %v5109_v53  ;;  %v1894_v15 = vadd.f32 %v1893_v61, %v5137_v14  ;;  %3384 = vmatprep.subr.bf16.mxu1 %v4763_v37  ;;  %v4769_v37 = vld [vmem:[#allocation8 + $0x1a4] ss:$8 sps:$4 sm:$0xff]  }
 0x167   :  { %v1895_v4 = vpop.f32.mrf.mxu0  ;;  %3278 = vmatpush2.bf16.msra.mxu0 %v4722_v48  ;;  %v1828_v48 = vadd.f32 %v5151_v40, %v5137_v14 }
 0x168   :  { %v2008_v60 = vpop.f32.mrf.mxu1  ;;  %v5266_v26 = vadd.f32 %v2006_v32, %v1894_v15  ;;  %v1896_v41 = vadd.f32 %v1895_v4, %v5141_v17  ;;  %3279 = vmatprep.subr.bf16.mxu0 %v4727_v2  ;;  %v1830_v32 = vadd.f32 %v5157_v42, %v5141_v17  ;;  %v4766_v15 = vld [vmem:[#allocation8 + $0x1b4] ss:$8 sps:$4 sm:$0xff]  }
 0x169   :  { %v1897_v31 = vpop.f32.mrf.mxu0  ;;  %3385 = vmatpush2.bf16.msra.mxu1 %v4761_v45  ;;  %v1941_v25 = vadd.f32 %v5153_v21, %v1828_v48  ;;  %v1840_v21 = vadd.f32 %v5172_v0, %v5141_v17 }
 0x16a   :  { %v2010_v36 = vpop.f32.mrf.mxu1  ;;  %v5269_v51 = vadd.f32 %v2008_v60, %v1896_v41  ;;  %v1898_v53 = vadd.f32 %v1897_v31, %v5137_v14  ;;  %3386 = vmatprep.subr.bf16.mxu1 %v4766_v15  ;;  %v1943_v31 = vadd.f32 %v5159_v27, %v1830_v32  ;;  %v4772_v32 = vld [vmem:[#allocation8 + $0x194] ss:$8 sps:$4 sm:$0xff]  }
 0x16b   :  { %v5272_v49 = vpop.f32.mrf.mxu0  ;;  %3280 = vmatpush2.bf16.msra.mxu0 %v4725_v16  ;;  %v4764_v16 = vld [vmem:[#allocation8 + $0x1b0] ss:$8 sps:$4 sm:$0xff]  }
 0x16c   :  { %v5274_v19 = vpop.f32.mrf.mxu1  ;;  %v5278_v29 = vadd.f32 %v2010_v36, %v1898_v53 }
 0x16d   :  { %5706 = vst [vmem:[#allocation17_spill] sm:$0xff] %v5274_v19  ;;  %v2049_v2 = vpop.f32.mrf.mxu0  ;;  %3387 = vmatpush2.bf16.msra.mxu1 %v4764_v16  ;;  %v4770_v16 = vld [vmem:[#allocation8 + $0x190] ss:$8 sps:$4 sm:$0xff]  }
 0x16e   :  { %5707 = vst [vmem:[#allocation18_spill] sm:$0xff] %v5278_v29  ;;  %v2162_v61 = vpop.f32.mrf.mxu1  ;;  %v2050_v52 = vadd.f32 %v2049_v2, %v5148_v34  ;;  %v4767_v34 = vld [vmem:[#allocation8 + $0x1a0] ss:$8 sps:$4 sm:$0xff]   ;;  %3388 = vmatprep.subr.bf16.mxu1 %v4769_v37  ;;  %v4775_v37 = vld [vmem:[#allocation8 + $0x184] ss:$8 sps:$4 sm:$0xff]  }
 0x16f   :  { %v2051_v4 = vpop.f32.mrf.mxu0 }
 0x170   :  { %v2164_v60 = vpop.f32.mrf.mxu1  ;;  %v2052_v41 = vadd.f32 %v2051_v4, %v5155_v22  ;;  %v2163_v42 = vadd.f32 %v2162_v61, %v2050_v52 }
 0x171   :  { %v2053_v14 = vpop.f32.mrf.mxu0  ;;  %3389 = vmatpush2.bf16.msra.mxu1 %v4767_v34 }
 0x172   :  { %v2166_v40 = vpop.f32.mrf.mxu1  ;;  %v2165_v36 = vadd.f32 %v2164_v60, %v2052_v41  ;;  %v2054_v53 = vadd.f32 %v2053_v14, %v1941_v25  ;;  %v2693_v60 = vmul.f32 0.2, %v2163_v42  ;;  %3390 = vmatprep.subr.bf16.mxu1 %v4772_v32 }
 0x173   :  { %v2055_v5 = vpop.f32.mrf.mxu0 }
 0x174   :  { %v2168_v13 = vpop.f32.mrf.mxu1  ;;  %v2167_v2 = vadd.f32 %v2166_v40, %v2054_v53  ;;  %v2056_v45 = vadd.f32 %v2055_v5, %v1943_v31  ;;  %v2694_v15 = vmul.f32 0.2, %v2165_v36  ;;  %v1953_v31 = vadd.f32 %v5174_v38, %v1840_v21 }
 0x175   :  { %v2059_v22 = vpop.f32.mrf.mxu0  ;;  %3391 = vmatpush2.bf16.msra.mxu1 %v4770_v16 }
 0x176   :  { %v2172_v48 = vpop.f32.mrf.mxu1  ;;  %v2697_v4 = vmul.f32 0.2, %v2167_v2  ;;  %v2169_v6 = vadd.f32 %v2168_v13, %v2056_v45  ;;  %v2060_v27 = vadd.f32 %v2059_v22, %v5166_v58  ;;  %v2758_v53 = vmax.f32 %v2165_v36, %v2694_v15  ;;  %3392 = vmatprep.subr.bf16.mxu1 %v4775_v37 }
 0x177   :  { %v2061_v61 = vpop.f32.mrf.mxu0  ;;  %v2757_v58 = vmax.f32 %v2163_v42, %v2693_v60 }
 0x178   :  { %v2174_v52 = vpop.f32.mrf.mxu1  ;;  %v2698_v25 = vmul.f32 0.2, %v2169_v6  ;;  %v2062_v5 = vadd.f32 %v2061_v61, %v5169_v63  ;;  %v2761_v41 = vmax.f32 %v2167_v2, %v2697_v4  ;;  %v2173_v14 = vadd.f32 %v2172_v48, %v2060_v27 }
 0x179   :  { %v2063_v0 = vpop.f32.mrf.mxu0  ;;  %3393 = vmatpush2.bf16.msra.mxu1 %v4773_v9 }
 0x17a   :  { %v2176_v40 = vpop.f32.mrf.mxu1  ;;  %v2762_v13 = vmax.f32 %v2169_v6, %v2698_v25  ;;  %v2175_v45 = vadd.f32 %v2174_v52, %v2062_v5  ;;  %v2064_v22 = vadd.f32 %v2063_v0, %v5176_v7  ;;  %v2821_v2 = vpack.c.bf16 %v2761_v41, %v2757_v58 }
 0x17b   :  { %v2065_v29 = vpop.f32.mrf.mxu0  ;;  %v2701_v48 = vmul.f32 0.2, %v2173_v14  ;;  %v1850_v6 = vadd.f32 %v5189_v43, %v5141_v17 }
 0x17c   :  { %v2178_v34 = vpop.f32.mrf.mxu1  ;;  %v2066_v19 = vadd.f32 %v2065_v29, %v1953_v31  ;;  %v2822_v63 = vpack.c.bf16 %v2762_v13, %v2758_v53  ;;  %v2177_v4 = vadd.f32 %v2176_v40, %v2064_v22  ;;  %v2702_v7 = vmul.f32 0.2, %v2175_v45 }
 0x17d   :  { %v2069_v27 = vpop.f32.mrf.mxu0  ;;  %v2765_v52 = vmax.f32 %v2173_v14, %v2701_v48  ;;  %v1963_v43 = vadd.f32 %v5191_v46, %v1850_v6 }
 0x17e   :  { %v2182_v32 = vpop.f32.mrf.mxu1  ;;  %v2179_v38 = vadd.f32 %v2178_v34, %v2066_v19  ;;  %v2070_v36 = vadd.f32 %v2069_v27, %v5183_v28  ;;  %3281 = vmatprep.mubr.bf16.mxu0 %v2822_v63  ;;  %v2705_v42 = vmul.f32 0.2, %v2177_v4  ;;  %v2766_v0 = vmax.f32 %v2175_v45, %v2702_v7 }
 0x17f   :  { %v2071_v21 = vpop.f32.mrf.mxu0  ;;  %3282 = vmatmul.mubr.bf16.vlgmr.msra.gmra.mxu0 %v2821_v2 }
 0x180   :  { %v2184_v15 = vpop.f32.mrf.mxu1  ;;  %v2706_v29 = vmul.f32 0.2, %v2179_v38  ;;  %v2183_v60 = vadd.f32 %v2182_v32, %v2070_v36  ;;  %v2072_v61 = vadd.f32 %v2071_v21, %v5186_v35  ;;  %v2769_v16 = vmax.f32 %v2177_v4, %v2705_v42 }
 0x181   :  { %v2073_v25 = vpop.f32.mrf.mxu0  ;;  %v1860_v35 = vadd.f32 %v5206_v18, %v5141_v17 }
 0x182   :  { %v2186_v5 = vpop.f32.mrf.mxu1  ;;  %v2770_v19 = vmax.f32 %v2179_v38, %v2706_v29  ;;  %v2185_v41 = vadd.f32 %v2184_v15, %v2072_v61  ;;  %v2074_v28 = vadd.f32 %v2073_v25, %v5193_v50  ;;  %v2825_v40 = vpack.c.bf16 %v2769_v16, %v2765_v52 }
 0x183   :  { %v2075_v31 = vpop.f32.mrf.mxu0  ;;  %v2709_v13 = vmul.f32 0.2, %v2183_v60  ;;  %v1973_v36 = vadd.f32 %v5208_v24, %v1860_v35 }
 0x184   :  { %v2188_v53 = vpop.f32.mrf.mxu1  ;;  %v2187_v9 = vadd.f32 %v2186_v5, %v2074_v28  ;;  %v2076_v37 = vadd.f32 %v2075_v31, %v1963_v43  ;;  %v2826_v22 = vpack.c.bf16 %v2770_v19, %v2766_v0  ;;  %v2710_v34 = vmul.f32 0.2, %v2185_v41 }
 0x185   :  { %v2079_v14 = vpop.f32.mrf.mxu0  ;;  %v2773_v48 = vmax.f32 %v2183_v60, %v2709_v13  ;;  %v1870_v43 = vadd.f32 %v5223_v33, %v5141_v17 }
 0x186   :  { %v2192_v58 = vpop.f32.mrf.mxu1  ;;  %v2713_v63 = vmul.f32 0.2, %v2187_v9  ;;  %v2189_v46 = vadd.f32 %v2188_v53, %v2076_v37  ;;  %v2080_v2 = vadd.f32 %v2079_v14, %v5200_v8  ;;  %3291 = vmatprep.mubr.bf16.mxu0 %v2826_v22  ;;  %v2774_v7 = vmax.f32 %v2185_v41, %v2710_v34 }
 0x187   :  { %v2081_v50 = vpop.f32.mrf.mxu0  ;;  %3292 = vmatmul.mubr.bf16.gmra.mxu0 %v2825_v40  ;;  %v1983_v14 = vadd.f32 %v5225_v3, %v1870_v43 }
 0x188   :  { %v2194_v45 = vpop.f32.mrf.mxu1  ;;  %v2777_v4 = vmax.f32 %v2187_v9, %v2713_v63  ;;  %v2714_v27 = vmul.f32 0.2, %v2189_v46  ;;  %v2082_v32 = vadd.f32 %v2081_v50, %v5203_v10  ;;  %v2193_v6 = vadd.f32 %v2192_v58, %v2080_v2 }
 0x189   :  { %v2083_v38 = vpop.f32.mrf.mxu0 }
 0x18a   :  { %v2196_v18 = vpop.f32.mrf.mxu1  ;;  %v2829_v42 = vpack.c.bf16 %v2777_v4, %v2773_v48  ;;  %v2778_v21 = vmax.f32 %v2189_v46, %v2714_v27  ;;  %v2195_v15 = vadd.f32 %v2194_v45, %v2082_v32  ;;  %v2084_v8 = vadd.f32 %v2083_v38, %v5210_v30 }
 0x18b   :  { %v2085_v29 = vpop.f32.mrf.mxu0  ;;  %v2717_v16 = vmul.f32 0.2, %v2193_v6 }
 0x18c   :  { %v2198_v61 = vpop.f32.mrf.mxu1  ;;  %v2086_v52 = vadd.f32 %v2085_v29, %v1973_v36  ;;  %v2830_v60 = vpack.c.bf16 %v2778_v21, %v2774_v7  ;;  %v2197_v25 = vadd.f32 %v2196_v18, %v2084_v8  ;;  %v2718_v41 = vmul.f32 0.2, %v2195_v15 }
 0x18d   :  { %v2089_v5 = vpop.f32.mrf.mxu0  ;;  %v2781_v13 = vmax.f32 %v2193_v6, %v2717_v16 }
 0x18e   :  { %v2202_v10 = vpop.f32.mrf.mxu1  ;;  %v2199_v19 = vadd.f32 %v2198_v61, %v2086_v52  ;;  %v2090_v24 = vadd.f32 %v2089_v5, %v5217_v57  ;;  %3301 = vmatprep.mubr.bf16.mxu0 %v2830_v60  ;;  %v2721_v28 = vmul.f32 0.2, %v2197_v25  ;;  %v2782_v22 = vmax.f32 %v2195_v15, %v2718_v41 }
 0x18f   :  { %v2091_v0 = vpop.f32.mrf.mxu0  ;;  %3302 = vmatmul.mubr.bf16.gmra.mxu0 %v2829_v42 }
 0x190   :  { %v2204_v40 = vpop.f32.mrf.mxu1  ;;  %v2722_v30 = vmul.f32 0.2, %v2199_v19  ;;  %v2203_v31 = vadd.f32 %v2202_v10, %v2090_v24  ;;  %v2092_v53 = vadd.f32 %v2091_v0, %v5220_v62  ;;  %v2785_v9 = vmax.f32 %v2197_v25, %v2721_v28 }
 0x191   :  { %v2093_v37 = vpop.f32.mrf.mxu0  ;;  %v1880_v62 = vadd.f32 %v5240_v59, %v5141_v17  ;;  %v1890_v28 = vadd.f32 %v5257_v20, %v5141_v17 }
 0x192   :  { %v2206_v35 = vpop.f32.mrf.mxu1  ;;  %v2786_v33 = vmax.f32 %v2199_v19, %v2722_v30  ;;  %v2205_v58 = vadd.f32 %v2204_v40, %v2092_v53  ;;  %v2094_v57 = vadd.f32 %v2093_v37, %v5227_v55  ;;  %v2833_v34 = vpack.c.bf16 %v2785_v9, %v2781_v13 }
 0x193   :  { %v2095_v63 = vpop.f32.mrf.mxu0  ;;  %v2725_v2 = vmul.f32 0.2, %v2203_v31  ;;  %v1993_v29 = vadd.f32 %v5242_v1, %v1880_v62 }
 0x194   :  { %v2208_v46 = vpop.f32.mrf.mxu1  ;;  %v2207_v50 = vadd.f32 %v2206_v35, %v2094_v57  ;;  %v2096_v45 = vadd.f32 %v2095_v63, %v1983_v14  ;;  %v2834_v27 = vpack.c.bf16 %v2786_v33, %v2782_v22  ;;  %v2726_v32 = vmul.f32 0.2, %v2205_v58 }
 0x195   :  { %v2099_v48 = vpop.f32.mrf.mxu0  ;;  %v2789_v36 = vmax.f32 %v2203_v31, %v2725_v2 }
 0x196   :  { %v2212_v4 = vpop.f32.mrf.mxu1  ;;  %v2729_v6 = vmul.f32 0.2, %v2207_v50  ;;  %v2209_v3 = vadd.f32 %v2208_v46, %v2096_v45  ;;  %v2100_v38 = vadd.f32 %v2099_v48, %v5234_v39  ;;  %3311 = vmatprep.mubr.bf16.mxu0 %v2834_v27  ;;  %v2790_v61 = vmax.f32 %v2205_v58, %v2726_v32 }
 0x197   :  { %v2101_v55 = vpop.f32.mrf.mxu0  ;;  %3312 = vmatmul.mubr.bf16.gmra.mxu0 %v2833_v34  ;;  %v2003_v58 = vadd.f32 %v5259_v23, %v1890_v28  ;;  %v371_v27 = vsub.s32 2, %v5118_v12 }
 0x198   :  { %v2214_v18 = vpop.f32.mrf.mxu1  ;;  %v2793_v7 = vmax.f32 %v2207_v50, %v2729_v6  ;;  %v2730_v42 = vmul.f32 0.2, %v2209_v3  ;;  %v2102_v21 = vadd.f32 %v2101_v55, %v5237_v54  ;;  %v2213_v15 = vadd.f32 %v2212_v4, %v2100_v38 }
 0x199   :  { %v2103_v8 = vpop.f32.mrf.mxu0  ;;  %v375_v55 = vsub.s32 3, %v5118_v12 }
 0x19a   :  { %v2216_v59 = vpop.f32.mrf.mxu1  ;;  %v2837_v52 = vpack.c.bf16 %v2793_v7, %v2789_v36  ;;  %v2794_v60 = vmax.f32 %v2209_v3, %v2730_v42  ;;  %v2215_v16 = vadd.f32 %v2214_v18, %v2102_v21  ;;  %v2104_v39 = vadd.f32 %v2103_v8, %v5244_v11 }
 0x19b   :  { %v2105_v25 = vpop.f32.mrf.mxu0  ;;  %v2733_v19 = vmul.f32 0.2, %v2213_v15 }
 0x19c   :  { %v2218_v5 = vpop.f32.mrf.mxu1  ;;  %v2106_v10 = vadd.f32 %v2105_v25, %v1993_v29  ;;  %v2838_v43 = vpack.c.bf16 %v2794_v60, %v2790_v61  ;;  %v2217_v24 = vadd.f32 %v2216_v59, %v2104_v39  ;;  %v2734_v40 = vmul.f32 0.2, %v2215_v16  ;;  %v5709_v59 = vld [vmem:[#allocation15_spill] sm:$0xff] }
 0x19d   :  { %v2109_v41 = vpop.f32.mrf.mxu0  ;;  %v2797_v37 = vmax.f32 %v2213_v15, %v2733_v19  ;;  %v5330_v29 = vrot.slane %v5709_v59, %v371_v27 }
 0x19e   :  { %v2222_v54 = vpop.f32.mrf.mxu1  ;;  %v2219_v0 = vadd.f32 %v2218_v5, %v2106_v10  ;;  %v2110_v1 = vadd.f32 %v2109_v41, %v5251_v44  ;;  %3321 = vmatprep.mubr.bf16.mxu0 %v2838_v43  ;;  %v2737_v30 = vmul.f32 0.2, %v2217_v24  ;;  %v2798_v22 = vmax.f32 %v2215_v16, %v2734_v40  ;;  %v5710_v16 = vld [vmem:[#allocation18_spill] sm:$0xff] }
 0x19f   :  { %v2111_v31 = vpop.f32.mrf.mxu0  ;;  %3322 = vmatmul.mubr.bf16.gmra.mxu0 %v2837_v52 }
 0x1a0   :  { %v2224_v53 = vpop.f32.mrf.mxu1  ;;  %v2738_v11 = vmul.f32 0.2, %v2219_v0  ;;  %v2223_v13 = vadd.f32 %v2222_v54, %v2110_v1  ;;  %v2112_v9 = vadd.f32 %v2111_v31, %v5254_v47  ;;  %v2801_v35 = vmax.f32 %v2217_v24, %v2737_v30 }
 0x1a1   :  { %v2113_v14 = vpop.f32.mrf.mxu0  ;;  %v1900_v47 = vadd.f32 %v5272_v49, %v5141_v17  ;;  %v5708_v49 = vld [vmem:[#allocation17_spill] sm:$0xff] }
 0x1a2   :  { %v2226_v33 = vpop.f32.mrf.mxu1  ;;  %v2802_v20 = vmax.f32 %v2219_v0, %v2738_v11  ;;  %v2225_v57 = vadd.f32 %v2224_v53, %v2112_v9  ;;  %v2114_v44 = vadd.f32 %v2113_v14, %v5261_v56  ;;  %v2841_v34 = vpack.c.bf16 %v2801_v35, %v2797_v37 }
 0x1a3   :  { %v2115_v63 = vpop.f32.mrf.mxu0  ;;  %v2741_v2 = vmul.f32 0.2, %v2223_v13  ;;  %v2013_v42 = vadd.f32 %v5708_v49, %v1900_v47 }
 0x1a4   :  { %v2228_v46 = vpop.f32.mrf.mxu1  ;;  %v2227_v50 = vadd.f32 %v2226_v33, %v2114_v44  ;;  %v2116_v45 = vadd.f32 %v2115_v63, %v2003_v58  ;;  %v2842_v4 = vpack.c.bf16 %v2802_v20, %v2798_v22  ;;  %v2742_v23 = vmul.f32 0.2, %v2225_v57 }
 0x1a5   :  { %v2119_v62 = vpop.f32.mrf.mxu0  ;;  %v2805_v18 = vmax.f32 %v2223_v13, %v2741_v2 }
 0x1a6   :  { %v2232_v48 = vpop.f32.mrf.mxu1  ;;  %v2745_v32 = vmul.f32 0.2, %v2227_v50  ;;  %v2229_v6 = vadd.f32 %v2228_v46, %v2116_v45  ;;  %v2120_v56 = vadd.f32 %v2119_v62, %v5266_v26  ;;  %3331 = vmatprep.mubr.bf16.mxu0 %v2842_v4  ;;  %v2806_v26 = vmax.f32 %v2225_v57, %v2742_v23 }
 0x1a7   :  { %v2121_v3 = vpop.f32.mrf.mxu0  ;;  %3332 = vmatmul.mubr.bf16.gmra.mxu0 %v2841_v34 }
 0x1a8   :  { %v2234_v38 = vpop.f32.mrf.mxu1  ;;  %v2809_v36 = vmax.f32 %v2227_v50, %v2745_v32  ;;  %v2746_v7 = vmul.f32 0.2, %v2229_v6  ;;  %v2122_v17 = vadd.f32 %v2121_v3, %v5269_v51  ;;  %v2233_v21 = vadd.f32 %v2232_v48, %v2120_v56 }
 0x1a9   :  { %v2123_v15 = vpop.f32.mrf.mxu0  ;;  %v5334_v51 = vrot.slane %v5709_v59, %v375_v55 }
 0x1aa   :  { %v2236_v8 = vpop.f32.mrf.mxu1  ;;  %v2845_v61 = vpack.c.bf16 %v2809_v36, %v2805_v18  ;;  %v2810_v52 = vmax.f32 %v2229_v6, %v2746_v7  ;;  %v2235_v60 = vadd.f32 %v2234_v38, %v2122_v17  ;;  %v2124_v39 = vadd.f32 %v2123_v15, %v5710_v16 }
 0x1ab   :  { %v2125_v25 = vpop.f32.mrf.mxu0  ;;  %v2749_v19 = vmul.f32 0.2, %v2233_v21 }
 0x1ac   :  { %v2238_v5 = vpop.f32.mrf.mxu1  ;;  %v2126_v10 = vadd.f32 %v2125_v25, %v2013_v42  ;;  %v2846_v43 = vpack.c.bf16 %v2810_v52, %v2806_v26  ;;  %v2237_v24 = vadd.f32 %v2236_v8, %v2124_v39  ;;  %v2750_v28 = vmul.f32 0.2, %v2235_v60 }
 0x1ad   :  { %v2275_v41 = vpop.f32.mrf.mxu0  ;;  %v2813_v9 = vmax.f32 %v2233_v21, %v2749_v19 }
 0x1ae   :  { %v2388_v54 = vpop.f32.mrf.mxu1  ;;  %v2239_v0 = vadd.f32 %v2238_v5, %v2126_v10  ;;  %v2276_v1 = vadd.f32 %v2275_v41, %v5330_v29  ;;  %3341 = vmatprep.mubr.bf16.mxu0 %v2846_v43  ;;  %v2753_v40 = vmul.f32 0.2, %v2237_v24  ;;  %v2814_v33 = vmax.f32 %v2235_v60, %v2750_v28 }
 0x1af   :  { %v2277_v30 = vpop.f32.mrf.mxu0  ;;  %3342 = vmatmul.mubr.bf16.gmra.mxu0 %v2845_v61 }
 0x1b0   :  { %v2390_v31 = vpop.f32.mrf.mxu1  ;;  %v2754_v53 = vmul.f32 0.2, %v2239_v0  ;;  %v5337_v11 = vadd.f32 %v2388_v54, %v2276_v1  ;;  %v2278_v13 = vadd.f32 %v2277_v30, %v5334_v51  ;;  %v2817_v37 = vmax.f32 %v2237_v24, %v2753_v40 }
 0x1b1   :  { %v5340_v35 = vpop.f32.mrf.mxu0 }
 0x1b2   :  { %v5342_v14 = vpop.f32.mrf.mxu1  ;;  %v2818_v58 = vmax.f32 %v2239_v0, %v2754_v53  ;;  %v5344_v20 = vadd.f32 %v2390_v31, %v2278_v13  ;;  %v2849_v57 = vpack.c.bf16 %v2817_v37, %v2813_v9 }
 0x1b3   :  { %v5346_v44 = vpop.f32.mrf.mxu0 }
 0x1b4   :  { %v5348_v22 = vpop.f32.mrf.mxu1  ;;  %v2850_v34 = vpack.c.bf16 %v2818_v58, %v2814_v33 }
 0x1b5   :  { %v2285_v63 = vpop.f32.mrf.mxu0 }
 0x1b6   :  { %v2398_v46 = vpop.f32.mrf.mxu1  ;;  %v2286_v2 = vadd.f32 %v2285_v63, %v5330_v29  ;;  %3351 = vmatprep.mubr.bf16.mxu0 %v2850_v34 }
 0x1b7   :  { %v2287_v50 = vpop.f32.mrf.mxu0  ;;  %3352 = vmatmul.mubr.bf16.gmra.mxu0 %v2849_v57 }
 0x1b8   :  { %v2400_v45 = vpop.f32.mrf.mxu1  ;;  %v5351_v47 = vadd.f32 %v2398_v46, %v2286_v2  ;;  %v2288_v62 = vadd.f32 %v2287_v50, %v5334_v51 }
 0x1b9   :  { %v2289_v48 = vpop.f32.mrf.mxu0 }
 0x1ba   :  { %v2402_v4 = vpop.f32.mrf.mxu1  ;;  %v5354_v27 = vadd.f32 %v2400_v45, %v2288_v62  ;;  %v2290_v23 = vadd.f32 %v2289_v48, %v5330_v29 }
 0x1bb   :  { %v5357_v32 = vpop.f32.mrf.mxu0 }
 0x1bc   :  { %v5359_v6 = vpop.f32.mrf.mxu1  ;;  %v5361_v56 = vadd.f32 %v2402_v4, %v2290_v23 }
 0x1bd   :  { %v2295_v3 = vpop.f32.mrf.mxu0 }
 0x1be   :  { %v2408_v38 = vpop.f32.mrf.mxu1  ;;  %v2296_v55 = vadd.f32 %v2295_v3, %v5330_v29 }
 0x1bf   :  { %v2297_v18 = vpop.f32.mrf.mxu0 }
 0x1c0   :  { %v2410_v36 = vpop.f32.mrf.mxu1  ;;  %v5364_v7 = vadd.f32 %v2408_v38, %v2296_v55  ;;  %v2298_v17 = vadd.f32 %v2297_v18, %v5334_v51 }
 0x1c1   :  { %v2299_v49 = vpop.f32.mrf.mxu0 }
 0x1c2   :  { %v2412_v42 = vpop.f32.mrf.mxu1  ;;  %v5367_v21 = vadd.f32 %v2410_v36, %v2298_v17  ;;  %v2300_v15 = vadd.f32 %v2299_v49, %v5330_v29 }
 0x1c3   :  { %v5370_v8 = vpop.f32.mrf.mxu0 }
 0x1c4   :  { %v5372_v59 = vpop.f32.mrf.mxu1  ;;  %v5374_v26 = vadd.f32 %v2412_v42, %v2300_v15 }
 0x1c5   :  { %v2305_v61 = vpop.f32.mrf.mxu0 }
 0x1c6   :  { %v2418_v52 = vpop.f32.mrf.mxu1  ;;  %v2306_v60 = vadd.f32 %v2305_v61, %v5330_v29 }
 0x1c7   :  { %v2307_v16 = vpop.f32.mrf.mxu0 }
 0x1c8   :  { %v2420_v39 = vpop.f32.mrf.mxu1  ;;  %v5377_v25 = vadd.f32 %v2418_v52, %v2306_v60  ;;  %v2308_v5 = vadd.f32 %v2307_v16, %v5334_v51 }
 0x1c9   :  { %v2309_v10 = vpop.f32.mrf.mxu0 }
 0x1ca   :  { %v2422_v43 = vpop.f32.mrf.mxu1  ;;  %v5380_v19 = vadd.f32 %v2420_v39, %v2308_v5  ;;  %v2310_v24 = vadd.f32 %v2309_v10, %v5330_v29 }
 0x1cb   :  { %v5383_v41 = vpop.f32.mrf.mxu0 }
 0x1cc   :  { %v5385_v54 = vpop.f32.mrf.mxu1  ;;  %v5387_v28 = vadd.f32 %v2422_v43, %v2310_v24 }
 0x1cd   :  { %v2315_v0 = vpop.f32.mrf.mxu0 }
 0x1ce   :  { %v2428_v1 = vpop.f32.mrf.mxu1  ;;  %v2316_v40 = vadd.f32 %v2315_v0, %v5330_v29 }
 0x1cf   :  { %v2317_v30 = vpop.f32.mrf.mxu0 }
 0x1d0   :  { %v2430_v31 = vpop.f32.mrf.mxu1  ;;  %v5390_v53 = vadd.f32 %v2428_v1, %v2316_v40  ;;  %v2318_v13 = vadd.f32 %v2317_v30, %v5334_v51 }
 0x1d1   :  { %v2319_v9 = vpop.f32.mrf.mxu0 }
 0x1d2   :  { %v2432_v37 = vpop.f32.mrf.mxu1  ;;  %v5393_v33 = vadd.f32 %v2430_v31, %v2318_v13  ;;  %v2320_v58 = vadd.f32 %v2319_v9, %v5330_v29 }
 0x1d3   :  { %v5396_v57 = vpop.f32.mrf.mxu0 }
 0x1d4   :  { %v5398_v34 = vpop.f32.mrf.mxu1  ;;  %v5400_v63 = vadd.f32 %v2432_v37, %v2320_v58 }
 0x1d5   :  { %v2325_v46 = vpop.f32.mrf.mxu0 }
 0x1d6   :  { %v2438_v2 = vpop.f32.mrf.mxu1  ;;  %v2326_v50 = vadd.f32 %v2325_v46, %v5330_v29 }
 0x1d7   :  { %v2327_v45 = vpop.f32.mrf.mxu0 }
 0x1d8   :  { %v2440_v62 = vpop.f32.mrf.mxu1  ;;  %v5403_v48 = vadd.f32 %v2438_v2, %v2326_v50  ;;  %v2328_v4 = vadd.f32 %v2327_v45, %v5334_v51 }
 0x1d9   :  { %v2329_v23 = vpop.f32.mrf.mxu0 }
 0x1da   :  { %v2442_v3 = vpop.f32.mrf.mxu1  ;;  %v5406_v38 = vadd.f32 %v2440_v62, %v2328_v4  ;;  %v2330_v55 = vadd.f32 %v2329_v23, %v5330_v29  ;;  %v2280_v23 = vadd.f32 %v5340_v35, %v5330_v29 }
 0x1db   :  { %v5409_v18 = vpop.f32.mrf.mxu0 }
 0x1dc   :  { %v5411_v36 = vpop.f32.mrf.mxu1  ;;  %v5413_v17 = vadd.f32 %v2442_v3, %v2330_v55 }
 0x1dd   :  { %v2335_v49 = vpop.f32.mrf.mxu0 }
 0x1de   :  { %v2448_v42 = vpop.f32.mrf.mxu1  ;;  %v2336_v15 = vadd.f32 %v2335_v49, %v5330_v29 }
 0x1df   :  { %v2337_v61 = vpop.f32.mrf.mxu0 }
 0x1e0   :  { %v2450_v52 = vpop.f32.mrf.mxu1  ;;  %v5416_v60 = vadd.f32 %v2448_v42, %v2336_v15  ;;  %v2338_v16 = vadd.f32 %v2337_v61, %v5334_v51  ;;  %v2282_v42 = vadd.f32 %v5346_v44, %v5334_v51 }
 0x1e1   :  { %v2339_v39 = vpop.f32.mrf.mxu0 }
 0x1e2   :  { %v2452_v5 = vpop.f32.mrf.mxu1  ;;  %v5419_v10 = vadd.f32 %v2450_v52, %v2338_v16  ;;  %v2340_v43 = vadd.f32 %v2339_v39, %v5330_v29  ;;  %v2393_v16 = vadd.f32 %v5342_v14, %v2280_v23 }
 0x1e3   :  { %v5422_v24 = vpop.f32.mrf.mxu0 }
 0x1e4   :  { %v5424_v0 = vpop.f32.mrf.mxu1  ;;  %v5426_v1 = vadd.f32 %v2452_v5, %v2340_v43 }
 0x1e5   :  { %v2345_v40 = vpop.f32.mrf.mxu0 }
 0x1e6   :  { %v2458_v30 = vpop.f32.mrf.mxu1  ;;  %v2346_v31 = vadd.f32 %v2345_v40, %v5330_v29  ;;  %v2395_v40 = vadd.f32 %v5348_v22, %v2282_v42 }
 0x1e7   :  { %v2347_v13 = vpop.f32.mrf.mxu0 }
 0x1e8   :  { %v2460_v9 = vpop.f32.mrf.mxu1  ;;  %v5429_v37 = vadd.f32 %v2458_v30, %v2346_v31  ;;  %v2348_v58 = vadd.f32 %v2347_v13, %v5334_v51 }
 0x1e9   :  { %v2349_v46 = vpop.f32.mrf.mxu0 }
 0x1ea   :  { %v2462_v2 = vpop.f32.mrf.mxu1  ;;  %v5432_v50 = vadd.f32 %v2460_v9, %v2348_v58  ;;  %v2350_v45 = vadd.f32 %v2349_v46, %v5330_v29 }
 0x1eb   :  { %v5435_v62 = vpop.f32.mrf.mxu0 }
 0x1ec   :  { %v5437_v4 = vpop.f32.mrf.mxu1  ;;  %v5441_v3 = vadd.f32 %v2462_v2, %v2350_v45 }
 0x1ed   :  { %v2501_v55 = vpop.f32.mrf.mxu0 }
 0x1ee   :  { %5711 = vst [vmem:[#allocation17_spill] sm:$0xff] %v5441_v3  ;;  %v2614_v49 = vpop.f32.mrf.mxu1  ;;  %v2502_v15 = vadd.f32 %v2501_v55, %v5337_v11  ;;  %v2292_v11 = vadd.f32 %v5357_v32, %v5334_v51 }
 0x1ef   :  { %v2503_v61 = vpop.f32.mrf.mxu0 }
 0x1f0   :  { %v2616_v52 = vpop.f32.mrf.mxu1  ;;  %v2504_v39 = vadd.f32 %v2503_v61, %v5344_v20  ;;  %v2615_v30 = vadd.f32 %v2614_v49, %v2502_v15 }
 0x1f1   :  { %v2505_v5 = vpop.f32.mrf.mxu0 }
 0x1f2   :  { %v2618_v43 = vpop.f32.mrf.mxu1  ;;  %v2617_v29 = vadd.f32 %v2616_v52, %v2504_v39  ;;  %v2506_v35 = vadd.f32 %v2505_v5, %v2393_v16  ;;  %v2695_v23 = vmul.f32 0.2, %v2615_v30  ;;  %v2405_v39 = vadd.f32 %v5359_v6, %v2292_v11 }
 0x1f3   :  { %v2507_v31 = vpop.f32.mrf.mxu0 }
 0x1f4   :  { %v2620_v13 = vpop.f32.mrf.mxu1  ;;  %v2619_v9 = vadd.f32 %v2618_v43, %v2506_v35  ;;  %v2508_v58 = vadd.f32 %v2507_v31, %v2395_v40  ;;  %v2696_v2 = vmul.f32 0.2, %v2617_v29  ;;  %v2759_v43 = vmax.f32 %v2615_v30, %v2695_v23 }
 0x1f5   :  { %v2511_v44 = vpop.f32.mrf.mxu0 }
 0x1f6   :  { %v2624_v46 = vpop.f32.mrf.mxu1  ;;  %v2699_v14 = vmul.f32 0.2, %v2619_v9  ;;  %v2621_v45 = vadd.f32 %v2620_v13, %v2508_v58  ;;  %v2512_v20 = vadd.f32 %v2511_v44, %v5351_v47  ;;  %v2760_v32 = vmax.f32 %v2617_v29, %v2696_v2 }
 0x1f7   :  { %v2513_v55 = vpop.f32.mrf.mxu0 }
 0x1f8   :  { %v2626_v22 = vpop.f32.mrf.mxu1  ;;  %v2700_v42 = vmul.f32 0.2, %v2621_v45  ;;  %v2514_v49 = vadd.f32 %v2513_v55, %v5354_v27  ;;  %v2763_v15 = vmax.f32 %v2619_v9, %v2699_v14  ;;  %v2625_v61 = vadd.f32 %v2624_v46, %v2512_v20 }
 0x1f9   :  { %v2515_v52 = vpop.f32.mrf.mxu0  ;;  %v2302_v46 = vadd.f32 %v5370_v8, %v5334_v51 }
 0x1fa   :  { %v2628_v16 = vpop.f32.mrf.mxu1  ;;  %v2764_v5 = vmax.f32 %v2621_v45, %v2700_v42  ;;  %v2627_v40 = vadd.f32 %v2626_v22, %v2514_v49  ;;  %v2516_v35 = vadd.f32 %v2515_v52, %v5361_v56  ;;  %v2823_v44 = vpack.c.bf16 %v2763_v15, %v2759_v43 }
 0x1fb   :  { %v2517_v31 = vpop.f32.mrf.mxu0  ;;  %v2703_v12 = vmul.f32 0.2, %v2625_v61  ;;  %v2415_v49 = vadd.f32 %v5372_v59, %v2302_v46 }
 0x1fc   :  { %v2630_v47 = vpop.f32.mrf.mxu1  ;;  %v2518_v13 = vadd.f32 %v2517_v31, %v2405_v39  ;;  %v2824_v58 = vpack.c.bf16 %v2764_v5, %v2760_v32  ;;  %v2629_v3 = vadd.f32 %v2628_v16, %v2516_v35  ;;  %v2704_v29 = vmul.f32 0.2, %v2627_v40 }
 0x1fd   :  { %v2521_v27 = vpop.f32.mrf.mxu0  ;;  %v2767_v23 = vmax.f32 %v2625_v61, %v2703_v12 }
 0x1fe   :  { %v2634_v9 = vpop.f32.mrf.mxu1  ;;  %v2631_v14 = vadd.f32 %v2630_v47, %v2518_v13  ;;  %v2522_v6 = vadd.f32 %v2521_v27, %v5364_v7  ;;  %3394 = vmatprep.mubr.bf16.mxu1 %v2824_v58  ;;  %v2707_v30 = vmul.f32 0.2, %v2629_v3  ;;  %v2768_v52 = vmax.f32 %v2627_v40, %v2704_v29 }
 0x1ff   :  { %v2523_v11 = vpop.f32.mrf.mxu0  ;;  %3395 = vmatmul.mubr.bf16.vlgmr.msra.gmra.mxu1 %v2823_v44 }
 0x200   :  { %v2636_v56 = vpop.f32.mrf.mxu1  ;;  %v2708_v2 = vmul.f32 0.2, %v2631_v14  ;;  %v2635_v45 = vadd.f32 %v2634_v9, %v2522_v6  ;;  %v2524_v20 = vadd.f32 %v2523_v11, %v5367_v21  ;;  %v2771_v55 = vmax.f32 %v2629_v3, %v2707_v30 }
 0x201   :  { %v2525_v22 = vpop.f32.mrf.mxu0  ;;  %v2312_v21 = vadd.f32 %v5383_v41, %v5334_v51 }
 0x202   :  { %v2638_v42 = vpop.f32.mrf.mxu1  ;;  %v2772_v8 = vmax.f32 %v2631_v14, %v2708_v2  ;;  %v2637_v15 = vadd.f32 %v2636_v56, %v2524_v20  ;;  %v2526_v7 = vadd.f32 %v2525_v22, %v5374_v26  ;;  %v2827_v16 = vpack.c.bf16 %v2771_v55, %v2767_v23 }
 0x203   :  { %v2527_v39 = vpop.f32.mrf.mxu0  ;;  %v2711_v5 = vmul.f32 0.2, %v2635_v45  ;;  %v2425_v6 = vadd.f32 %v5385_v54, %v2312_v21 }
 0x204   :  { %v2640_v32 = vpop.f32.mrf.mxu1  ;;  %v2639_v43 = vadd.f32 %v2638_v42, %v2526_v7  ;;  %v2528_v35 = vadd.f32 %v2527_v39, %v2415_v49  ;;  %v2828_v61 = vpack.c.bf16 %v2772_v8, %v2768_v52  ;;  %v2712_v31 = vmul.f32 0.2, %v2637_v15 }
 0x205   :  { %v2531_v12 = vpop.f32.mrf.mxu0  ;;  %v2775_v58 = vmax.f32 %v2635_v45, %v2711_v5  ;;  %v2322_v49 = vadd.f32 %v5396_v57, %v5334_v51 }
 0x206   :  { %v2644_v3 = vpop.f32.mrf.mxu1  ;;  %v2715_v47 = vmul.f32 0.2, %v2639_v43  ;;  %v2641_v59 = vadd.f32 %v2640_v32, %v2528_v35  ;;  %v2532_v13 = vadd.f32 %v2531_v12, %v5377_v25  ;;  %3404 = vmatprep.mubr.bf16.mxu1 %v2828_v61  ;;  %v2776_v29 = vmax.f32 %v2637_v15, %v2712_v31 }
 0x207   :  { %v2533_v26 = vpop.f32.mrf.mxu0  ;;  %3405 = vmatmul.mubr.bf16.gmra.mxu1 %v2827_v16  ;;  %v2435_v12 = vadd.f32 %v5398_v34, %v2322_v49 }
 0x208   :  { %v2646_v40 = vpop.f32.mrf.mxu1  ;;  %v2779_v44 = vmax.f32 %v2639_v43, %v2715_v47  ;;  %v2716_v27 = vmul.f32 0.2, %v2641_v59  ;;  %v2534_v9 = vadd.f32 %v2533_v26, %v5380_v19  ;;  %v2645_v46 = vadd.f32 %v2644_v3, %v2532_v13 }
 0x209   :  { %v2535_v14 = vpop.f32.mrf.mxu0 }
 0x20a   :  { %v2648_v41 = vpop.f32.mrf.mxu1  ;;  %v2831_v30 = vpack.c.bf16 %v2779_v44, %v2775_v58  ;;  %v2780_v11 = vmax.f32 %v2641_v59, %v2716_v27  ;;  %v2647_v56 = vadd.f32 %v2646_v40, %v2534_v9  ;;  %v2536_v25 = vadd.f32 %v2535_v14, %v5387_v28 }
 0x20b   :  { %v2537_v2 = vpop.f32.mrf.mxu0  ;;  %v2719_v55 = vmul.f32 0.2, %v2645_v46 }
 0x20c   :  { %v2650_v20 = vpop.f32.mrf.mxu1  ;;  %v2538_v23 = vadd.f32 %v2537_v2, %v2425_v6  ;;  %v2832_v45 = vpack.c.bf16 %v2780_v11, %v2776_v29  ;;  %v2649_v22 = vadd.f32 %v2648_v41, %v2536_v25  ;;  %v2720_v15 = vmul.f32 0.2, %v2647_v56 }
 0x20d   :  { %v2541_v42 = vpop.f32.mrf.mxu0  ;;  %v2783_v5 = vmax.f32 %v2645_v46, %v2719_v55 }
 0x20e   :  { %v2654_v19 = vpop.f32.mrf.mxu1  ;;  %v2651_v8 = vadd.f32 %v2650_v20, %v2538_v23  ;;  %v2542_v54 = vadd.f32 %v2541_v42, %v5390_v53  ;;  %3414 = vmatprep.mubr.bf16.mxu1 %v2832_v45  ;;  %v2723_v7 = vmul.f32 0.2, %v2649_v22  ;;  %v2784_v61 = vmax.f32 %v2647_v56, %v2720_v15 }
 0x20f   :  { %v2543_v52 = vpop.f32.mrf.mxu0  ;;  %3415 = vmatmul.mubr.bf16.gmra.mxu1 %v2831_v30 }
 0x210   :  { %v2656_v16 = vpop.f32.mrf.mxu1  ;;  %v2724_v28 = vmul.f32 0.2, %v2651_v8  ;;  %v2655_v39 = vadd.f32 %v2654_v19, %v2542_v54  ;;  %v2544_v32 = vadd.f32 %v2543_v52, %v5393_v33  ;;  %v2787_v43 = vmax.f32 %v2649_v22, %v2723_v7 }
 0x211   :  { %v2545_v35 = vpop.f32.mrf.mxu0  ;;  %v2332_v33 = vadd.f32 %v5409_v18, %v5334_v51  ;;  %v2342_v7 = vadd.f32 %v5422_v24, %v5334_v51 }
 0x212   :  { %v2658_v21 = vpop.f32.mrf.mxu1  ;;  %v2788_v57 = vmax.f32 %v2651_v8, %v2724_v28  ;;  %v2657_v3 = vadd.f32 %v2656_v16, %v2544_v32  ;;  %v2546_v53 = vadd.f32 %v2545_v35, %v5400_v63  ;;  %v2835_v31 = vpack.c.bf16 %v2787_v43, %v2783_v5 }
 0x213   :  { %v2547_v47 = vpop.f32.mrf.mxu0  ;;  %v2727_v13 = vmul.f32 0.2, %v2655_v39  ;;  %v2445_v2 = vadd.f32 %v5411_v36, %v2332_v33 }
 0x214   :  { %v2660_v59 = vpop.f32.mrf.mxu1  ;;  %v2659_v26 = vadd.f32 %v2658_v21, %v2546_v53  ;;  %v2548_v40 = vadd.f32 %v2547_v47, %v2435_v12  ;;  %v2836_v27 = vpack.c.bf16 %v2788_v57, %v2784_v61  ;;  %v2728_v9 = vmul.f32 0.2, %v2657_v3 }
 0x215   :  { %v2551_v58 = vpop.f32.mrf.mxu0  ;;  %v2791_v6 = vmax.f32 %v2655_v39, %v2727_v13 }
 0x216   :  { %v2664_v44 = vpop.f32.mrf.mxu1  ;;  %v2731_v46 = vmul.f32 0.2, %v2659_v26  ;;  %v2661_v34 = vadd.f32 %v2660_v59, %v2548_v40  ;;  %v2552_v14 = vadd.f32 %v2551_v58, %v5403_v48  ;;  %3424 = vmatprep.mubr.bf16.mxu1 %v2836_v27  ;;  %v2792_v20 = vmax.f32 %v2657_v3, %v2728_v9 }
 0x217   :  { %v2553_v63 = vpop.f32.mrf.mxu0  ;;  %3425 = vmatmul.mubr.bf16.gmra.mxu1 %v2835_v31  ;;  %v2455_v3 = vadd.f32 %v5424_v0, %v2342_v7 }
 0x218   :  { %v2666_v41 = vpop.f32.mrf.mxu1  ;;  %v2795_v29 = vmax.f32 %v2659_v26, %v2731_v46  ;;  %v2732_v30 = vmul.f32 0.2, %v2661_v34  ;;  %v2554_v11 = vadd.f32 %v2553_v63, %v5406_v38  ;;  %v2665_v56 = vadd.f32 %v2664_v44, %v2552_v14 }
 0x219   :  { %v2555_v25 = vpop.f32.mrf.mxu0 }
 0x21a   :  { %v2668_v18 = vpop.f32.mrf.mxu1  ;;  %v2839_v23 = vpack.c.bf16 %v2795_v29, %v2791_v6  ;;  %v2796_v45 = vmax.f32 %v2661_v34, %v2732_v30  ;;  %v2667_v55 = vadd.f32 %v2666_v41, %v2554_v11  ;;  %v2556_v48 = vadd.f32 %v2555_v25, %v5413_v17 }
 0x21b   :  { %v2557_v22 = vpop.f32.mrf.mxu0  ;;  %v2735_v8 = vmul.f32 0.2, %v2665_v56 }
 0x21c   :  { %v2670_v42 = vpop.f32.mrf.mxu1  ;;  %v2558_v19 = vadd.f32 %v2557_v22, %v2445_v2  ;;  %v2840_v49 = vpack.c.bf16 %v2796_v45, %v2792_v20  ;;  %v2669_v54 = vadd.f32 %v2668_v18, %v2556_v48  ;;  %v2736_v16 = vmul.f32 0.2, %v2667_v55  ;;  %v5712_v2 = vld [vmem:[#allocation17_spill] sm:$0xff] }
 0x21d   :  { %v2561_v15 = vpop.f32.mrf.mxu0  ;;  %v2799_v35 = vmax.f32 %v2665_v56, %v2735_v8 }
 0x21e   :  { %v2674_v38 = vpop.f32.mrf.mxu1  ;;  %v2671_v52 = vadd.f32 %v2670_v42, %v2558_v19  ;;  %v2562_v36 = vadd.f32 %v2561_v15, %v5416_v60  ;;  %3434 = vmatprep.mubr.bf16.mxu1 %v2840_v49  ;;  %v2739_v28 = vmul.f32 0.2, %v2669_v54  ;;  %v2800_v61 = vmax.f32 %v2667_v55, %v2736_v16 }
 0x21f   :  { %v2563_v39 = vpop.f32.mrf.mxu0  ;;  %3435 = vmatmul.mubr.bf16.gmra.mxu1 %v2839_v23 }
 0x220   :  { %v2676_v32 = vpop.f32.mrf.mxu1  ;;  %v2740_v17 = vmul.f32 0.2, %v2671_v52  ;;  %v2675_v5 = vadd.f32 %v2674_v38, %v2562_v36  ;;  %v2564_v43 = vadd.f32 %v2563_v39, %v5419_v10  ;;  %v2803_v21 = vmax.f32 %v2669_v54, %v2739_v28  ;;  %v3631_v39 = vld [vmem:[#allocation2] sm:$0x1] }
 0x221   :  { %v2565_v12 = vpop.f32.mrf.mxu0  ;;  %v2352_v10 = vadd.f32 %v5435_v62, %v5334_v51  ;;  %4251 = vpush %v3631_v39 }
 0x222   :  { %v2678_v57 = vpop.f32.mrf.mxu1  ;;  %v2804_v24 = vmax.f32 %v2671_v52, %v2740_v17  ;;  %v2677_v53 = vadd.f32 %v2676_v32, %v2564_v43  ;;  %v2566_v60 = vadd.f32 %v2565_v12, %v5426_v1  ;;  %v2843_v31 = vpack.c.bf16 %v2803_v21, %v2799_v35 }
 0x223   :  { %v2567_v47 = vpop.f32.mrf.mxu0  ;;  %v2743_v13 = vmul.f32 0.2, %v2675_v5  ;;  %v2465_v29 = vadd.f32 %v5437_v4, %v2352_v10 }
 0x224   :  { %v2680_v59 = vpop.f32.mrf.mxu1  ;;  %v2679_v26 = vadd.f32 %v2678_v57, %v2566_v60  ;;  %v2568_v40 = vadd.f32 %v2567_v47, %v2455_v3  ;;  %v2844_v44 = vpack.c.bf16 %v2804_v24, %v2800_v61  ;;  %v2744_v27 = vmul.f32 0.2, %v2677_v53  ;;  %v2917_v60 = vld [vmem:[%s5689_s4] sm:$0x3] }
 0x225   :  { %v2571_v33 = vpop.f32.mrf.mxu0  ;;  %v2807_v14 = vmax.f32 %v2675_v5, %v2743_v13 }
 0x226   :  { %v2684_v58 = vpop.f32.mrf.mxu1  ;;  %v2747_v9 = vmul.f32 0.2, %v2679_v26  ;;  %v2681_v0 = vadd.f32 %v2680_v59, %v2568_v40  ;;  %v2572_v46 = vadd.f32 %v2571_v33, %v5429_v37  ;;  %3444 = vmatprep.mubr.bf16.mxu1 %v2844_v44  ;;  %v2808_v11 = vmax.f32 %v2677_v53, %v2744_v27  ;;  %v5714_v59 = vld [vmem:[#allocation16_spill] sm:$0xff] }
 0x227   :  { %v2573_v1 = vpop.f32.mrf.mxu0  ;;  %3445 = vmatmul.mubr.bf16.gmra.mxu1 %v2843_v31  ;;  %v5713_v31 = vld [vmem:[#allocation14_spill] sm:$0xff]  ;;  %v5512_v13 = vrot.slane %v2917_v60, %v5714_v59  ;;  %v3539_v44 = vld [vmem:[%s5690_s5] sm:$0x3]  ;;  %s4962_s5 = smov [#allocation9]  }
 0x228   :  { %v2686_v34 = vpop.f32.mrf.mxu1  ;;  %v2811_v63 = vmax.f32 %v2679_v26, %v2747_v9  ;;  %v2748_v41 = vmul.f32 0.2, %v2681_v0  ;;  %v2574_v6 = vadd.f32 %v2573_v1, %v5432_v50  ;;  %v2685_v51 = vadd.f32 %v2684_v58, %v2572_v46  ;;  %s3881_s25 = sshll.u32 %s4962_s5, 4  ;;  %s3882_s25 = int_to_ptr.vmem [resolvable:$true] %s3881_s25 }
 0x229   :  { %v2575_v62 = vpop.f32.mrf.mxu0  ;;  %v5509_v47 = vrot.slane %v2917_v60, %v5713_v31  ;;  %s4926_s26 = scalar_lea.vmem %s3882_s25, 16  ;;  %s4930_s27 = scalar_lea.vmem %s3882_s25, 32 }
 0x22a   :  { %v2688_v30 = vpop.f32.mrf.mxu1  ;;  %v2847_v56 = vpack.c.bf16 %v2811_v63, %v2807_v14  ;;  %v2812_v25 = vmax.f32 %v2681_v0, %v2748_v41  ;;  %v2687_v18 = vadd.f32 %v2686_v34, %v2574_v6  ;;  %v2576_v37 = vadd.f32 %v2575_v62, %v5712_v2  ;;  %p4927_p1 = scmp.ne.s32.totalorder %s3882_s25, %s4926_s26  ;;  %p4931_p2 = scmp.lt.s32.totalorder %s3882_s25, %s3882_s25 }
 0x22b   :  { %v2577_v20 = vpop.f32.mrf.mxu0  ;;  %v2751_v55 = vmul.f32 0.2, %v2685_v51  ;;  %v5526_v63 = vrot.slane %v3539_v44, %v5713_v31  ;;  %p4932_p3 = scmp.lt.s32.totalorder %s4930_s27, %s4926_s26 }
 0x22c   :  { %v2578_v23 = vadd.f32 %v2577_v20, %v2465_v29  ;;  %v2848_v45 = vpack.c.bf16 %v2812_v25, %v2808_v11  ;;  %v2689_v48 = vadd.f32 %v2688_v30, %v2576_v37  ;;  %v2690_v22 = vpop.f32.mrf.mxu1  ;;  %v2752_v42 = vmul.f32 0.2, %v2687_v18 }
 0x22d   :  { %v2815_v49 = vmax.f32 %v2685_v51, %v2751_v55  ;;  %v5529_v51 = vrot.slane %v3539_v44, %v5714_v59  ;;  %p4933_p4 = por %p4932_p3, %p4931_p2 }
 0x22e   :  { %v2691_v50 = vadd.f32 %v2690_v22, %v2578_v23  ;;  %3454 = vmatprep.mubr.bf16.mxu1 %v2848_v45  ;;  %v2755_v19 = vmul.f32 0.2, %v2689_v48  ;;  %v2816_v54 = vmax.f32 %v2687_v18, %v2752_v42 }
 0x22f   :  { %3455 = vmatmul.mubr.bf16.gmra.mxu1 %v2847_v56  ;;  %p4934_p5 = pnand %p4933_p4, %p4927_p1 }
 0x230   :  { %v2756_v4 = vmul.f32 0.2, %v2691_v50  ;;  %v2819_v8 = vmax.f32 %v2689_v48, %v2755_v19 }
 0x232   :  { %v2820_v15 = vmax.f32 %v2691_v50, %v2756_v4  ;;  %v2851_v38 = vpack.c.bf16 %v2819_v8, %v2815_v49 }
 0x234   :  { %v2852_v7 = vpack.c.bf16 %v2820_v15, %v2816_v54 }
 0x236   :  { %3464 = vmatprep.mubr.bf16.mxu1 %v2852_v7 }
 0x237   :  { %3465 = vmatmul.mubr.bf16.gmra.mxu1 %v2851_v38 }
 0x23f   :  { %v3283_v52 = vpop.f32.mrf.mxu0 }
 0x240   :  { %v3284_v40 = vadd.f32 %v3283_v52, %v5509_v47 }
 0x241   :  { %v3285_v36 = vpop.f32.mrf.mxu0 }
 0x242   :  { %v3286_v33 = vadd.f32 %v3285_v36, %v5512_v13 }
 0x243   :  { %v3287_v16 = vpop.f32.mrf.mxu0 }
 0x244   :  { %v3288_v0 = vadd.f32 %v3287_v16, %v5509_v47 }
 0x245   :  { %v3289_v28 = vpop.f32.mrf.mxu0 }
 0x246   :  { %v3290_v34 = vadd.f32 %v3289_v28, %v5512_v13 }
 0x247   :  { %v3293_v32 = vpop.f32.mrf.mxu0 }
 0x248   :  { %v3294_v18 = vadd.f32 %v3293_v32, %v5509_v47 }
 0x249   :  { %v3295_v17 = vpop.f32.mrf.mxu0 }
 0x24a   :  { %v3296_v55 = vadd.f32 %v3295_v17, %v5512_v13 }
 0x24b   :  { %v3297_v5 = vpop.f32.mrf.mxu0 }
 0x24c   :  { %v3298_v4 = vadd.f32 %v3297_v5, %v5509_v47 }
 0x24d   :  { %v3299_v43 = vpop.f32.mrf.mxu0 }
 0x24e   :  { %v3300_v7 = vadd.f32 %v3299_v43, %v5512_v13 }
 0x24f   :  { %v3303_v35 = vpop.f32.mrf.mxu0 }
 0x250   :  { %v3304_v17 = vadd.f32 %v3303_v35, %v5509_v47 }
 0x251   :  { %v5491_v21 = vpop.f32.mrf.mxu0 }
 0x252   :  { %v3306_v59 = vadd.f32 %v5491_v21, %v5512_v13  ;;  %s4252_s4 = spop %4251 }
 0x253   :  { %v5493_v12 = vpop.f32.mrf.mxu0 }
 0x254   :  { %v3308_v35 = vadd.f32 %v5493_v12, %v5509_v47 }
 0x255   :  { %v5495_v57 = vpop.f32.mrf.mxu0 }
 0x256   :  { %v3310_v21 = vadd.f32 %v5495_v57, %v5512_v13 }
 0x257   :  { %v5497_v3 = vpop.f32.mrf.mxu0 }
 0x258   :  { %v3314_v12 = vadd.f32 %v5497_v3, %v5509_v47 }
 0x259   :  { %v5499_v24 = vpop.f32.mrf.mxu0 }
 0x25a   :  { %v3316_v57 = vadd.f32 %v5499_v24, %v5512_v13 }
 0x25b   :  { %v5501_v53 = vpop.f32.mrf.mxu0 }
 0x25c   :  { %v3318_v3 = vadd.f32 %v5501_v53, %v5509_v47 }
 0x25d   :  { %v5506_v61 = vpop.f32.mrf.mxu0 }
 0x25e   :  { %v3320_v24 = vadd.f32 %v5506_v61, %v5512_v13 }
 0x25f   :  { %v5514_v26 = vpop.f32.mrf.mxu0 }
 0x260   :  { %v3324_v53 = vadd.f32 %v5514_v26, %v5509_v47 }
 0x261   :  { %v5521_v27 = vpop.f32.mrf.mxu0 }
 0x262   :  { %v3326_v61 = vadd.f32 %v5521_v27, %v5512_v13 }
 0x263   :  { %v5531_v62 = vpop.f32.mrf.mxu0 }
 0x264   :  { %v3328_v26 = vadd.f32 %v5531_v62, %v5509_v47 }
 0x265   :  { %v5537_v48 = vpop.f32.mrf.mxu0 }
 0x266   :  { %v3330_v27 = vadd.f32 %v5537_v48, %v5512_v13 }
 0x267   :  { %v5543_v52 = vpop.f32.mrf.mxu0 }
 0x268   :  { %v3334_v62 = vadd.f32 %v5543_v52, %v5509_v47 }
 0x269   :  { %v5549_v43 = vpop.f32.mrf.mxu0 }
 0x26a   :  { %v3336_v48 = vadd.f32 %v5549_v43, %v5512_v13 }
 0x2bf   :  { %v3396_v10 = vpop.f32.mrf.mxu1 }
 0x2c0   :  { %v3397_v58 = vadd.f32 %v3396_v10, %v3284_v40 }
 0x2c1   :  { %v3398_v9 = vpop.f32.mrf.mxu1 }
 0x2c2   :  { %v3475_v46 = vmul.f32 0.2, %v3397_v58  ;;  %v3399_v1 = vadd.f32 %v3398_v9, %v3286_v33 }
 0x2c3   :  { %v3400_v14 = vpop.f32.mrf.mxu1 }
 0x2c4   :  { %v3507_v41 = vmax.f32 %v3397_v58, %v3475_v46  ;;  %v3476_v6 = vmul.f32 0.2, %v3399_v1  ;;  %v3401_v29 = vadd.f32 %v3400_v14, %v3288_v0 }
 0x2c5   :  { %v3402_v30 = vpop.f32.mrf.mxu1 }
 0x2c6   :  { %v3508_v11 = vmax.f32 %v3399_v1, %v3476_v6  ;;  %v3477_v56 = vmul.f32 0.2, %v3401_v29  ;;  %v3403_v25 = vadd.f32 %v3402_v30, %v3290_v34  ;;  %v3551_v23 = vmul.f32 %v5526_v63, %v3507_v41 }
 0x2c7   :  { %v3406_v20 = vpop.f32.mrf.mxu1 }
 0x2c8   :  { %v3509_v2 = vmax.f32 %v3401_v29, %v3477_v56  ;;  %v3478_v37 = vmul.f32 0.2, %v3403_v25  ;;  %v3552_v45 = vmul.f32 %v5529_v51, %v3508_v11  ;;  %v3407_v22 = vadd.f32 %v3406_v20, %v3294_v18  ;;  %v5557_v29 = vpop.f32.mrf.mxu0 }
 0x2c9   :  { %v3408_v50 = vpop.f32.mrf.mxu1  ;;  %v3338_v52 = vadd.f32 %v5557_v29, %v5509_v47 }
 0x2ca   :  { %v3510_v42 = vmax.f32 %v3403_v25, %v3478_v37  ;;  %v3583_v19 = vadd.f32 %v3552_v45, %v3551_v23  ;;  %v3479_v49 = vmul.f32 0.2, %v3407_v22  ;;  %v3409_v8 = vadd.f32 %v3408_v50, %v3296_v55 }
 0x2cb   :  { %v3410_v54 = vpop.f32.mrf.mxu1  ;;  %v3553_v15 = vmul.f32 %v5526_v63, %v3509_v2 }
 0x2cc   :  { %3584 = vadd.xlane.f32.xlu0 %v3583_v19  ;;  %v3554_v38 = vmul.f32 %v5529_v51, %v3510_v42  ;;  %v3511_v36 = vmax.f32 %v3407_v22, %v3479_v49  ;;  %v3480_v16 = vmul.f32 0.2, %v3409_v8  ;;  %v3411_v28 = vadd.f32 %v3410_v54, %v3298_v4  ;;  %v5565_v22 = vpop.f32.mrf.mxu0 }
 0x2cd   :  { %v3412_v39 = vpop.f32.mrf.mxu1  ;;  %v3340_v43 = vadd.f32 %v5565_v22, %v5512_v13 }
 0x2ce   :  { %v3586_v32 = vadd.f32 %v3554_v38, %v3553_v15  ;;  %v3512_v5 = vmax.f32 %v3409_v8, %v3480_v16  ;;  %v3481_v60 = vmul.f32 0.2, %v3411_v28  ;;  %v3413_v31 = vadd.f32 %v3412_v39, %v3300_v7  ;;  %v5573_v16 = vpop.f32.mrf.mxu0 }
 0x2cf   :  { %v3416_v40 = vpop.f32.mrf.mxu1  ;;  %v3555_v10 = vmul.f32 %v5526_v63, %v3511_v36  ;;  %v3344_v29 = vadd.f32 %v5573_v16, %v5509_v47 }
 0x2d0   :  { %3587 = vadd.xlane.f32.xlu0 %v3586_v32  ;;  %v3513_v33 = vmax.f32 %v3411_v28, %v3481_v60  ;;  %v3482_v58 = vmul.f32 0.2, %v3413_v31  ;;  %v3417_v44 = vadd.f32 %v3416_v40, %v3304_v17  ;;  %v3556_v9 = vmul.f32 %v5529_v51, %v3512_v5 }
 0x2d1   :  { %v3418_v0 = vpop.f32.mrf.mxu1 }
 0x2d2   :  { %v3514_v46 = vmax.f32 %v3413_v31, %v3482_v58  ;;  %v3483_v1 = vmul.f32 0.2, %v3417_v44  ;;  %v3419_v34 = vadd.f32 %v3418_v0, %v3306_v59  ;;  %v3589_v14 = vadd.f32 %v3556_v9, %v3555_v10  ;;  %v3345_v58 = vpop.f32.mrf.mxu0 }
 0x2d3   :  { %v3420_v41 = vpop.f32.mrf.mxu1  ;;  %v3557_v6 = vmul.f32 %v5526_v63, %v3513_v33  ;;  %v3346_v22 = vadd.f32 %v3345_v58, %v5512_v13 }
 0x2d4   :  { %v3515_v30 = vmax.f32 %v3417_v44, %v3483_v1  ;;  %v3484_v11 = vmul.f32 0.2, %v3419_v34  ;;  %v3421_v56 = vadd.f32 %v3420_v41, %v3308_v35  ;;  %3590 = vadd.xlane.f32.xlu1 %v3589_v14  ;;  %v3558_v25 = vmul.f32 %v5529_v51, %v3514_v46 }
 0x2d5   :  { %v3422_v18 = vpop.f32.mrf.mxu1 }
 0x2d6   :  { %v3516_v2 = vmax.f32 %v3419_v34, %v3484_v11  ;;  %v3485_v37 = vmul.f32 0.2, %v3421_v56  ;;  %v3423_v20 = vadd.f32 %v3422_v18, %v3310_v21  ;;  %v3592_v23 = vadd.f32 %v3558_v25, %v3557_v6 }
 0x2d7   :  { %v3426_v45 = vpop.f32.mrf.mxu1  ;;  %v3559_v55 = vmul.f32 %v5526_v63, %v3515_v30  ;;  %v3347_v30 = vpop.f32.mrf.mxu0 }
 0x2d8   :  { %v3517_v42 = vmax.f32 %v3421_v56, %v3485_v37  ;;  %v3486_v50 = vmul.f32 0.2, %v3423_v20  ;;  %v3427_v19 = vadd.f32 %v3426_v45, %v3314_v12  ;;  %3593 = vadd.xlane.f32.xlu1 %v3592_v23  ;;  %v3560_v4 = vmul.f32 %v5529_v51, %v3516_v2 }
 0x2d9   :  { %v3428_v49 = vpop.f32.mrf.mxu1 }
 0x2da   :  { %v3518_v8 = vmax.f32 %v3423_v20, %v3486_v50  ;;  %v3487_v54 = vmul.f32 0.2, %v3427_v19  ;;  %v3429_v15 = vadd.f32 %v3428_v49, %v3316_v57  ;;  %v3595_v38 = vadd.f32 %v3560_v4, %v3559_v55  ;;  %v3349_v55 = vpop.f32.mrf.mxu0 }
 0x2db   :  { %v3430_v7 = vpop.f32.mrf.mxu1  ;;  %v3561_v36 = vmul.f32 %v5526_v63, %v3517_v42 }
 0x2dc   :  { %v3519_v28 = vmax.f32 %v3427_v19, %v3487_v54  ;;  %v3488_v39 = vmul.f32 0.2, %v3429_v15  ;;  %v3431_v32 = vadd.f32 %v3430_v7, %v3318_v3  ;;  %3596 = vadd.xlane.f32.xlu0 %v3595_v38  ;;  %v3562_v17 = vmul.f32 %v5529_v51, %v3518_v8  ;;  %v3353_v7 = vpop.f32.mrf.mxu0 }
 0x2dd   :  { %v3432_v5 = vpop.f32.mrf.mxu1 }
 0x2de   :  { %v3520_v60 = vmax.f32 %v3429_v15, %v3488_v39  ;;  %v3489_v31 = vmul.f32 0.2, %v3431_v32  ;;  %v3433_v59 = vadd.f32 %v3432_v5, %v3320_v24  ;;  %v3598_v40 = vadd.f32 %v3562_v17, %v3561_v36 }
 0x2df   :  { %v3436_v10 = vpop.f32.mrf.mxu1  ;;  %v3563_v33 = vmul.f32 %v5526_v63, %v3519_v28 }
 0x2e0   :  { %v3521_v44 = vmax.f32 %v3431_v32, %v3489_v31  ;;  %v3490_v9 = vmul.f32 0.2, %v3433_v59  ;;  %v3437_v35 = vadd.f32 %v3436_v10, %v3324_v53  ;;  %3599 = vadd.xlane.f32.xlu1 %v3598_v40  ;;  %v3564_v0 = vmul.f32 %v5529_v51, %v3520_v60 }
 0x2e1   :  { %v3438_v46 = vpop.f32.mrf.mxu1 }
 0x2e2   :  { %v3522_v1 = vmax.f32 %v3433_v59, %v3490_v9  ;;  %v3491_v34 = vmul.f32 0.2, %v3437_v35  ;;  %v3439_v14 = vadd.f32 %v3438_v46, %v3326_v61  ;;  %v3601_v21 = vadd.f32 %v3564_v0, %v3563_v33  ;;  %v3355_v61 = vpop.f32.mrf.mxu0 }
 0x2e3   :  { %v3440_v41 = vpop.f32.mrf.mxu1  ;;  %v3565_v6 = vmul.f32 %v5526_v63, %v3521_v44 }
 0x2e4   :  { %v3523_v11 = vmax.f32 %v3437_v35, %v3491_v34  ;;  %v3492_v56 = vmul.f32 0.2, %v3439_v14  ;;  %v3441_v25 = vadd.f32 %v3440_v41, %v3328_v26  ;;  %3602 = vadd.xlane.f32.xlu0 %v3601_v21  ;;  %v3566_v12 = vmul.f32 %v5529_v51, %v3522_v1  ;;  %v3357_v21 = vpop.f32.mrf.mxu0 }
 0x2e5   :  { %v3442_v18 = vpop.f32.mrf.mxu1  ;;  %v3348_v35 = vadd.f32 %v3347_v30, %v5509_v47  ;;  %v3350_v34 = vadd.f32 %v3349_v55, %v5512_v13 }
 0x2e6   :  { %v3524_v2 = vmax.f32 %v3439_v14, %v3492_v56  ;;  %v3493_v37 = vmul.f32 0.2, %v3441_v25  ;;  %v3443_v20 = vadd.f32 %v3442_v18, %v3330_v27  ;;  %v3604_v23 = vadd.f32 %v3566_v12, %v3565_v6 }
 0x2e7   :  { %v3446_v57 = vpop.f32.mrf.mxu1  ;;  %v3567_v45 = vmul.f32 %v5526_v63, %v3523_v11  ;;  %v3354_v56 = vadd.f32 %v3353_v7, %v5509_v47 }
 0x2e8   :  { %v3525_v42 = vmax.f32 %v3441_v25, %v3493_v37  ;;  %v3494_v50 = vmul.f32 0.2, %v3443_v20  ;;  %v3447_v19 = vadd.f32 %v3446_v57, %v3334_v62  ;;  %3605 = vadd.xlane.f32.xlu1 %v3604_v23  ;;  %v3568_v4 = vmul.f32 %v5529_v51, %v3524_v2  ;;  %v3359_v23 = vpop.f32.mrf.mxu0 }
 0x2e9   :  { %v3448_v3 = vpop.f32.mrf.mxu1  ;;  %v3356_v2 = vadd.f32 %v3355_v61, %v5512_v13 }
 0x2ea   :  { %v3526_v49 = vmax.f32 %v3443_v20, %v3494_v50  ;;  %v3495_v8 = vmul.f32 0.2, %v3447_v19  ;;  %v3449_v54 = vadd.f32 %v3448_v3, %v3336_v48  ;;  %v3607_v15 = vadd.f32 %v3568_v4, %v3567_v45 }
 0x2eb   :  { %v3450_v38 = vpop.f32.mrf.mxu1  ;;  %v3569_v24 = vmul.f32 %v5526_v63, %v3525_v42  ;;  %v3358_v42 = vadd.f32 %v3357_v21, %v5509_v47 }
 0x2ec   :  { %v3527_v36 = vmax.f32 %v3447_v19, %v3495_v8  ;;  %v3496_v28 = vmul.f32 0.2, %v3449_v54  ;;  %v3451_v39 = vadd.f32 %v3450_v38, %v3338_v52  ;;  %3608 = vadd.xlane.f32.xlu0 %v3607_v15  ;;  %v3570_v32 = vmul.f32 %v5529_v51, %v3526_v49 }
 0x2ed   :  { %v3452_v17 = vpop.f32.mrf.mxu1  ;;  %v3360_v49 = vadd.f32 %v3359_v23, %v5512_v13 }
 0x2ee   :  { %v3528_v53 = vmax.f32 %v3449_v54, %v3496_v28  ;;  %v3497_v5 = vmul.f32 0.2, %v3451_v39  ;;  %v3453_v60 = vadd.f32 %v3452_v17, %v3340_v43  ;;  %v3610_v31 = vadd.f32 %v3570_v32, %v3569_v24 }
 0x2ef   :  { %v3456_v59 = vpop.f32.mrf.mxu1  ;;  %v3571_v40 = vmul.f32 %v5526_v63, %v3527_v36 }
 0x2f0   :  { %v3529_v10 = vmax.f32 %v3451_v39, %v3497_v5  ;;  %v3498_v33 = vmul.f32 0.2, %v3453_v60  ;;  %v3457_v44 = vadd.f32 %v3456_v59, %v3344_v29  ;;  %3611 = vadd.xlane.f32.xlu1 %v3610_v31  ;;  %v3572_v9 = vmul.f32 %v5529_v51, %v3528_v53 }
 0x2f1   :  { %v3458_v16 = vpop.f32.mrf.mxu1 }
 0x2f2   :  { %v3530_v0 = vmax.f32 %v3453_v60, %v3498_v33  ;;  %v3499_v26 = vmul.f32 0.2, %v3457_v44  ;;  %v3459_v46 = vadd.f32 %v3458_v16, %v3346_v22  ;;  %v3613_v1 = vadd.f32 %v3572_v9, %v3571_v40 }
 0x2f3   :  { %v3460_v58 = vpop.f32.mrf.mxu1  ;;  %v3573_v14 = vmul.f32 %v5526_v63, %v3529_v10  ;;  %v5621_v33 = vstv %s4252_s4 }
 0x2f4   :  { %v3531_v27 = vmax.f32 %v3457_v44, %v3499_v26  ;;  %v3500_v41 = vmul.f32 0.2, %v3459_v46  ;;  %v3461_v6 = vadd.f32 %v3460_v58, %v3348_v35  ;;  %3614 = vadd.xlane.f32.xlu0 %v3613_v1  ;;  %v3574_v11 = vmul.f32 %v5529_v51, %v3530_v0 }
 0x2f5   :  { %v3462_v30 = vpop.f32.mrf.mxu1 }
 0x2f6   :  { %v3532_v25 = vmax.f32 %v3459_v46, %v3500_v41  ;;  %v3501_v12 = vmul.f32 0.2, %v3461_v6  ;;  %v3463_v62 = vadd.f32 %v3462_v30, %v3350_v34  ;;  %v3616_v18 = vadd.f32 %v3574_v11, %v3573_v14 }
 0x2f7   :  { %v3466_v37 = vpop.f32.mrf.mxu1  ;;  %v3575_v20 = vmul.f32 %v5526_v63, %v3531_v27 }
 0x2f8   :  { %v3533_v48 = vmax.f32 %v3461_v6, %v3501_v12  ;;  %v3502_v57 = vmul.f32 0.2, %v3463_v62  ;;  %v3467_v45 = vadd.f32 %v3466_v37, %v3354_v56  ;;  %3617 = vadd.xlane.f32.xlu1 %v3616_v18  ;;  %v3576_v55 = vmul.f32 %v5529_v51, %v3532_v25 }
 0x2f9   :  { %v3468_v50 = vpop.f32.mrf.mxu1 }
 0x2fa   :  { %v3534_v19 = vmax.f32 %v3463_v62, %v3502_v57  ;;  %v3503_v4 = vmul.f32 0.2, %v3467_v45  ;;  %v3469_v52 = vadd.f32 %v3468_v50, %v3356_v2  ;;  %v3619_v3 = vadd.f32 %v3576_v55, %v3575_v20 }
 0x2fb   :  { %v3470_v8 = vpop.f32.mrf.mxu1  ;;  %v3577_v54 = vmul.f32 %v5526_v63, %v3533_v48 }
 0x2fc   :  { %v3535_v15 = vmax.f32 %v3467_v45, %v3503_v4  ;;  %v3504_v43 = vmul.f32 0.2, %v3469_v52  ;;  %v3471_v38 = vadd.f32 %v3470_v8, %v3358_v42  ;;  %3620 = vadd.xlane.f32.xlu0 %v3619_v3  ;;  %v3578_v24 = vmul.f32 %v5529_v51, %v3534_v19 }
 0x2fd   :  { %v3472_v7 = vpop.f32.mrf.mxu1 }
 0x2fe   :  { %v3536_v36 = vmax.f32 %v3469_v52, %v3504_v43  ;;  %v3505_v28 = vmul.f32 0.2, %v3471_v38  ;;  %v3473_v47 = vadd.f32 %v3472_v7, %v3360_v49  ;;  %v3622_v39 = vadd.f32 %v3578_v24, %v3577_v54 }
 0x2ff   :  { %v3579_v17 = vmul.f32 %v5526_v63, %v3535_v15 }
 0x300   :  { %v3537_v32 = vmax.f32 %v3471_v38, %v3505_v28  ;;  %v3506_v29 = vmul.f32 0.2, %v3473_v47  ;;  %3623 = vadd.xlane.f32.xlu1 %v3622_v39  ;;  %v3580_v13 = vmul.f32 %v5529_v51, %v3536_v36 }
 0x302   :  { %v3538_v53 = vmax.f32 %v3473_v47, %v3506_v29  ;;  %v3625_v5 = vadd.f32 %v3580_v13, %v3579_v17  ;;  %v3581_v60 = vmul.f32 %v5526_v63, %v3537_v32 }
 0x304   :  { %3626 = vadd.xlane.f32.xlu0 %v3625_v5  ;;  %v3582_v31 = vmul.f32 %v5529_v51, %v3538_v53 }
 0x306   :  { %v3628_v22 = vadd.f32 %v3582_v31, %v3581_v60 }
 0x308   :  { %3629 = vadd.xlane.f32.xlu1 %v3628_v22 }
 0x355   :  { %v3585_v59 = vpop.xlane.xlu0 %3584 }
 0x356   :  { %v3634_v35 = vadd.f32 %v5621_v33, %v3585_v59 }
 0x358   :  { %v4235_v51 = vmul.f32 -1.442695, %v3634_v35 }
 0x359   :  { %v3588_v61 = vpop.xlane.xlu0 %3587 }
 0x35a   :  { %v3635_v0 = vadd.f32 %v5621_v33, %v3588_v61  ;;  %4776 = vpow2.f32 %v4235_v51 }
 0x35c   :  { %v4236_v34 = vmul.f32 -1.442695, %v3635_v0 }
 0x35d   :  { %v3591_v40 = vpop.xlane.xlu1 %3590 }
 0x35e   :  { %v3636_v63 = vadd.f32 %v5621_v33, %v3591_v40  ;;  %4778 = vpow2.f32 %v4236_v34 }
 0x360   :  { %v4237_v14 = vmul.f32 -1.442695, %v3636_v63  ;;  %v5715_v63 = vlaneseq }
 0x361   :  { %v3594_v10 = vpop.xlane.xlu1 %3593 }
 0x362   :  { %v3637_v46 = vadd.f32 %v5621_v33, %v3594_v10  ;;  %4780 = vpow2.f32 %v4237_v14 }
 0x364   :  { %v4238_v41 = vmul.f32 -1.442695, %v3637_v46 }
 0x365   :  { %v3597_v44 = vpop.xlane.xlu0 %3596 }
 0x366   :  { %v3638_v58 = vadd.f32 %v5621_v33, %v3597_v44  ;;  %4782 = vpow2.f32 %v4238_v41  ;;  %v5716_v41 = vld [vmem:[#allocation13_spill] sm:$0xff] }
 0x367   :  { %v4777_v3 = vpop.eup %4776 }
 0x368   :  { %v4239_v30 = vmul.f32 -1.442695, %v3638_v58  ;;  %v3698_v43 = vadd.f32 1.0, %v4777_v3 }
 0x369   :  { %v3600_v9 = vpop.xlane.xlu1 %3599 }
 0x36a   :  { %v3639_v21 = vadd.f32 %v5621_v33, %v3600_v9  ;;  %4784 = vpow2.f32 %v4239_v30 }
 0x36b   :  { %v4779_v8 = vpop.eup %4778 }
 0x36c   :  { %v4240_v12 = vmul.f32 -1.442695, %v3639_v21  ;;  %v3699_v7 = vadd.f32 1.0, %v4779_v8 }
 0x36d   :  { %v3603_v16 = vpop.xlane.xlu0 %3602 }
 0x36e   :  { %v3640_v6 = vadd.f32 %v5621_v33, %v3603_v16  ;;  %4786 = vpow2.f32 %v4240_v12 }
 0x36f   :  { %v4781_v15 = vpop.eup %4780 }
 0x370   :  { %v4241_v2 = vmul.f32 -1.442695, %v3640_v6  ;;  %v3700_v47 = vadd.f32 1.0, %v4781_v15 }
 0x371   :  { %v3606_v26 = vpop.xlane.xlu1 %3605 }
 0x372   :  { %v3641_v11 = vadd.f32 %v5621_v33, %v3606_v26  ;;  %4788 = vpow2.f32 %v4241_v2  ;;  %v5640_v26 = vand.u32 127, %v5715_v63 }
 0x373   :  { %v4783_v24 = vpop.eup %4782 }
 0x374   :  { %v4242_v20 = vmul.f32 -1.442695, %v3641_v11  ;;  %v3701_v29 = vadd.f32 1.0, %v4783_v24  ;;  %v3775_v58 = vadd.s32 4294967280, %v5640_v26  ;;  %v3782_v21 = vadd.s32 4294967272, %v5640_v26 }
 0x375   :  { %v3609_v1 = vpop.xlane.xlu0 %3608  ;;  %v3766_v6 = vsub.s32 %v5640_v26, %v5716_v41  ;;  %v3789_v11 = vadd.s32 4294967264, %v5640_v26  ;;  %v3803_v2 = vadd.s32 4294967248, %v5640_v26  ;;  %v3838_v24 = vadd.s32 4294967208, %v5640_v26 }
 0x376   :  { %v3642_v25 = vadd.f32 %v5621_v33, %v3609_v1  ;;  %4790 = vpow2.f32 %v4242_v20  ;;  %v3768_v1 = vadd.s32 4294967288, %v5640_v26 }
 0x377   :  { %v4785_v28 = vpop.eup %4784 }
 0x378   :  { %v4243_v48 = vmul.f32 -1.442695, %v3642_v25  ;;  %v3702_v5 = vadd.f32 1.0, %v4785_v28  ;;  %v3771_v30 = vsub.s32 %v3768_v1, %v5716_v41  ;;  %v3796_v25 = vadd.s32 4294967256, %v5640_v26 }
 0x379   :  { %v3612_v27 = vpop.xlane.xlu1 %3611 }
 0x37a   :  { %v3643_v62 = vadd.f32 %v5621_v33, %v3612_v27  ;;  %4792 = vpow2.f32 %v4243_v48 }
 0x37b   :  { %v4787_v32 = vpop.eup %4786 }
 0x37c   :  { %v4244_v57 = vmul.f32 -1.442695, %v3643_v62  ;;  %v3703_v22 = vadd.f32 1.0, %v4787_v32 }
 0x37d   :  { %v3615_v56 = vpop.xlane.xlu0 %3614 }
 0x37e   :  { %v3644_v37 = vadd.f32 %v5621_v33, %v3615_v56  ;;  %4794 = vpow2.f32 %v4244_v57  ;;  %v3792_v57 = vsub.s32 %v3789_v11, %v5716_v41 }
 0x37f   :  { %v4789_v13 = vpop.eup %4788 }
 0x380   :  { %v4245_v55 = vmul.f32 -1.442695, %v3644_v37  ;;  %v3704_v40 = vadd.f32 1.0, %v4789_v13  ;;  %v3810_v37 = vadd.s32 4294967240, %v5640_v26  ;;  %v3852_v13 = vadd.s32 4294967192, %v5640_v26 }
 0x381   :  { %v3618_v18 = vpop.xlane.xlu1 %3617 }
 0x382   :  { %v3645_v23 = vadd.f32 %v5621_v33, %v3618_v18  ;;  %4796 = vpow2.f32 %v4245_v55  ;;  %v3778_v18 = vsub.s32 %v3775_v58, %v5716_v41  ;;  %v3813_v8 = vsub.s32 %v3810_v37, %v5716_v41 }
 0x383   :  { %v4791_v53 = vpop.eup %4790 }
 0x384   :  { %v4246_v50 = vmul.f32 -1.442695, %v3645_v23  ;;  %v3705_v10 = vadd.f32 1.0, %v4791_v53  ;;  %v3785_v23 = vsub.s32 %v3782_v21, %v5716_v41 }
 0x385   :  { %v3621_v45 = vpop.xlane.xlu0 %3620 }
 0x386   :  { %v3646_v42 = vadd.f32 %v5621_v33, %v3621_v45  ;;  %4798 = vpow2.f32 %v4246_v50  ;;  %v3817_v45 = vadd.s32 4294967232, %v5640_v26  ;;  %v3799_v50 = vsub.s32 %v3796_v25, %v5716_v41 }
 0x387   :  { %v4793_v31 = vpop.eup %4792 }
 0x388   :  { %v4247_v19 = vmul.f32 -1.442695, %v3646_v42  ;;  %v3706_v9 = vadd.f32 1.0, %v4793_v31  ;;  %v3820_v28 = vsub.s32 %v3817_v45, %v5716_v41 }
 0x389   :  { %v3624_v4 = vpop.xlane.xlu1 %3623 }
 0x38a   :  { %v3647_v52 = vadd.f32 %v5621_v33, %v3624_v4  ;;  %4800 = vpow2.f32 %v4247_v19  ;;  %v3824_v19 = vadd.s32 4294967224, %v5640_v26 }
 0x38b   :  { %v4795_v59 = vpop.eup %4794 }
 0x38c   :  { %v4248_v49 = vmul.f32 -1.442695, %v3647_v52 }
 0x38d   :  { %v3627_v54 = vpop.xlane.xlu0 %3626 }
 0x38e   :  { %4802 = vpow2.f32 %v4248_v49  ;;  %v3648_v38 = vadd.f32 %v5621_v33, %v3627_v54  ;;  %v3806_v49 = vsub.s32 %v3803_v2, %v5716_v41  ;;  %v3831_v54 = vadd.s32 4294967216, %v5640_v26 }
 0x38f   :  { %4804 = vrcp.f32 %v3698_v43  ;;  %v4797_v61 = vpop.eup %4796 }
 0x390   :  { %v4249_v36 = vmul.f32 -1.442695, %v3648_v38  ;;  %v3708_v16 = vadd.f32 1.0, %v4797_v61  ;;  %v3834_v31 = vsub.s32 %v3831_v54, %v5716_v41 }
 0x391   :  { %v3630_v39 = vpop.xlane.xlu1 %3629 }
 0x392   :  { %v3649_v17 = vadd.f32 %v5621_v33, %v3630_v39  ;;  %4806 = vpow2.f32 %v4249_v36  ;;  %v3707_v33 = vadd.f32 1.0, %v4795_v59 }
 0x393   :  { %4808 = vrcp.f32 %v3699_v7  ;;  %v4799_v44 = vpop.eup %4798 }
 0x394   :  { %v4250_v60 = vmul.f32 -1.442695, %v3649_v17  ;;  %4810 = vrcp.f32 %v3700_v47  ;;  %v3709_v51 = vadd.f32 1.0, %v4799_v44  ;;  %v3845_v47 = vadd.s32 4294967200, %v5640_v26 }
 0x395   :  { %4812 = vrcp.f32 %v3701_v29  ;;  %v3827_v17 = vsub.s32 %v3824_v19, %v5716_v41 }
 0x396   :  { %4814 = vpow2.f32 %v4250_v60 }
 0x397   :  { %4816 = vrcp.f32 %v3702_v5  ;;  %v4801_v35 = vpop.eup %4800 }
 0x398   :  { %4818 = vrcp.f32 %v3703_v22  ;;  %v3710_v46 = vadd.f32 1.0, %v4801_v35  ;;  %v3859_v22 = vadd.s32 4294967184, %v5640_v26 }
 0x399   :  { %4820 = vrcp.f32 %v3704_v40 }
 0x39a   :  { %4822 = vrcp.f32 %v3705_v10  ;;  %v3841_v10 = vsub.s32 %v3838_v24, %v5716_v41 }
 0x39b   :  { %v4803_v0 = vpop.eup %4802  ;;  %4824 = vrcp.f32 %v3706_v9 }
 0x39c   :  { %4826 = vrcp.f32 %v3707_v33  ;;  %v3711_v34 = vadd.f32 1.0, %v4803_v0  ;;  %v4805_v14 = vpop.eup %4804  ;;  %v3848_v33 = vsub.s32 %v3845_v47, %v5716_v41 }
 0x39d   :  { %4828 = vrcp.f32 %v3708_v16  ;;  %v3767_v43 = vrot.slane %v4805_v14, %v3766_v6  ;;  %v3862_v14 = vsub.s32 %v3859_v22, %v5716_v41 }
 0x39e   :  { %4830 = vrcp.f32 %v3709_v51  ;;  %v3855_v51 = vsub.s32 %v3852_v13, %v5716_v41 }
 0x39f   :  { %v4807_v27 = vpop.eup %4806  ;;  %4832 = vrcp.f32 %v3710_v46  ;;  %v3866_v46 = vadd.s32 4294967176, %v5640_v26 }
 0x3a0   :  { %v4809_v56 = vpop.eup %4808  ;;  %4834 = vrcp.f32 %v3711_v34  ;;  %v3712_v12 = vadd.f32 1.0, %v4807_v27 }
 0x3a1   :  { %v4811_v62 = vpop.eup %4810  ;;  %v3772_v42 = vrot.slane %v4809_v56, %v3771_v30  ;;  %v3869_v26 = vsub.s32 %v3866_v46, %v5716_v41 }
 0x3a2   :  { %v4813_v20 = vpop.eup %4812  ;;  %4836 = vrcp.f32 %v3712_v12  ;;  %v3779_v3 = vrot.slane %v4811_v62, %v3778_v18 }
 0x3a3   :  { %v4815_v48 = vpop.eup %4814  ;;  %v3786_v38 = vrot.slane %v4813_v20, %v3785_v23  ;;  %v3774_v32 = vsel %vm3773_vm0, %v3772_v42, %v3767_v43 }
 0x3a4   :  { %v4817_v55 = vpop.eup %4816  ;;  %v3713_v4 = vadd.f32 1.0, %v4815_v48  ;;  %v3781_v5 = vsel %vm3780_vm1, %v3779_v3, %v3774_v32 }
 0x3a5   :  { %v4819_v52 = vpop.eup %4818  ;;  %v3793_v36 = vrot.slane %v4817_v55, %v3792_v57  ;;  %v3788_v40 = vsel %vm3787_vm2, %v3786_v38, %v3781_v5 }
 0x3a6   :  { %v4821_v15 = vpop.eup %4820  ;;  %4838 = vrcp.f32 %v3713_v4  ;;  %v3800_v29 = vrot.slane %v4819_v52, %v3799_v50 }
 0x3a7   :  { %v4823_v7 = vpop.eup %4822  ;;  %v3807_v60 = vrot.slane %v4821_v15, %v3806_v49  ;;  %v3795_v9 = vsel %vm3794_vm3, %v3793_v36, %v3788_v40 }
 0x3a8   :  { %v4825_v39 = vpop.eup %4824  ;;  %v3814_v61 = vrot.slane %v4823_v7, %v3813_v8  ;;  %v3802_v0 = vsel %vm3801_vm4, %v3800_v29, %v3795_v9 }
 0x3a9   :  { %v4827_v53 = vpop.eup %4826  ;;  %v3821_v35 = vrot.slane %v4825_v39, %v3820_v28  ;;  %v3809_v34 = vsel %vm3808_vm5, %v3807_v60, %v3802_v0 }
 0x3aa   :  { %v4829_v59 = vpop.eup %4828  ;;  %v3828_v63 = vrot.slane %v4827_v53, %v3827_v17  ;;  %v3816_v21 = vsel %vm3815_vm6, %v3814_v61, %v3809_v34 }
 0x3ab   :  { %v4831_v44 = vpop.eup %4830  ;;  %v3835_v58 = vrot.slane %v4829_v59, %v3834_v31  ;;  %v3823_v11 = vsel %vm3822_vm7, %v3821_v35, %v3816_v21 }
 0x3ac   :  { %v4833_v16 = vpop.eup %4832  ;;  %v3842_v27 = vrot.slane %v4831_v44, %v3841_v10  ;;  %v3830_v30 = vsel %vm3829_vm8, %v3828_v63, %v3823_v11 }
 0x3ad   :  { %v4835_v1 = vpop.eup %4834  ;;  %v3849_v56 = vrot.slane %v4833_v16, %v3848_v33  ;;  %v3837_v12 = vsel %vm3836_vm9, %v3835_v58, %v3830_v30 }
 0x3ae   :  { %v3856_v25 = vrot.slane %v4835_v1, %v3855_v51  ;;  %v3844_v18 = vsel %vm3843_vm10, %v3842_v27, %v3837_v12 }
 0x3af   :  { %v4837_v6 = vpop.eup %4836  ;;  %v3851_v37 = vsel %vm3850_vm11, %v3849_v56, %v3844_v18 }
 0x3b0   :  { %v3863_v62 = vrot.slane %v4837_v6, %v3862_v14  ;;  %v3858_v20 = vsel %vm3857_vm12, %v3856_v25, %v3851_v37 }
 0x3b2   :  { %v3865_v48 = vsel %vm3864_vm13, %v3863_v62, %v3858_v20 }
 0x3b3   :  { %v4839_v2 = vpop.eup %4838 }
 0x3b4   :  { %v3870_v23 = vrot.slane %v4839_v2, %v3869_v26 }
 0x3b6   :  { %v3872_v57 = vsel %vm3871_vm14, %v3870_v23, %v3865_v48 }
 0x3b7   :  { %3874 = vst [vmem:[#allocation9] sm:$0x1] %v3872_v57 }
 0x3b8   :  { %4937 = shalt.err (!%p4934_p5)
}
 0x3b9   :  { %3884 = dma.vmem_to_hbm [thread:$0]  %s3882_s25, 16, %s5692_s7, [#allocation5]  }
 0x3ba   :  { %4950 = dma.done.wait [#allocation5], 16  }
 0x3bb   :  { %4951 = vsyncadd [#allocation5], 4294967280 }
 0x3bc   :  { %3888 = vsyncpa [#allocation4], 1 }
 0x3bd   :  { %3889 = vsyncpa [#allocation7], 1 }
 0x3be   :  { %3890 = vsyncpa [#allocation5], 1 }

</bundles_post_ra>
